<compile_context>
chip_gen: v7x
topology: tpu7x:2x2x1
jax: 0.10.0
libtpu: 0.0.40
codegen_flags: <defaults>
</compile_context>

<pallas_src>
import functools

import jax
import jax.numpy as jnp
from jax import lax
from jax.experimental import pallas as pl
from jax.experimental.pallas import tpu as pltpu


# ---------------------------------------------------------------------------
# Fused Pallas kernel: 2-layer LSTM (interleaved recurrences) + MLP head.
# ---------------------------------------------------------------------------
def _fused_lstm_kernel(x_ref, wih0_ref, whh0_ref, b0_ref,
                       wih1_ref, whh1_ref, b1_ref,
                       w1_ref, bh1_ref, w2_ref, bh2_ref,
                       out_ref,
                       gates_scr,
                       *, T, Bp, Hp, unroll):
    f32 = jnp.float32

    def sigmoid(x):
        # Single EUP push (tanh) instead of exp + reciprocal.
        return 0.5 * jnp.tanh(0.5 * x) + 0.5

    def cell_update(g, c_prev):
        # PyTorch gate order [i, f, g, o]; each gate spans whole 128-lane blocks.
        i_g = sigmoid(g[:, 0 * Hp:1 * Hp])
        f_g = sigmoid(g[:, 1 * Hp:2 * Hp])
        g_g = jnp.tanh(g[:, 2 * Hp:3 * Hp])
        o_g = sigmoid(g[:, 3 * Hp:4 * Hp])
        c_new = f_g * c_prev + i_g * g_g
        h_new = o_g * jnp.tanh(c_new)
        return h_new, c_new

    # Hoist the (1, 4Hp) bias broadcast out of the loop (no CSE for
    # broadcast_in_dim inside loops).
    b1_full = jnp.broadcast_to(b1_ref[...], (Bp, 4 * Hp))

    def layer0_step(t, h0, c0):
        # Input projection pre-computed; only h0 @ W_hh0 sits on the serial path.
        i0 = t * Bp if isinstance(t, int) else pl.multiple_of(t * Bp, Bp)
        g = gates_scr[pl.ds(i0, Bp), :] + jnp.dot(
            h0, whh0_ref[...], preferred_element_type=f32)
        return cell_update(g, c0)

    def layer1_step(h0_in, h1, c1):
        g = (jnp.dot(h0_in, wih1_ref[...], preferred_element_type=f32)
             + jnp.dot(h1, whh1_ref[...], preferred_element_type=f32)
             + b1_full)
        return cell_update(g, c1)

    zeros = jnp.zeros((Bp, Hp), f32)

    # ---- layer 0 hoisted input projection (b_ih + b_hh folded), all T at once.
    gates_scr[...] = (jnp.dot(x_ref[...], wih0_ref[...],
                              preferred_element_type=f32) + b0_ref[...])

    # ---- interleaved recurrences: peel layer-0 step 0, then each iteration t
    #      runs layer-1 step (t-1) and layer-0 step t (independent chains).
    h0, c0 = layer0_step(0, zeros, zeros)

    def body(t, carry):
        h0, c0, h1, c1 = carry
        h1n, c1n = layer1_step(h0, h1, c1)     # layer-1 step t-1 (uses h0_{t-1})
        h0n, c0n = layer0_step(t, h0, c0)      # layer-0 step t
        return (h0n, c0n, h1n, c1n)

    h0, c0, h1, c1 = lax.fori_loop(1, T, body, (h0, c0, zeros, zeros),
                                   unroll=unroll)
    h1, _ = layer1_step(h0, h1, c1)            # drain: layer-1 step T-1

    # ---- MLP head: Linear(H,128) -> ReLU -> (Dropout=id) -> Linear(128, Pp) ----
    hdn = jnp.maximum(
        jnp.dot(h1, w1_ref[...], preferred_element_type=f32) + bh1_ref[...],
        0.0)
    out_ref[...] = (jnp.dot(hdn, w2_ref[...], preferred_element_type=f32)
                    + bh2_ref[...])


# ---------------------------------------------------------------------------
# Weight padding helpers (lane/sublane alignment; zero padding is inert).
# ---------------------------------------------------------------------------
def _pad_gate_cols(w, H, Hp):
    """(rows, 4H) -> (rows, 4Hp): zero-pad each gate block from H to Hp lanes."""
    rows = w.shape[0]
    w4 = w.reshape(rows, 4, H)
    w4 = jnp.pad(w4, ((0, 0), (0, 0), (0, Hp - H)))
    return w4.reshape(rows, 4 * Hp)


def _pad_rows(w, rows_p):
    return jnp.pad(w, ((0, rows_p - w.shape[0]), (0, 0)))


def _tile_bytes(shape, dtype=jnp.float32):
    """Bytes of a 2-D array once padded to (8, 128) VMEM tiles."""
    r = -(-shape[0] // 8) * 8
    c = -(-shape[1] // 128) * 128
    return r * c * jnp.dtype(dtype).itemsize


# ---------------------------------------------------------------------------
# Deterministic parameter init + one-time layout preparation
# ---------------------------------------------------------------------------
def init_params(key, input_size, hidden_size=64, num_layers=2, pred_len=90):
    params = {"lstm": []}
    k = 1.0 / jnp.sqrt(hidden_size)
    keys = jax.random.split(key, num_layers * 3 + 4)
    ki = 0
    for layer in range(num_layers):
        d_in = input_size if layer == 0 else hidden_size
        # Weights stored pre-transposed: (D, 4H) / (H, 4H); bias = b_ih + b_hh.
        wih_t = jax.random.uniform(keys[ki], (d_in, 4 * hidden_size),
                                   minval=-k, maxval=k); ki += 1
        whh_t = jax.random.uniform(keys[ki], (hidden_size, 4 * hidden_size),
                                   minval=-k, maxval=k); ki += 1
        b = jax.random.uniform(keys[ki], (1, 4 * hidden_size),
                               minval=-k, maxval=k); ki += 1
        params["lstm"].append((wih_t.astype(jnp.float32),
                               whh_t.astype(jnp.float32),
                               b.astype(jnp.float32)))
    k1 = 1.0 / jnp.sqrt(hidden_size)
    params["w1"] = jax.random.uniform(keys[ki], (hidden_size, 128),
                                      minval=-k1, maxval=k1); ki += 1
    params["b1"] = jax.random.uniform(keys[ki], (1, 128),
                                      minval=-k1, maxval=k1); ki += 1
    k2 = 1.0 / jnp.sqrt(128.0)
    params["w2"] = jax.random.uniform(keys[ki], (128, pred_len),
                                      minval=-k2, maxval=k2); ki += 1
    params["b2"] = jax.random.uniform(keys[ki], (1, pred_len),
                                      minval=-k2, maxval=k2); ki += 1
    return params


def prepare_params(params):
    """One-time weight padding / layout prep, hoisted out of the per-call jit."""
    lstm_layers = params["lstm"]
    assert len(lstm_layers) == 2, "fused kernel is specialized to num_layers=2"
    H = lstm_layers[0][1].shape[0]
    Hp = ((H + 127) // 128) * 128          # each gate -> whole 128-lane blocks
    P = params["w2"].shape[1]
    Pp = ((P + 127) // 128) * 128          # lane-dense head output

    padded = []
    for layer_idx, (wih_t, whh_t, b) in enumerate(lstm_layers):
        wih_p = _pad_gate_cols(wih_t, H, Hp)
        if layer_idx > 0:
            wih_p = _pad_rows(wih_p, Hp)   # input dim == H for layer > 0
        whh_p = _pad_rows(_pad_gate_cols(whh_t, H, Hp), Hp)
        b_p = _pad_gate_cols(b, H, Hp)
        padded.append((wih_p, whh_p, b_p))
    (wih0, whh0, b0), (wih1, whh1, b1) = padded

    return {
        "wih0": wih0, "whh0": whh0, "b0": b0,
        "wih1": wih1, "whh1": whh1, "b1": b1,
        "w1": _pad_rows(params["w1"], Hp),                       # (Hp, 128)
        "bh1": params["b1"],                                     # (1, 128)
        "w2": jnp.pad(params["w2"], ((0, 0), (0, Pp - P))),      # (128, Pp)
        "bh2": jnp.pad(params["b2"], ((0, 0), (0, Pp - P))),     # (1, Pp)
    }


# ---------------------------------------------------------------------------
# Jitted forward wrapper
# ---------------------------------------------------------------------------
@functools.partial(jax.jit, static_argnames=("pred_len",))
def lstm_forward(x, prepped, pred_len):
    """x: (B, T, input_size) float32 -> (B, pred_len) float32."""
    # TODO(synk): nn.Dropout layers are identity here (eval-mode forward).
    B, T, D = x.shape
    Hp = prepped["whh0"].shape[0]
    Pp = prepped["w2"].shape[1]
    Bp = max(8, ((B + 7) // 8) * 8)            # sublane-aligned batch

    # time-major, batch padded, flattened to (T*Bp, D)
    xt = jnp.transpose(x.astype(jnp.float32), (1, 0, 2))          # (T, B, D)
    xt = jnp.pad(xt, ((0, 0), (0, Bp - B), (0, 0)))               # (T, Bp, D)
    x2d = xt.reshape(T * Bp, D)

    # VMEM footprint (inputs + output + scratch) with (8,128) tile padding;
    # request an explicit limit with headroom, capped for v7x's 64 MiB VMEM.
    footprint = (
        _tile_bytes((T * Bp, D)) + _tile_bytes((T * Bp, 4 * Hp))        # x, gates
        + _tile_bytes((D, 4 * Hp)) + 3 * _tile_bytes((Hp, 4 * Hp))      # wih0/whh0/wih1/whh1
        + 2 * _tile_bytes((1, 4 * Hp))                                  # b0, b1
        + _tile_bytes((Hp, 128)) + _tile_bytes((1, 128))                # w1, bh1
        + _tile_bytes((128, Pp)) + _tile_bytes((1, Pp))                 # w2, bh2
        + _tile_bytes((Bp, Pp)))                                        # out
    vmem_limit = int(min(max(2 * footprint + (4 << 20), 16 << 20), 64 << 20))

    kernel = functools.partial(_fused_lstm_kernel, T=T, Bp=Bp, Hp=Hp,
                               unroll=min(8, max(T - 1, 1)))
    vmem_spec = pl.BlockSpec(memory_space=pltpu.MemorySpace.VMEM)
    out_padded = pl.pallas_call(
        kernel,
        out_shape=jax.ShapeDtypeStruct((Bp, Pp), jnp.float32),
        in_specs=[vmem_spec] * 11,
        out_specs=vmem_spec,
        scratch_shapes=[
            pltpu.VMEM((T * Bp, 4 * Hp), jnp.float32),   # hoisted layer-0 gates
        ],
        compiler_params=pltpu.CompilerParams(vmem_limit_bytes=vmem_limit),
        # TODO(synk): for large T, chunk the hoisted gate buffer (v7x 64 MiB
        # VMEM) and add a batch grid axis (dimension_semantics=("parallel",))
        # to use both v7x TensorCores once B is large enough.
    )(x2d, prepped["wih0"], prepped["whh0"], prepped["b0"],
      prepped["wih1"], prepped["whh1"], prepped["b1"],
      prepped["w1"], prepped["bh1"], prepped["w2"], prepped["bh2"])
    return out_padded[:B, :pred_len]


# ---------------------------------------------------------------------------
# Pure-JAX reference for correctness checking
# ---------------------------------------------------------------------------
def ref_forward(x, params):
    B, T, _ = x.shape
    seq = x.astype(jnp.float32)
    for (wih_t, whh_t, b) in params["lstm"]:
        H = whh_t.shape[0]
        h = jnp.zeros((B, H), jnp.float32)
        c = jnp.zeros((B, H), jnp.float32)
        outs = []
        for t in range(T):
            gates = seq[:, t] @ wih_t + h @ whh_t + b
            i_g = jax.nn.sigmoid(gates[:, 0 * H:1 * H])
            f_g = jax.nn.sigmoid(gates[:, 1 * H:2 * H])
            g_g = jnp.tanh(gates[:, 2 * H:3 * H])
            o_g = jax.nn.sigmoid(gates[:, 3 * H:4 * H])
            c = f_g * c + i_g * g_g
            h = o_g * jnp.tanh(c)
            outs.append(h)
        seq = jnp.stack(outs, axis=1)
    last = seq[:, -1]
    h1 = jnp.maximum(last @ params["w1"] + params["b1"], 0.0)
    return h1 @ params["w2"] + params["b2"]


if __name__ == "__main__":
    B, T, INPUT_SIZE = 2, 8, 4
    HIDDEN, LAYERS, PRED_LEN = 64, 2, 90

    key = jax.random.PRNGKey(0)
    k_x, k_p = jax.random.split(key)
    x = jax.random.normal(k_x, (B, T, INPUT_SIZE), dtype=jnp.float32)
    params = init_params(k_p, INPUT_SIZE, HIDDEN, LAYERS, PRED_LEN)
    prepped = prepare_params(params)       # one-time layout prep, outside jit

    out = jax.block_until_ready(lstm_forward(x, prepped, PRED_LEN))
    assert out.shape == (B, PRED_LEN), out.shape

    ref = ref_forward(x, params)
    assert jnp.allclose(out, ref, atol=1e-4, rtol=1e-4), (
        float(jnp.max(jnp.abs(out - ref))))

    print("KERNEL_OK")
</pallas_src>

<mosaic_0001>
module attributes {stable_mosaic.version = 11 : i64} {
  func.func @_fused_lstm_kernel(%arg0: memref<64x4xf32, #tpu.memory_space<vmem>>, %arg1: memref<4x512xf32, #tpu.memory_space<vmem>>, %arg2: memref<128x512xf32, #tpu.memory_space<vmem>>, %arg3: memref<1x512xf32, #tpu.memory_space<vmem>>, %arg4: memref<128x512xf32, #tpu.memory_space<vmem>>, %arg5: memref<128x512xf32, #tpu.memory_space<vmem>>, %arg6: memref<1x512xf32, #tpu.memory_space<vmem>>, %arg7: memref<128x128xf32, #tpu.memory_space<vmem>>, %arg8: memref<1x128xf32, #tpu.memory_space<vmem>>, %arg9: memref<128x128xf32, #tpu.memory_space<vmem>>, %arg10: memref<1x128xf32, #tpu.memory_space<vmem>>, %arg11: memref<8x128xf32, #tpu.memory_space<vmem>>, %arg12: memref<64x512xf32, #tpu.memory_space<vmem>>) attributes {dimension_semantics = [], scalar_prefetch = 0 : i64, scratch_operands = 1 : i64, tpu.core_type = #tpu.core_type<tc>} {
    %c0 = arith.constant 0 : index
    %c0_0 = arith.constant 0 : index
    %0 = vector.load %arg6[%c0, %c0_0] : memref<1x512xf32, #tpu.memory_space<vmem>>, vector<1x512xf32>
    %1 = vector.shape_cast %0 : vector<1x512xf32> to vector<1x512xf32>
    %2 = vector.broadcast %1 : vector<1x512xf32> to vector<8x512xf32>
    %cst = arith.constant 0.000000e+00 : f32
    %3 = vector.broadcast %cst : f32 to vector<8x128xf32>
    %c0_1 = arith.constant 0 : index
    %c0_2 = arith.constant 0 : index
    %4 = vector.load %arg0[%c0_1, %c0_2] : memref<64x4xf32, #tpu.memory_space<vmem>>, vector<64x4xf32>
    %c0_3 = arith.constant 0 : index
    %c0_4 = arith.constant 0 : index
    %5 = vector.load %arg1[%c0_3, %c0_4] : memref<4x512xf32, #tpu.memory_space<vmem>>, vector<4x512xf32>
    %cst_5 = arith.constant dense<0.000000e+00> : vector<64x512xf32>
    %6 = tpu.matmul %4, %5, %cst_5 {dimension_numbers = #tpu.dot_dimension_numbers<[1], [0], [0], [1], [0, 0, 1, 1], [], []>} : vector<64x4xf32>, vector<4x512xf32>, vector<64x512xf32> -> vector<64x512xf32>
    %c0_6 = arith.constant 0 : index
    %c0_7 = arith.constant 0 : index
    %7 = vector.load %arg3[%c0_6, %c0_7] : memref<1x512xf32, #tpu.memory_space<vmem>>, vector<1x512xf32>
    %8 = vector.broadcast %7 : vector<1x512xf32> to vector<64x512xf32>
    %9 = arith.addf %6, %8 : vector<64x512xf32>
    %c0_8 = arith.constant 0 : index
    %c0_9 = arith.constant 0 : index
    %10 = vector.load %arg12[%c0_8, %c0_9] : memref<64x512xf32, #tpu.memory_space<vmem>>, vector<64x512xf32>
    tpu.vector_store %arg12[%c0_8, %c0_9], %9 {strides = array<i32>} : memref<64x512xf32, #tpu.memory_space<vmem>>, vector<64x512xf32>,
    %c0_10 = arith.constant 0 : index
    %c0_11 = arith.constant 0 : index
    %11 = vector.load %arg12[%c0_10, %c0_11] : memref<64x512xf32, #tpu.memory_space<vmem>>, vector<8x512xf32>
    %c0_12 = arith.constant 0 : index
    %c0_13 = arith.constant 0 : index
    %12 = vector.load %arg2[%c0_12, %c0_13] : memref<128x512xf32, #tpu.memory_space<vmem>>, vector<128x512xf32>
    %cst_14 = arith.constant dense<0.000000e+00> : vector<8x512xf32>
    %13 = tpu.matmul %3, %12, %cst_14 {dimension_numbers = #tpu.dot_dimension_numbers<[1], [0], [0], [1], [0, 0, 1, 1], [], []>} : vector<8x128xf32>, vector<128x512xf32>, vector<8x512xf32> -> vector<8x512xf32>
    %14 = arith.addf %11, %13 : vector<8x512xf32>
    %15 = vector.extract_strided_slice %14 {offsets = [0, 0], sizes = [8, 128], strides = [1, 1]} : vector<8x512xf32> to vector<8x128xf32>
    %cst_15 = arith.constant 5.000000e-01 : f32
    %16 = vector.broadcast %cst_15 : f32 to vector<8x128xf32>
    %17 = arith.mulf %16, %15 : vector<8x128xf32>
    %18 = math.tanh %17 : vector<8x128xf32>
    %cst_16 = arith.constant 5.000000e-01 : f32
    %19 = vector.broadcast %cst_16 : f32 to vector<8x128xf32>
    %20 = arith.mulf %19, %18 : vector<8x128xf32>
    %cst_17 = arith.constant 5.000000e-01 : f32
    %21 = vector.broadcast %cst_17 : f32 to vector<8x128xf32>
    %22 = arith.addf %20, %21 : vector<8x128xf32>
    %23 = vector.extract_strided_slice %14 {offsets = [0, 128], sizes = [8, 128], strides = [1, 1]} : vector<8x512xf32> to vector<8x128xf32>
    %cst_18 = arith.constant 5.000000e-01 : f32
    %24 = vector.broadcast %cst_18 : f32 to vector<8x128xf32>
    %25 = arith.mulf %24, %23 : vector<8x128xf32>
    %26 = math.tanh %25 : vector<8x128xf32>
    %cst_19 = arith.constant 5.000000e-01 : f32
    %27 = vector.broadcast %cst_19 : f32 to vector<8x128xf32>
    %28 = arith.mulf %27, %26 : vector<8x128xf32>
    %cst_20 = arith.constant 5.000000e-01 : f32
    %29 = vector.broadcast %cst_20 : f32 to vector<8x128xf32>
    %30 = arith.addf %28, %29 : vector<8x128xf32>
    %31 = vector.extract_strided_slice %14 {offsets = [0, 256], sizes = [8, 128], strides = [1, 1]} : vector<8x512xf32> to vector<8x128xf32>
    %32 = math.tanh %31 : vector<8x128xf32>
    %33 = vector.extract_strided_slice %14 {offsets = [0, 384], sizes = [8, 128], strides = [1, 1]} : vector<8x512xf32> to vector<8x128xf32>
    %cst_21 = arith.constant 5.000000e-01 : f32
    %34 = vector.broadcast %cst_21 : f32 to vector<8x128xf32>
    %35 = arith.mulf %34, %33 : vector<8x128xf32>
    %36 = math.tanh %35 : vector<8x128xf32>
    %cst_22 = arith.constant 5.000000e-01 : f32
    %37 = vector.broadcast %cst_22 : f32 to vector<8x128xf32>
    %38 = arith.mulf %37, %36 : vector<8x128xf32>
    %cst_23 = arith.constant 5.000000e-01 : f32
    %39 = vector.broadcast %cst_23 : f32 to vector<8x128xf32>
    %40 = arith.addf %38, %39 : vector<8x128xf32>
    %41 = arith.mulf %30, %3 : vector<8x128xf32>
    %42 = arith.mulf %22, %32 : vector<8x128xf32>
    %43 = arith.addf %41, %42 : vector<8x128xf32>
    %44 = math.tanh %43 : vector<8x128xf32>
    %45 = arith.mulf %40, %44 : vector<8x128xf32>
    %c1_i32 = arith.constant 1 : i32
    %c0_24 = arith.constant 0 : index
    %c0_25 = arith.constant 0 : index
    %46 = vector.load %arg4[%c0_24, %c0_25] : memref<128x512xf32, #tpu.memory_space<vmem>>, vector<128x512xf32>
    %cst_26 = arith.constant dense<0.000000e+00> : vector<8x512xf32>
    %47 = tpu.matmul %45, %46, %cst_26 {dimension_numbers = #tpu.dot_dimension_numbers<[1], [0], [0], [1], [0, 0, 1, 1], [], []>} : vector<8x128xf32>, vector<128x512xf32>, vector<8x512xf32> -> vector<8x512xf32>
    %c0_27 = arith.constant 0 : index
    %c0_28 = arith.constant 0 : index
    %48 = vector.load %arg5[%c0_27, %c0_28] : memref<128x512xf32, #tpu.memory_space<vmem>>, vector<128x512xf32>
    %cst_29 = arith.constant dense<0.000000e+00> : vector<8x512xf32>
    %49 = tpu.matmul %3, %48, %cst_29 {dimension_numbers = #tpu.dot_dimension_numbers<[1], [0], [0], [1], [0, 0, 1, 1], [], []>} : vector<8x128xf32>, vector<128x512xf32>, vector<8x512xf32> -> vector<8x512xf32>
    %50 = arith.addf %47, %49 : vector<8x512xf32>
    %51 = arith.addf %50, %2 : vector<8x512xf32>
    %52 = vector.extract_strided_slice %51 {offsets = [0, 0], sizes = [8, 128], strides = [1, 1]} : vector<8x512xf32> to vector<8x128xf32>
    %cst_30 = arith.constant 5.000000e-01 : f32
    %53 = vector.broadcast %cst_30 : f32 to vector<8x128xf32>
    %54 = arith.mulf %53, %52 : vector<8x128xf32>
    %55 = math.tanh %54 : vector<8x128xf32>
    %cst_31 = arith.constant 5.000000e-01 : f32
    %56 = vector.broadcast %cst_31 : f32 to vector<8x128xf32>
    %57 = arith.mulf %56, %55 : vector<8x128xf32>
    %cst_32 = arith.constant 5.000000e-01 : f32
    %58 = vector.broadcast %cst_32 : f32 to vector<8x128xf32>
    %59 = arith.addf %57, %58 : vector<8x128xf32>
    %60 = vector.extract_strided_slice %51 {offsets = [0, 128], sizes = [8, 128], strides = [1, 1]} : vector<8x512xf32> to vector<8x128xf32>
    %cst_33 = arith.constant 5.000000e-01 : f32
    %61 = vector.broadcast %cst_33 : f32 to vector<8x128xf32>
    %62 = arith.mulf %61, %60 : vector<8x128xf32>
    %63 = math.tanh %62 : vector<8x128xf32>
    %cst_34 = arith.constant 5.000000e-01 : f32
    %64 = vector.broadcast %cst_34 : f32 to vector<8x128xf32>
    %65 = arith.mulf %64, %63 : vector<8x128xf32>
    %cst_35 = arith.constant 5.000000e-01 : f32
    %66 = vector.broadcast %cst_35 : f32 to vector<8x128xf32>
    %67 = arith.addf %65, %66 : vector<8x128xf32>
    %68 = vector.extract_strided_slice %51 {offsets = [0, 256], sizes = [8, 128], strides = [1, 1]} : vector<8x512xf32> to vector<8x128xf32>
    %69 = math.tanh %68 : vector<8x128xf32>
    %70 = vector.extract_strided_slice %51 {offsets = [0, 384], sizes = [8, 128], strides = [1, 1]} : vector<8x512xf32> to vector<8x128xf32>
    %cst_36 = arith.constant 5.000000e-01 : f32
    %71 = vector.broadcast %cst_36 : f32 to vector<8x128xf32>
    %72 = arith.mulf %71, %70 : vector<8x128xf32>
    %73 = math.tanh %72 : vector<8x128xf32>
    %cst_37 = arith.constant 5.000000e-01 : f32
    %74 = vector.broadcast %cst_37 : f32 to vector<8x128xf32>
    %75 = arith.mulf %74, %73 : vector<8x128xf32>
    %cst_38 = arith.constant 5.000000e-01 : f32
    %76 = vector.broadcast %cst_38 : f32 to vector<8x128xf32>
    %77 = arith.addf %75, %76 : vector<8x128xf32>
    %78 = arith.mulf %67, %3 : vector<8x128xf32>
    %79 = arith.mulf %59, %69 : vector<8x128xf32>
    %80 = arith.addf %78, %79 : vector<8x128xf32>
    %81 = math.tanh %80 : vector<8x128xf32>
    %82 = arith.mulf %77, %81 : vector<8x128xf32>
    %c8_i32 = arith.constant 8 : i32
    %83 = arith.muli %c1_i32, %c8_i32 : i32
    %84 = tpu.assume_multiple %83, 8 : i32
    %85 = arith.index_cast %84 : i32 to index
    %c0_39 = arith.constant 0 : index
    %86 = vector.load %arg12[%85, %c0_39] : memref<64x512xf32, #tpu.memory_space<vmem>>, vector<8x512xf32>
    %c0_40 = arith.constant 0 : index
    %c0_41 = arith.constant 0 : index
    %87 = vector.load %arg2[%c0_40, %c0_41] : memref<128x512xf32, #tpu.memory_space<vmem>>, vector<128x512xf32>
    %cst_42 = arith.constant dense<0.000000e+00> : vector<8x512xf32>
    %88 = tpu.matmul %45, %87, %cst_42 {dimension_numbers = #tpu.dot_dimension_numbers<[1], [0], [0], [1], [0, 0, 1, 1], [], []>} : vector<8x128xf32>, vector<128x512xf32>, vector<8x512xf32> -> vector<8x512xf32>
    %89 = arith.addf %86, %88 : vector<8x512xf32>
    %90 = vector.extract_strided_slice %89 {offsets = [0, 0], sizes = [8, 128], strides = [1, 1]} : vector<8x512xf32> to vector<8x128xf32>
    %cst_43 = arith.constant 5.000000e-01 : f32
    %91 = vector.broadcast %cst_43 : f32 to vector<8x128xf32>
    %92 = arith.mulf %91, %90 : vector<8x128xf32>
    %93 = math.tanh %92 : vector<8x128xf32>
    %cst_44 = arith.constant 5.000000e-01 : f32
    %94 = vector.broadcast %cst_44 : f32 to vector<8x128xf32>
    %95 = arith.mulf %94, %93 : vector<8x128xf32>
    %cst_45 = arith.constant 5.000000e-01 : f32
    %96 = vector.broadcast %cst_45 : f32 to vector<8x128xf32>
    %97 = arith.addf %95, %96 : vector<8x128xf32>
    %98 = vector.extract_strided_slice %89 {offsets = [0, 128], sizes = [8, 128], strides = [1, 1]} : vector<8x512xf32> to vector<8x128xf32>
    %cst_46 = arith.constant 5.000000e-01 : f32
    %99 = vector.broadcast %cst_46 : f32 to vector<8x128xf32>
    %100 = arith.mulf %99, %98 : vector<8x128xf32>
    %101 = math.tanh %100 : vector<8x128xf32>
    %cst_47 = arith.constant 5.000000e-01 : f32
    %102 = vector.broadcast %cst_47 : f32 to vector<8x128xf32>
    %103 = arith.mulf %102, %101 : vector<8x128xf32>
    %cst_48 = arith.constant 5.000000e-01 : f32
    %104 = vector.broadcast %cst_48 : f32 to vector<8x128xf32>
    %105 = arith.addf %103, %104 : vector<8x128xf32>
    %106 = vector.extract_strided_slice %89 {offsets = [0, 256], sizes = [8, 128], strides = [1, 1]} : vector<8x512xf32> to vector<8x128xf32>
    %107 = math.tanh %106 : vector<8x128xf32>
    %108 = vector.extract_strided_slice %89 {offsets = [0, 384], sizes = [8, 128], strides = [1, 1]} : vector<8x512xf32> to vector<8x128xf32>
    %cst_49 = arith.constant 5.000000e-01 : f32
    %109 = vector.broadcast %cst_49 : f32 to vector<8x128xf32>
    %110 = arith.mulf %109, %108 : vector<8x128xf32>
    %111 = math.tanh %110 : vector<8x128xf32>
    %cst_50 = arith.constant 5.000000e-01 : f32
    %112 = vector.broadcast %cst_50 : f32 to vector<8x128xf32>
    %113 = arith.mulf %112, %111 : vector<8x128xf32>
    %cst_51 = arith.constant 5.000000e-01 : f32
    %114 = vector.broadcast %cst_51 : f32 to vector<8x128xf32>
    %115 = arith.addf %113, %114 : vector<8x128xf32>
    %116 = arith.mulf %105, %43 : vector<8x128xf32>
    %117 = arith.mulf %97, %107 : vector<8x128xf32>
    %118 = arith.addf %116, %117 : vector<8x128xf32>
    %119 = math.tanh %118 : vector<8x128xf32>
    %120 = arith.mulf %115, %119 : vector<8x128xf32>
    %c2_i32 = arith.constant 2 : i32
    %c0_52 = arith.constant 0 : index
    %c0_53 = arith.constant 0 : index
    %121 = vector.load %arg4[%c0_52, %c0_53] : memref<128x512xf32, #tpu.memory_space<vmem>>, vector<128x512xf32>
    %cst_54 = arith.constant dense<0.000000e+00> : vector<8x512xf32>
    %122 = tpu.matmul %120, %121, %cst_54 {dimension_numbers = #tpu.dot_dimension_numbers<[1], [0], [0], [1], [0, 0, 1, 1], [], []>} : vector<8x128xf32>, vector<128x512xf32>, vector<8x512xf32> -> vector<8x512xf32>
    %c0_55 = arith.constant 0 : index
    %c0_56 = arith.constant 0 : index
    %123 = vector.load %arg5[%c0_55, %c0_56] : memref<128x512xf32, #tpu.memory_space<vmem>>, vector<128x512xf32>
    %cst_57 = arith.constant dense<0.000000e+00> : vector<8x512xf32>
    %124 = tpu.matmul %82, %123, %cst_57 {dimension_numbers = #tpu.dot_dimension_numbers<[1], [0], [0], [1], [0, 0, 1, 1], [], []>} : vector<8x128xf32>, vector<128x512xf32>, vector<8x512xf32> -> vector<8x512xf32>
    %125 = arith.addf %122, %124 : vector<8x512xf32>
    %126 = arith.addf %125, %2 : vector<8x512xf32>
    %127 = vector.extract_strided_slice %126 {offsets = [0, 0], sizes = [8, 128], strides = [1, 1]} : vector<8x512xf32> to vector<8x128xf32>
    %cst_58 = arith.constant 5.000000e-01 : f32
    %128 = vector.broadcast %cst_58 : f32 to vector<8x128xf32>
    %129 = arith.mulf %128, %127 : vector<8x128xf32>
    %130 = math.tanh %129 : vector<8x128xf32>
    %cst_59 = arith.constant 5.000000e-01 : f32
    %131 = vector.broadcast %cst_59 : f32 to vector<8x128xf32>
    %132 = arith.mulf %131, %130 : vector<8x128xf32>
    %cst_60 = arith.constant 5.000000e-01 : f32
    %133 = vector.broadcast %cst_60 : f32 to vector<8x128xf32>
    %134 = arith.addf %132, %133 : vector<8x128xf32>
    %135 = vector.extract_strided_slice %126 {offsets = [0, 128], sizes = [8, 128], strides = [1, 1]} : vector<8x512xf32> to vector<8x128xf32>
    %cst_61 = arith.constant 5.000000e-01 : f32
    %136 = vector.broadcast %cst_61 : f32 to vector<8x128xf32>
    %137 = arith.mulf %136, %135 : vector<8x128xf32>
    %138 = math.tanh %137 : vector<8x128xf32>
    %cst_62 = arith.constant 5.000000e-01 : f32
    %139 = vector.broadcast %cst_62 : f32 to vector<8x128xf32>
    %140 = arith.mulf %139, %138 : vector<8x128xf32>
    %cst_63 = arith.constant 5.000000e-01 : f32
    %141 = vector.broadcast %cst_63 : f32 to vector<8x128xf32>
    %142 = arith.addf %140, %141 : vector<8x128xf32>
    %143 = vector.extract_strided_slice %126 {offsets = [0, 256], sizes = [8, 128], strides = [1, 1]} : vector<8x512xf32> to vector<8x128xf32>
    %144 = math.tanh %143 : vector<8x128xf32>
    %145 = vector.extract_strided_slice %126 {offsets = [0, 384], sizes = [8, 128], strides = [1, 1]} : vector<8x512xf32> to vector<8x128xf32>
    %cst_64 = arith.constant 5.000000e-01 : f32
    %146 = vector.broadcast %cst_64 : f32 to vector<8x128xf32>
    %147 = arith.mulf %146, %145 : vector<8x128xf32>
    %148 = math.tanh %147 : vector<8x128xf32>
    %cst_65 = arith.constant 5.000000e-01 : f32
    %149 = vector.broadcast %cst_65 : f32 to vector<8x128xf32>
    %150 = arith.mulf %149, %148 : vector<8x128xf32>
    %cst_66 = arith.constant 5.000000e-01 : f32
    %151 = vector.broadcast %cst_66 : f32 to vector<8x128xf32>
    %152 = arith.addf %150, %151 : vector<8x128xf32>
    %153 = arith.mulf %142, %80 : vector<8x128xf32>
    %154 = arith.mulf %134, %144 : vector<8x128xf32>
    %155 = arith.addf %153, %154 : vector<8x128xf32>
    %156 = math.tanh %155 : vector<8x128xf32>
    %157 = arith.mulf %152, %156 : vector<8x128xf32>
    %c8_i32_67 = arith.constant 8 : i32
    %158 = arith.muli %c2_i32, %c8_i32_67 : i32
    %159 = tpu.assume_multiple %158, 8 : i32
    %160 = arith.index_cast %159 : i32 to index
    %c0_68 = arith.constant 0 : index
    %161 = vector.load %arg12[%160, %c0_68] : memref<64x512xf32, #tpu.memory_space<vmem>>, vector<8x512xf32>
    %c0_69 = arith.constant 0 : index
    %c0_70 = arith.constant 0 : index
    %162 = vector.load %arg2[%c0_69, %c0_70] : memref<128x512xf32, #tpu.memory_space<vmem>>, vector<128x512xf32>
    %cst_71 = arith.constant dense<0.000000e+00> : vector<8x512xf32>
    %163 = tpu.matmul %120, %162, %cst_71 {dimension_numbers = #tpu.dot_dimension_numbers<[1], [0], [0], [1], [0, 0, 1, 1], [], []>} : vector<8x128xf32>, vector<128x512xf32>, vector<8x512xf32> -> vector<8x512xf32>
    %164 = arith.addf %161, %163 : vector<8x512xf32>
    %165 = vector.extract_strided_slice %164 {offsets = [0, 0], sizes = [8, 128], strides = [1, 1]} : vector<8x512xf32> to vector<8x128xf32>
    %cst_72 = arith.constant 5.000000e-01 : f32
    %166 = vector.broadcast %cst_72 : f32 to vector<8x128xf32>
    %167 = arith.mulf %166, %165 : vector<8x128xf32>
    %168 = math.tanh %167 : vector<8x128xf32>
    %cst_73 = arith.constant 5.000000e-01 : f32
    %169 = vector.broadcast %cst_73 : f32 to vector<8x128xf32>
    %170 = arith.mulf %169, %168 : vector<8x128xf32>
    %cst_74 = arith.constant 5.000000e-01 : f32
    %171 = vector.broadcast %cst_74 : f32 to vector<8x128xf32>
    %172 = arith.addf %170, %171 : vector<8x128xf32>
    %173 = vector.extract_strided_slice %164 {offsets = [0, 128], sizes = [8, 128], strides = [1, 1]} : vector<8x512xf32> to vector<8x128xf32>
    %cst_75 = arith.constant 5.000000e-01 : f32
    %174 = vector.broadcast %cst_75 : f32 to vector<8x128xf32>
    %175 = arith.mulf %174, %173 : vector<8x128xf32>
    %176 = math.tanh %175 : vector<8x128xf32>
    %cst_76 = arith.constant 5.000000e-01 : f32
    %177 = vector.broadcast %cst_76 : f32 to vector<8x128xf32>
    %178 = arith.mulf %177, %176 : vector<8x128xf32>
    %cst_77 = arith.constant 5.000000e-01 : f32
    %179 = vector.broadcast %cst_77 : f32 to vector<8x128xf32>
    %180 = arith.addf %178, %179 : vector<8x128xf32>
    %181 = vector.extract_strided_slice %164 {offsets = [0, 256], sizes = [8, 128], strides = [1, 1]} : vector<8x512xf32> to vector<8x128xf32>
    %182 = math.tanh %181 : vector<8x128xf32>
    %183 = vector.extract_strided_slice %164 {offsets = [0, 384], sizes = [8, 128], strides = [1, 1]} : vector<8x512xf32> to vector<8x128xf32>
    %cst_78 = arith.constant 5.000000e-01 : f32
    %184 = vector.broadcast %cst_78 : f32 to vector<8x128xf32>
    %185 = arith.mulf %184, %183 : vector<8x128xf32>
    %186 = math.tanh %185 : vector<8x128xf32>
    %cst_79 = arith.constant 5.000000e-01 : f32
    %187 = vector.broadcast %cst_79 : f32 to vector<8x128xf32>
    %188 = arith.mulf %187, %186 : vector<8x128xf32>
    %cst_80 = arith.constant 5.000000e-01 : f32
    %189 = vector.broadcast %cst_80 : f32 to vector<8x128xf32>
    %190 = arith.addf %188, %189 : vector<8x128xf32>
    %191 = arith.mulf %180, %118 : vector<8x128xf32>
    %192 = arith.mulf %172, %182 : vector<8x128xf32>
    %193 = arith.addf %191, %192 : vector<8x128xf32>
    %194 = math.tanh %193 : vector<8x128xf32>
    %195 = arith.mulf %190, %194 : vector<8x128xf32>
    %c3_i32 = arith.constant 3 : i32
    %c0_81 = arith.constant 0 : index
    %c0_82 = arith.constant 0 : index
    %196 = vector.load %arg4[%c0_81, %c0_82] : memref<128x512xf32, #tpu.memory_space<vmem>>, vector<128x512xf32>
    %cst_83 = arith.constant dense<0.000000e+00> : vector<8x512xf32>
    %197 = tpu.matmul %195, %196, %cst_83 {dimension_numbers = #tpu.dot_dimension_numbers<[1], [0], [0], [1], [0, 0, 1, 1], [], []>} : vector<8x128xf32>, vector<128x512xf32>, vector<8x512xf32> -> vector<8x512xf32>
    %c0_84 = arith.constant 0 : index
    %c0_85 = arith.constant 0 : index
    %198 = vector.load %arg5[%c0_84, %c0_85] : memref<128x512xf32, #tpu.memory_space<vmem>>, vector<128x512xf32>
    %cst_86 = arith.constant dense<0.000000e+00> : vector<8x512xf32>
    %199 = tpu.matmul %157, %198, %cst_86 {dimension_numbers = #tpu.dot_dimension_numbers<[1], [0], [0], [1], [0, 0, 1, 1], [], []>} : vector<8x128xf32>, vector<128x512xf32>, vector<8x512xf32> -> vector<8x512xf32>
    %200 = arith.addf %197, %199 : vector<8x512xf32>
    %201 = arith.addf %200, %2 : vector<8x512xf32>
    %202 = vector.extract_strided_slice %201 {offsets = [0, 0], sizes = [8, 128], strides = [1, 1]} : vector<8x512xf32> to vector<8x128xf32>
    %cst_87 = arith.constant 5.000000e-01 : f32
    %203 = vector.broadcast %cst_87 : f32 to vector<8x128xf32>
    %204 = arith.mulf %203, %202 : vector<8x128xf32>
    %205 = math.tanh %204 : vector<8x128xf32>
    %cst_88 = arith.constant 5.000000e-01 : f32
    %206 = vector.broadcast %cst_88 : f32 to vector<8x128xf32>
    %207 = arith.mulf %206, %205 : vector<8x128xf32>
    %cst_89 = arith.constant 5.000000e-01 : f32
    %208 = vector.broadcast %cst_89 : f32 to vector<8x128xf32>
    %209 = arith.addf %207, %208 : vector<8x128xf32>
    %210 = vector.extract_strided_slice %201 {offsets = [0, 128], sizes = [8, 128], strides = [1, 1]} : vector<8x512xf32> to vector<8x128xf32>
    %cst_90 = arith.constant 5.000000e-01 : f32
    %211 = vector.broadcast %cst_90 : f32 to vector<8x128xf32>
    %212 = arith.mulf %211, %210 : vector<8x128xf32>
    %213 = math.tanh %212 : vector<8x128xf32>
    %cst_91 = arith.constant 5.000000e-01 : f32
    %214 = vector.broadcast %cst_91 : f32 to vector<8x128xf32>
    %215 = arith.mulf %214, %213 : vector<8x128xf32>
    %cst_92 = arith.constant 5.000000e-01 : f32
    %216 = vector.broadcast %cst_92 : f32 to vector<8x128xf32>
    %217 = arith.addf %215, %216 : vector<8x128xf32>
    %218 = vector.extract_strided_slice %201 {offsets = [0, 256], sizes = [8, 128], strides = [1, 1]} : vector<8x512xf32> to vector<8x128xf32>
    %219 = math.tanh %218 : vector<8x128xf32>
    %220 = vector.extract_strided_slice %201 {offsets = [0, 384], sizes = [8, 128], strides = [1, 1]} : vector<8x512xf32> to vector<8x128xf32>
    %cst_93 = arith.constant 5.000000e-01 : f32
    %221 = vector.broadcast %cst_93 : f32 to vector<8x128xf32>
    %222 = arith.mulf %221, %220 : vector<8x128xf32>
    %223 = math.tanh %222 : vector<8x128xf32>
    %cst_94 = arith.constant 5.000000e-01 : f32
    %224 = vector.broadcast %cst_94 : f32 to vector<8x128xf32>
    %225 = arith.mulf %224, %223 : vector<8x128xf32>
    %cst_95 = arith.constant 5.000000e-01 : f32
    %226 = vector.broadcast %cst_95 : f32 to vector<8x128xf32>
    %227 = arith.addf %225, %226 : vector<8x128xf32>
    %228 = arith.mulf %217, %155 : vector<8x128xf32>
    %229 = arith.mulf %209, %219 : vector<8x128xf32>
    %230 = arith.addf %228, %229 : vector<8x128xf32>
    %231 = math.tanh %230 : vector<8x128xf32>
    %232 = arith.mulf %227, %231 : vector<8x128xf32>
    %c8_i32_96 = arith.constant 8 : i32
    %233 = arith.muli %c3_i32, %c8_i32_96 : i32
    %234 = tpu.assume_multiple %233, 8 : i32
    %235 = arith.index_cast %234 : i32 to index
    %c0_97 = arith.constant 0 : index
    %236 = vector.load %arg12[%235, %c0_97] : memref<64x512xf32, #tpu.memory_space<vmem>>, vector<8x512xf32>
    %c0_98 = arith.constant 0 : index
    %c0_99 = arith.constant 0 : index
    %237 = vector.load %arg2[%c0_98, %c0_99] : memref<128x512xf32, #tpu.memory_space<vmem>>, vector<128x512xf32>
    %cst_100 = arith.constant dense<0.000000e+00> : vector<8x512xf32>
    %238 = tpu.matmul %195, %237, %cst_100 {dimension_numbers = #tpu.dot_dimension_numbers<[1], [0], [0], [1], [0, 0, 1, 1], [], []>} : vector<8x128xf32>, vector<128x512xf32>, vector<8x512xf32> -> vector<8x512xf32>
    %239 = arith.addf %236, %238 : vector<8x512xf32>
    %240 = vector.extract_strided_slice %239 {offsets = [0, 0], sizes = [8, 128], strides = [1, 1]} : vector<8x512xf32> to vector<8x128xf32>
    %cst_101 = arith.constant 5.000000e-01 : f32
    %241 = vector.broadcast %cst_101 : f32 to vector<8x128xf32>
    %242 = arith.mulf %241, %240 : vector<8x128xf32>
    %243 = math.tanh %242 : vector<8x128xf32>
    %cst_102 = arith.constant 5.000000e-01 : f32
    %244 = vector.broadcast %cst_102 : f32 to vector<8x128xf32>
    %245 = arith.mulf %244, %243 : vector<8x128xf32>
    %cst_103 = arith.constant 5.000000e-01 : f32
    %246 = vector.broadcast %cst_103 : f32 to vector<8x128xf32>
    %247 = arith.addf %245, %246 : vector<8x128xf32>
    %248 = vector.extract_strided_slice %239 {offsets = [0, 128], sizes = [8, 128], strides = [1, 1]} : vector<8x512xf32> to vector<8x128xf32>
    %cst_104 = arith.constant 5.000000e-01 : f32
    %249 = vector.broadcast %cst_104 : f32 to vector<8x128xf32>
    %250 = arith.mulf %249, %248 : vector<8x128xf32>
    %251 = math.tanh %250 : vector<8x128xf32>
    %cst_105 = arith.constant 5.000000e-01 : f32
    %252 = vector.broadcast %cst_105 : f32 to vector<8x128xf32>
    %253 = arith.mulf %252, %251 : vector<8x128xf32>
    %cst_106 = arith.constant 5.000000e-01 : f32
    %254 = vector.broadcast %cst_106 : f32 to vector<8x128xf32>
    %255 = arith.addf %253, %254 : vector<8x128xf32>
    %256 = vector.extract_strided_slice %239 {offsets = [0, 256], sizes = [8, 128], strides = [1, 1]} : vector<8x512xf32> to vector<8x128xf32>
    %257 = math.tanh %256 : vector<8x128xf32>
    %258 = vector.extract_strided_slice %239 {offsets = [0, 384], sizes = [8, 128], strides = [1, 1]} : vector<8x512xf32> to vector<8x128xf32>
    %cst_107 = arith.constant 5.000000e-01 : f32
    %259 = vector.broadcast %cst_107 : f32 to vector<8x128xf32>
    %260 = arith.mulf %259, %258 : vector<8x128xf32>
    %261 = math.tanh %260 : vector<8x128xf32>
    %cst_108 = arith.constant 5.000000e-01 : f32
    %262 = vector.broadcast %cst_108 : f32 to vector<8x128xf32>
    %263 = arith.mulf %262, %261 : vector<8x128xf32>
    %cst_109 = arith.constant 5.000000e-01 : f32
    %264 = vector.broadcast %cst_109 : f32 to vector<8x128xf32>
    %265 = arith.addf %263, %264 : vector<8x128xf32>
    %266 = arith.mulf %255, %193 : vector<8x128xf32>
    %267 = arith.mulf %247, %257 : vector<8x128xf32>
    %268 = arith.addf %266, %267 : vector<8x128xf32>
    %269 = math.tanh %268 : vector<8x128xf32>
    %270 = arith.mulf %265, %269 : vector<8x128xf32>
    %c4_i32 = arith.constant 4 : i32
    %c0_110 = arith.constant 0 : index
    %c0_111 = arith.constant 0 : index
    %271 = vector.load %arg4[%c0_110, %c0_111] : memref<128x512xf32, #tpu.memory_space<vmem>>, vector<128x512xf32>
    %cst_112 = arith.constant dense<0.000000e+00> : vector<8x512xf32>
    %272 = tpu.matmul %270, %271, %cst_112 {dimension_numbers = #tpu.dot_dimension_numbers<[1], [0], [0], [1], [0, 0, 1, 1], [], []>} : vector<8x128xf32>, vector<128x512xf32>, vector<8x512xf32> -> vector<8x512xf32>
    %c0_113 = arith.constant 0 : index
    %c0_114 = arith.constant 0 : index
    %273 = vector.load %arg5[%c0_113, %c0_114] : memref<128x512xf32, #tpu.memory_space<vmem>>, vector<128x512xf32>
    %cst_115 = arith.constant dense<0.000000e+00> : vector<8x512xf32>
    %274 = tpu.matmul %232, %273, %cst_115 {dimension_numbers = #tpu.dot_dimension_numbers<[1], [0], [0], [1], [0, 0, 1, 1], [], []>} : vector<8x128xf32>, vector<128x512xf32>, vector<8x512xf32> -> vector<8x512xf32>
    %275 = arith.addf %272, %274 : vector<8x512xf32>
    %276 = arith.addf %275, %2 : vector<8x512xf32>
    %277 = vector.extract_strided_slice %276 {offsets = [0, 0], sizes = [8, 128], strides = [1, 1]} : vector<8x512xf32> to vector<8x128xf32>
    %cst_116 = arith.constant 5.000000e-01 : f32
    %278 = vector.broadcast %cst_116 : f32 to vector<8x128xf32>
    %279 = arith.mulf %278, %277 : vector<8x128xf32>
    %280 = math.tanh %279 : vector<8x128xf32>
    %cst_117 = arith.constant 5.000000e-01 : f32
    %281 = vector.broadcast %cst_117 : f32 to vector<8x128xf32>
    %282 = arith.mulf %281, %280 : vector<8x128xf32>
    %cst_118 = arith.constant 5.000000e-01 : f32
    %283 = vector.broadcast %cst_118 : f32 to vector<8x128xf32>
    %284 = arith.addf %282, %283 : vector<8x128xf32>
    %285 = vector.extract_strided_slice %276 {offsets = [0, 128], sizes = [8, 128], strides = [1, 1]} : vector<8x512xf32> to vector<8x128xf32>
    %cst_119 = arith.constant 5.000000e-01 : f32
    %286 = vector.broadcast %cst_119 : f32 to vector<8x128xf32>
    %287 = arith.mulf %286, %285 : vector<8x128xf32>
    %288 = math.tanh %287 : vector<8x128xf32>
    %cst_120 = arith.constant 5.000000e-01 : f32
    %289 = vector.broadcast %cst_120 : f32 to vector<8x128xf32>
    %290 = arith.mulf %289, %288 : vector<8x128xf32>
    %cst_121 = arith.constant 5.000000e-01 : f32
    %291 = vector.broadcast %cst_121 : f32 to vector<8x128xf32>
    %292 = arith.addf %290, %291 : vector<8x128xf32>
    %293 = vector.extract_strided_slice %276 {offsets = [0, 256], sizes = [8, 128], strides = [1, 1]} : vector<8x512xf32> to vector<8x128xf32>
    %294 = math.tanh %293 : vector<8x128xf32>
    %295 = vector.extract_strided_slice %276 {offsets = [0, 384], sizes = [8, 128], strides = [1, 1]} : vector<8x512xf32> to vector<8x128xf32>
    %cst_122 = arith.constant 5.000000e-01 : f32
    %296 = vector.broadcast %cst_122 : f32 to vector<8x128xf32>
    %297 = arith.mulf %296, %295 : vector<8x128xf32>
    %298 = math.tanh %297 : vector<8x128xf32>
    %cst_123 = arith.constant 5.000000e-01 : f32
    %299 = vector.broadcast %cst_123 : f32 to vector<8x128xf32>
    %300 = arith.mulf %299, %298 : vector<8x128xf32>
    %cst_124 = arith.constant 5.000000e-01 : f32
    %301 = vector.broadcast %cst_124 : f32 to vector<8x128xf32>
    %302 = arith.addf %300, %301 : vector<8x128xf32>
    %303 = arith.mulf %292, %230 : vector<8x128xf32>
    %304 = arith.mulf %284, %294 : vector<8x128xf32>
    %305 = arith.addf %303, %304 : vector<8x128xf32>
    %306 = math.tanh %305 : vector<8x128xf32>
    %307 = arith.mulf %302, %306 : vector<8x128xf32>
    %c8_i32_125 = arith.constant 8 : i32
    %308 = arith.muli %c4_i32, %c8_i32_125 : i32
    %309 = tpu.assume_multiple %308, 8 : i32
    %310 = arith.index_cast %309 : i32 to index
    %c0_126 = arith.constant 0 : index
    %311 = vector.load %arg12[%310, %c0_126] : memref<64x512xf32, #tpu.memory_space<vmem>>, vector<8x512xf32>
    %c0_127 = arith.constant 0 : index
    %c0_128 = arith.constant 0 : index
    %312 = vector.load %arg2[%c0_127, %c0_128] : memref<128x512xf32, #tpu.memory_space<vmem>>, vector<128x512xf32>
    %cst_129 = arith.constant dense<0.000000e+00> : vector<8x512xf32>
    %313 = tpu.matmul %270, %312, %cst_129 {dimension_numbers = #tpu.dot_dimension_numbers<[1], [0], [0], [1], [0, 0, 1, 1], [], []>} : vector<8x128xf32>, vector<128x512xf32>, vector<8x512xf32> -> vector<8x512xf32>
    %314 = arith.addf %311, %313 : vector<8x512xf32>
    %315 = vector.extract_strided_slice %314 {offsets = [0, 0], sizes = [8, 128], strides = [1, 1]} : vector<8x512xf32> to vector<8x128xf32>
    %cst_130 = arith.constant 5.000000e-01 : f32
    %316 = vector.broadcast %cst_130 : f32 to vector<8x128xf32>
    %317 = arith.mulf %316, %315 : vector<8x128xf32>
    %318 = math.tanh %317 : vector<8x128xf32>
    %cst_131 = arith.constant 5.000000e-01 : f32
    %319 = vector.broadcast %cst_131 : f32 to vector<8x128xf32>
    %320 = arith.mulf %319, %318 : vector<8x128xf32>
    %cst_132 = arith.constant 5.000000e-01 : f32
    %321 = vector.broadcast %cst_132 : f32 to vector<8x128xf32>
    %322 = arith.addf %320, %321 : vector<8x128xf32>
    %323 = vector.extract_strided_slice %314 {offsets = [0, 128], sizes = [8, 128], strides = [1, 1]} : vector<8x512xf32> to vector<8x128xf32>
    %cst_133 = arith.constant 5.000000e-01 : f32
    %324 = vector.broadcast %cst_133 : f32 to vector<8x128xf32>
    %325 = arith.mulf %324, %323 : vector<8x128xf32>
    %326 = math.tanh %325 : vector<8x128xf32>
    %cst_134 = arith.constant 5.000000e-01 : f32
    %327 = vector.broadcast %cst_134 : f32 to vector<8x128xf32>
    %328 = arith.mulf %327, %326 : vector<8x128xf32>
    %cst_135 = arith.constant 5.000000e-01 : f32
    %329 = vector.broadcast %cst_135 : f32 to vector<8x128xf32>
    %330 = arith.addf %328, %329 : vector<8x128xf32>
    %331 = vector.extract_strided_slice %314 {offsets = [0, 256], sizes = [8, 128], strides = [1, 1]} : vector<8x512xf32> to vector<8x128xf32>
    %332 = math.tanh %331 : vector<8x128xf32>
    %333 = vector.extract_strided_slice %314 {offsets = [0, 384], sizes = [8, 128], strides = [1, 1]} : vector<8x512xf32> to vector<8x128xf32>
    %cst_136 = arith.constant 5.000000e-01 : f32
    %334 = vector.broadcast %cst_136 : f32 to vector<8x128xf32>
    %335 = arith.mulf %334, %333 : vector<8x128xf32>
    %336 = math.tanh %335 : vector<8x128xf32>
    %cst_137 = arith.constant 5.000000e-01 : f32
    %337 = vector.broadcast %cst_137 : f32 to vector<8x128xf32>
    %338 = arith.mulf %337, %336 : vector<8x128xf32>
    %cst_138 = arith.constant 5.000000e-01 : f32
    %339 = vector.broadcast %cst_138 : f32 to vector<8x128xf32>
    %340 = arith.addf %338, %339 : vector<8x128xf32>
    %341 = arith.mulf %330, %268 : vector<8x128xf32>
    %342 = arith.mulf %322, %332 : vector<8x128xf32>
    %343 = arith.addf %341, %342 : vector<8x128xf32>
    %344 = math.tanh %343 : vector<8x128xf32>
    %345 = arith.mulf %340, %344 : vector<8x128xf32>
    %c5_i32 = arith.constant 5 : i32
    %c0_139 = arith.constant 0 : index
    %c0_140 = arith.constant 0 : index
    %346 = vector.load %arg4[%c0_139, %c0_140] : memref<128x512xf32, #tpu.memory_space<vmem>>, vector<128x512xf32>
    %cst_141 = arith.constant dense<0.000000e+00> : vector<8x512xf32>
    %347 = tpu.matmul %345, %346, %cst_141 {dimension_numbers = #tpu.dot_dimension_numbers<[1], [0], [0], [1], [0, 0, 1, 1], [], []>} : vector<8x128xf32>, vector<128x512xf32>, vector<8x512xf32> -> vector<8x512xf32>
    %c0_142 = arith.constant 0 : index
    %c0_143 = arith.constant 0 : index
    %348 = vector.load %arg5[%c0_142, %c0_143] : memref<128x512xf32, #tpu.memory_space<vmem>>, vector<128x512xf32>
    %cst_144 = arith.constant dense<0.000000e+00> : vector<8x512xf32>
    %349 = tpu.matmul %307, %348, %cst_144 {dimension_numbers = #tpu.dot_dimension_numbers<[1], [0], [0], [1], [0, 0, 1, 1], [], []>} : vector<8x128xf32>, vector<128x512xf32>, vector<8x512xf32> -> vector<8x512xf32>
    %350 = arith.addf %347, %349 : vector<8x512xf32>
    %351 = arith.addf %350, %2 : vector<8x512xf32>
    %352 = vector.extract_strided_slice %351 {offsets = [0, 0], sizes = [8, 128], strides = [1, 1]} : vector<8x512xf32> to vector<8x128xf32>
    %cst_145 = arith.constant 5.000000e-01 : f32
    %353 = vector.broadcast %cst_145 : f32 to vector<8x128xf32>
    %354 = arith.mulf %353, %352 : vector<8x128xf32>
    %355 = math.tanh %354 : vector<8x128xf32>
    %cst_146 = arith.constant 5.000000e-01 : f32
    %356 = vector.broadcast %cst_146 : f32 to vector<8x128xf32>
    %357 = arith.mulf %356, %355 : vector<8x128xf32>
    %cst_147 = arith.constant 5.000000e-01 : f32
    %358 = vector.broadcast %cst_147 : f32 to vector<8x128xf32>
    %359 = arith.addf %357, %358 : vector<8x128xf32>
    %360 = vector.extract_strided_slice %351 {offsets = [0, 128], sizes = [8, 128], strides = [1, 1]} : vector<8x512xf32> to vector<8x128xf32>
    %cst_148 = arith.constant 5.000000e-01 : f32
    %361 = vector.broadcast %cst_148 : f32 to vector<8x128xf32>
    %362 = arith.mulf %361, %360 : vector<8x128xf32>
    %363 = math.tanh %362 : vector<8x128xf32>
    %cst_149 = arith.constant 5.000000e-01 : f32
    %364 = vector.broadcast %cst_149 : f32 to vector<8x128xf32>
    %365 = arith.mulf %364, %363 : vector<8x128xf32>
    %cst_150 = arith.constant 5.000000e-01 : f32
    %366 = vector.broadcast %cst_150 : f32 to vector<8x128xf32>
    %367 = arith.addf %365, %366 : vector<8x128xf32>
    %368 = vector.extract_strided_slice %351 {offsets = [0, 256], sizes = [8, 128], strides = [1, 1]} : vector<8x512xf32> to vector<8x128xf32>
    %369 = math.tanh %368 : vector<8x128xf32>
    %370 = vector.extract_strided_slice %351 {offsets = [0, 384], sizes = [8, 128], strides = [1, 1]} : vector<8x512xf32> to vector<8x128xf32>
    %cst_151 = arith.constant 5.000000e-01 : f32
    %371 = vector.broadcast %cst_151 : f32 to vector<8x128xf32>
    %372 = arith.mulf %371, %370 : vector<8x128xf32>
    %373 = math.tanh %372 : vector<8x128xf32>
    %cst_152 = arith.constant 5.000000e-01 : f32
    %374 = vector.broadcast %cst_152 : f32 to vector<8x128xf32>
    %375 = arith.mulf %374, %373 : vector<8x128xf32>
    %cst_153 = arith.constant 5.000000e-01 : f32
    %376 = vector.broadcast %cst_153 : f32 to vector<8x128xf32>
    %377 = arith.addf %375, %376 : vector<8x128xf32>
    %378 = arith.mulf %367, %305 : vector<8x128xf32>
    %379 = arith.mulf %359, %369 : vector<8x128xf32>
    %380 = arith.addf %378, %379 : vector<8x128xf32>
    %381 = math.tanh %380 : vector<8x128xf32>
    %382 = arith.mulf %377, %381 : vector<8x128xf32>
    %c8_i32_154 = arith.constant 8 : i32
    %383 = arith.muli %c5_i32, %c8_i32_154 : i32
    %384 = tpu.assume_multiple %383, 8 : i32
    %385 = arith.index_cast %384 : i32 to index
    %c0_155 = arith.constant 0 : index
    %386 = vector.load %arg12[%385, %c0_155] : memref<64x512xf32, #tpu.memory_space<vmem>>, vector<8x512xf32>
    %c0_156 = arith.constant 0 : index
    %c0_157 = arith.constant 0 : index
    %387 = vector.load %arg2[%c0_156, %c0_157] : memref<128x512xf32, #tpu.memory_space<vmem>>, vector<128x512xf32>
    %cst_158 = arith.constant dense<0.000000e+00> : vector<8x512xf32>
    %388 = tpu.matmul %345, %387, %cst_158 {dimension_numbers = #tpu.dot_dimension_numbers<[1], [0], [0], [1], [0, 0, 1, 1], [], []>} : vector<8x128xf32>, vector<128x512xf32>, vector<8x512xf32> -> vector<8x512xf32>
    %389 = arith.addf %386, %388 : vector<8x512xf32>
    %390 = vector.extract_strided_slice %389 {offsets = [0, 0], sizes = [8, 128], strides = [1, 1]} : vector<8x512xf32> to vector<8x128xf32>
    %cst_159 = arith.constant 5.000000e-01 : f32
    %391 = vector.broadcast %cst_159 : f32 to vector<8x128xf32>
    %392 = arith.mulf %391, %390 : vector<8x128xf32>
    %393 = math.tanh %392 : vector<8x128xf32>
    %cst_160 = arith.constant 5.000000e-01 : f32
    %394 = vector.broadcast %cst_160 : f32 to vector<8x128xf32>
    %395 = arith.mulf %394, %393 : vector<8x128xf32>
    %cst_161 = arith.constant 5.000000e-01 : f32
    %396 = vector.broadcast %cst_161 : f32 to vector<8x128xf32>
    %397 = arith.addf %395, %396 : vector<8x128xf32>
    %398 = vector.extract_strided_slice %389 {offsets = [0, 128], sizes = [8, 128], strides = [1, 1]} : vector<8x512xf32> to vector<8x128xf32>
    %cst_162 = arith.constant 5.000000e-01 : f32
    %399 = vector.broadcast %cst_162 : f32 to vector<8x128xf32>
    %400 = arith.mulf %399, %398 : vector<8x128xf32>
    %401 = math.tanh %400 : vector<8x128xf32>
    %cst_163 = arith.constant 5.000000e-01 : f32
    %402 = vector.broadcast %cst_163 : f32 to vector<8x128xf32>
    %403 = arith.mulf %402, %401 : vector<8x128xf32>
    %cst_164 = arith.constant 5.000000e-01 : f32
    %404 = vector.broadcast %cst_164 : f32 to vector<8x128xf32>
    %405 = arith.addf %403, %404 : vector<8x128xf32>
    %406 = vector.extract_strided_slice %389 {offsets = [0, 256], sizes = [8, 128], strides = [1, 1]} : vector<8x512xf32> to vector<8x128xf32>
    %407 = math.tanh %406 : vector<8x128xf32>
    %408 = vector.extract_strided_slice %389 {offsets = [0, 384], sizes = [8, 128], strides = [1, 1]} : vector<8x512xf32> to vector<8x128xf32>
    %cst_165 = arith.constant 5.000000e-01 : f32
    %409 = vector.broadcast %cst_165 : f32 to vector<8x128xf32>
    %410 = arith.mulf %409, %408 : vector<8x128xf32>
    %411 = math.tanh %410 : vector<8x128xf32>
    %cst_166 = arith.constant 5.000000e-01 : f32
    %412 = vector.broadcast %cst_166 : f32 to vector<8x128xf32>
    %413 = arith.mulf %412, %411 : vector<8x128xf32>
    %cst_167 = arith.constant 5.000000e-01 : f32
    %414 = vector.broadcast %cst_167 : f32 to vector<8x128xf32>
    %415 = arith.addf %413, %414 : vector<8x128xf32>
    %416 = arith.mulf %405, %343 : vector<8x128xf32>
    %417 = arith.mulf %397, %407 : vector<8x128xf32>
    %418 = arith.addf %416, %417 : vector<8x128xf32>
    %419 = math.tanh %418 : vector<8x128xf32>
    %420 = arith.mulf %415, %419 : vector<8x128xf32>
    %c6_i32 = arith.constant 6 : i32
    %c0_168 = arith.constant 0 : index
    %c0_169 = arith.constant 0 : index
    %421 = vector.load %arg4[%c0_168, %c0_169] : memref<128x512xf32, #tpu.memory_space<vmem>>, vector<128x512xf32>
    %cst_170 = arith.constant dense<0.000000e+00> : vector<8x512xf32>
    %422 = tpu.matmul %420, %421, %cst_170 {dimension_numbers = #tpu.dot_dimension_numbers<[1], [0], [0], [1], [0, 0, 1, 1], [], []>} : vector<8x128xf32>, vector<128x512xf32>, vector<8x512xf32> -> vector<8x512xf32>
    %c0_171 = arith.constant 0 : index
    %c0_172 = arith.constant 0 : index
    %423 = vector.load %arg5[%c0_171, %c0_172] : memref<128x512xf32, #tpu.memory_space<vmem>>, vector<128x512xf32>
    %cst_173 = arith.constant dense<0.000000e+00> : vector<8x512xf32>
    %424 = tpu.matmul %382, %423, %cst_173 {dimension_numbers = #tpu.dot_dimension_numbers<[1], [0], [0], [1], [0, 0, 1, 1], [], []>} : vector<8x128xf32>, vector<128x512xf32>, vector<8x512xf32> -> vector<8x512xf32>
    %425 = arith.addf %422, %424 : vector<8x512xf32>
    %426 = arith.addf %425, %2 : vector<8x512xf32>
    %427 = vector.extract_strided_slice %426 {offsets = [0, 0], sizes = [8, 128], strides = [1, 1]} : vector<8x512xf32> to vector<8x128xf32>
    %cst_174 = arith.constant 5.000000e-01 : f32
    %428 = vector.broadcast %cst_174 : f32 to vector<8x128xf32>
    %429 = arith.mulf %428, %427 : vector<8x128xf32>
    %430 = math.tanh %429 : vector<8x128xf32>
    %cst_175 = arith.constant 5.000000e-01 : f32
    %431 = vector.broadcast %cst_175 : f32 to vector<8x128xf32>
    %432 = arith.mulf %431, %430 : vector<8x128xf32>
    %cst_176 = arith.constant 5.000000e-01 : f32
    %433 = vector.broadcast %cst_176 : f32 to vector<8x128xf32>
    %434 = arith.addf %432, %433 : vector<8x128xf32>
    %435 = vector.extract_strided_slice %426 {offsets = [0, 128], sizes = [8, 128], strides = [1, 1]} : vector<8x512xf32> to vector<8x128xf32>
    %cst_177 = arith.constant 5.000000e-01 : f32
    %436 = vector.broadcast %cst_177 : f32 to vector<8x128xf32>
    %437 = arith.mulf %436, %435 : vector<8x128xf32>
    %438 = math.tanh %437 : vector<8x128xf32>
    %cst_178 = arith.constant 5.000000e-01 : f32
    %439 = vector.broadcast %cst_178 : f32 to vector<8x128xf32>
    %440 = arith.mulf %439, %438 : vector<8x128xf32>
    %cst_179 = arith.constant 5.000000e-01 : f32
    %441 = vector.broadcast %cst_179 : f32 to vector<8x128xf32>
    %442 = arith.addf %440, %441 : vector<8x128xf32>
    %443 = vector.extract_strided_slice %426 {offsets = [0, 256], sizes = [8, 128], strides = [1, 1]} : vector<8x512xf32> to vector<8x128xf32>
    %444 = math.tanh %443 : vector<8x128xf32>
    %445 = vector.extract_strided_slice %426 {offsets = [0, 384], sizes = [8, 128], strides = [1, 1]} : vector<8x512xf32> to vector<8x128xf32>
    %cst_180 = arith.constant 5.000000e-01 : f32
    %446 = vector.broadcast %cst_180 : f32 to vector<8x128xf32>
    %447 = arith.mulf %446, %445 : vector<8x128xf32>
    %448 = math.tanh %447 : vector<8x128xf32>
    %cst_181 = arith.constant 5.000000e-01 : f32
    %449 = vector.broadcast %cst_181 : f32 to vector<8x128xf32>
    %450 = arith.mulf %449, %448 : vector<8x128xf32>
    %cst_182 = arith.constant 5.000000e-01 : f32
    %451 = vector.broadcast %cst_182 : f32 to vector<8x128xf32>
    %452 = arith.addf %450, %451 : vector<8x128xf32>
    %453 = arith.mulf %442, %380 : vector<8x128xf32>
    %454 = arith.mulf %434, %444 : vector<8x128xf32>
    %455 = arith.addf %453, %454 : vector<8x128xf32>
    %456 = math.tanh %455 : vector<8x128xf32>
    %457 = arith.mulf %452, %456 : vector<8x128xf32>
    %c8_i32_183 = arith.constant 8 : i32
    %458 = arith.muli %c6_i32, %c8_i32_183 : i32
    %459 = tpu.assume_multiple %458, 8 : i32
    %460 = arith.index_cast %459 : i32 to index
    %c0_184 = arith.constant 0 : index
    %461 = vector.load %arg12[%460, %c0_184] : memref<64x512xf32, #tpu.memory_space<vmem>>, vector<8x512xf32>
    %c0_185 = arith.constant 0 : index
    %c0_186 = arith.constant 0 : index
    %462 = vector.load %arg2[%c0_185, %c0_186] : memref<128x512xf32, #tpu.memory_space<vmem>>, vector<128x512xf32>
    %cst_187 = arith.constant dense<0.000000e+00> : vector<8x512xf32>
    %463 = tpu.matmul %420, %462, %cst_187 {dimension_numbers = #tpu.dot_dimension_numbers<[1], [0], [0], [1], [0, 0, 1, 1], [], []>} : vector<8x128xf32>, vector<128x512xf32>, vector<8x512xf32> -> vector<8x512xf32>
    %464 = arith.addf %461, %463 : vector<8x512xf32>
    %465 = vector.extract_strided_slice %464 {offsets = [0, 0], sizes = [8, 128], strides = [1, 1]} : vector<8x512xf32> to vector<8x128xf32>
    %cst_188 = arith.constant 5.000000e-01 : f32
    %466 = vector.broadcast %cst_188 : f32 to vector<8x128xf32>
    %467 = arith.mulf %466, %465 : vector<8x128xf32>
    %468 = math.tanh %467 : vector<8x128xf32>
    %cst_189 = arith.constant 5.000000e-01 : f32
    %469 = vector.broadcast %cst_189 : f32 to vector<8x128xf32>
    %470 = arith.mulf %469, %468 : vector<8x128xf32>
    %cst_190 = arith.constant 5.000000e-01 : f32
    %471 = vector.broadcast %cst_190 : f32 to vector<8x128xf32>
    %472 = arith.addf %470, %471 : vector<8x128xf32>
    %473 = vector.extract_strided_slice %464 {offsets = [0, 128], sizes = [8, 128], strides = [1, 1]} : vector<8x512xf32> to vector<8x128xf32>
    %cst_191 = arith.constant 5.000000e-01 : f32
    %474 = vector.broadcast %cst_191 : f32 to vector<8x128xf32>
    %475 = arith.mulf %474, %473 : vector<8x128xf32>
    %476 = math.tanh %475 : vector<8x128xf32>
    %cst_192 = arith.constant 5.000000e-01 : f32
    %477 = vector.broadcast %cst_192 : f32 to vector<8x128xf32>
    %478 = arith.mulf %477, %476 : vector<8x128xf32>
    %cst_193 = arith.constant 5.000000e-01 : f32
    %479 = vector.broadcast %cst_193 : f32 to vector<8x128xf32>
    %480 = arith.addf %478, %479 : vector<8x128xf32>
    %481 = vector.extract_strided_slice %464 {offsets = [0, 256], sizes = [8, 128], strides = [1, 1]} : vector<8x512xf32> to vector<8x128xf32>
    %482 = math.tanh %481 : vector<8x128xf32>
    %483 = vector.extract_strided_slice %464 {offsets = [0, 384], sizes = [8, 128], strides = [1, 1]} : vector<8x512xf32> to vector<8x128xf32>
    %cst_194 = arith.constant 5.000000e-01 : f32
    %484 = vector.broadcast %cst_194 : f32 to vector<8x128xf32>
    %485 = arith.mulf %484, %483 : vector<8x128xf32>
    %486 = math.tanh %485 : vector<8x128xf32>
    %cst_195 = arith.constant 5.000000e-01 : f32
    %487 = vector.broadcast %cst_195 : f32 to vector<8x128xf32>
    %488 = arith.mulf %487, %486 : vector<8x128xf32>
    %cst_196 = arith.constant 5.000000e-01 : f32
    %489 = vector.broadcast %cst_196 : f32 to vector<8x128xf32>
    %490 = arith.addf %488, %489 : vector<8x128xf32>
    %491 = arith.mulf %480, %418 : vector<8x128xf32>
    %492 = arith.mulf %472, %482 : vector<8x128xf32>
    %493 = arith.addf %491, %492 : vector<8x128xf32>
    %494 = math.tanh %493 : vector<8x128xf32>
    %495 = arith.mulf %490, %494 : vector<8x128xf32>
    %c7_i32 = arith.constant 7 : i32
    %c0_197 = arith.constant 0 : index
    %c0_198 = arith.constant 0 : index
    %496 = vector.load %arg4[%c0_197, %c0_198] : memref<128x512xf32, #tpu.memory_space<vmem>>, vector<128x512xf32>
    %cst_199 = arith.constant dense<0.000000e+00> : vector<8x512xf32>
    %497 = tpu.matmul %495, %496, %cst_199 {dimension_numbers = #tpu.dot_dimension_numbers<[1], [0], [0], [1], [0, 0, 1, 1], [], []>} : vector<8x128xf32>, vector<128x512xf32>, vector<8x512xf32> -> vector<8x512xf32>
    %c0_200 = arith.constant 0 : index
    %c0_201 = arith.constant 0 : index
    %498 = vector.load %arg5[%c0_200, %c0_201] : memref<128x512xf32, #tpu.memory_space<vmem>>, vector<128x512xf32>
    %cst_202 = arith.constant dense<0.000000e+00> : vector<8x512xf32>
    %499 = tpu.matmul %457, %498, %cst_202 {dimension_numbers = #tpu.dot_dimension_numbers<[1], [0], [0], [1], [0, 0, 1, 1], [], []>} : vector<8x128xf32>, vector<128x512xf32>, vector<8x512xf32> -> vector<8x512xf32>
    %500 = arith.addf %497, %499 : vector<8x512xf32>
    %501 = arith.addf %500, %2 : vector<8x512xf32>
    %502 = vector.extract_strided_slice %501 {offsets = [0, 0], sizes = [8, 128], strides = [1, 1]} : vector<8x512xf32> to vector<8x128xf32>
    %cst_203 = arith.constant 5.000000e-01 : f32
    %503 = vector.broadcast %cst_203 : f32 to vector<8x128xf32>
    %504 = arith.mulf %503, %502 : vector<8x128xf32>
    %505 = math.tanh %504 : vector<8x128xf32>
    %cst_204 = arith.constant 5.000000e-01 : f32
    %506 = vector.broadcast %cst_204 : f32 to vector<8x128xf32>
    %507 = arith.mulf %506, %505 : vector<8x128xf32>
    %cst_205 = arith.constant 5.000000e-01 : f32
    %508 = vector.broadcast %cst_205 : f32 to vector<8x128xf32>
    %509 = arith.addf %507, %508 : vector<8x128xf32>
    %510 = vector.extract_strided_slice %501 {offsets = [0, 128], sizes = [8, 128], strides = [1, 1]} : vector<8x512xf32> to vector<8x128xf32>
    %cst_206 = arith.constant 5.000000e-01 : f32
    %511 = vector.broadcast %cst_206 : f32 to vector<8x128xf32>
    %512 = arith.mulf %511, %510 : vector<8x128xf32>
    %513 = math.tanh %512 : vector<8x128xf32>
    %cst_207 = arith.constant 5.000000e-01 : f32
    %514 = vector.broadcast %cst_207 : f32 to vector<8x128xf32>
    %515 = arith.mulf %514, %513 : vector<8x128xf32>
    %cst_208 = arith.constant 5.000000e-01 : f32
    %516 = vector.broadcast %cst_208 : f32 to vector<8x128xf32>
    %517 = arith.addf %515, %516 : vector<8x128xf32>
    %518 = vector.extract_strided_slice %501 {offsets = [0, 256], sizes = [8, 128], strides = [1, 1]} : vector<8x512xf32> to vector<8x128xf32>
    %519 = math.tanh %518 : vector<8x128xf32>
    %520 = vector.extract_strided_slice %501 {offsets = [0, 384], sizes = [8, 128], strides = [1, 1]} : vector<8x512xf32> to vector<8x128xf32>
    %cst_209 = arith.constant 5.000000e-01 : f32
    %521 = vector.broadcast %cst_209 : f32 to vector<8x128xf32>
    %522 = arith.mulf %521, %520 : vector<8x128xf32>
    %523 = math.tanh %522 : vector<8x128xf32>
    %cst_210 = arith.constant 5.000000e-01 : f32
    %524 = vector.broadcast %cst_210 : f32 to vector<8x128xf32>
    %525 = arith.mulf %524, %523 : vector<8x128xf32>
    %cst_211 = arith.constant 5.000000e-01 : f32
    %526 = vector.broadcast %cst_211 : f32 to vector<8x128xf32>
    %527 = arith.addf %525, %526 : vector<8x128xf32>
    %528 = arith.mulf %517, %455 : vector<8x128xf32>
    %529 = arith.mulf %509, %519 : vector<8x128xf32>
    %530 = arith.addf %528, %529 : vector<8x128xf32>
    %531 = math.tanh %530 : vector<8x128xf32>
    %532 = arith.mulf %527, %531 : vector<8x128xf32>
    %c8_i32_212 = arith.constant 8 : i32
    %533 = arith.muli %c7_i32, %c8_i32_212 : i32
    %534 = tpu.assume_multiple %533, 8 : i32
    %535 = arith.index_cast %534 : i32 to index
    %c0_213 = arith.constant 0 : index
    %536 = vector.load %arg12[%535, %c0_213] : memref<64x512xf32, #tpu.memory_space<vmem>>, vector<8x512xf32>
    %c0_214 = arith.constant 0 : index
    %c0_215 = arith.constant 0 : index
    %537 = vector.load %arg2[%c0_214, %c0_215] : memref<128x512xf32, #tpu.memory_space<vmem>>, vector<128x512xf32>
    %cst_216 = arith.constant dense<0.000000e+00> : vector<8x512xf32>
    %538 = tpu.matmul %495, %537, %cst_216 {dimension_numbers = #tpu.dot_dimension_numbers<[1], [0], [0], [1], [0, 0, 1, 1], [], []>} : vector<8x128xf32>, vector<128x512xf32>, vector<8x512xf32> -> vector<8x512xf32>
    %539 = arith.addf %536, %538 : vector<8x512xf32>
    %540 = vector.extract_strided_slice %539 {offsets = [0, 0], sizes = [8, 128], strides = [1, 1]} : vector<8x512xf32> to vector<8x128xf32>
    %cst_217 = arith.constant 5.000000e-01 : f32
    %541 = vector.broadcast %cst_217 : f32 to vector<8x128xf32>
    %542 = arith.mulf %541, %540 : vector<8x128xf32>
    %543 = math.tanh %542 : vector<8x128xf32>
    %cst_218 = arith.constant 5.000000e-01 : f32
    %544 = vector.broadcast %cst_218 : f32 to vector<8x128xf32>
    %545 = arith.mulf %544, %543 : vector<8x128xf32>
    %cst_219 = arith.constant 5.000000e-01 : f32
    %546 = vector.broadcast %cst_219 : f32 to vector<8x128xf32>
    %547 = arith.addf %545, %546 : vector<8x128xf32>
    %548 = vector.extract_strided_slice %539 {offsets = [0, 128], sizes = [8, 128], strides = [1, 1]} : vector<8x512xf32> to vector<8x128xf32>
    %cst_220 = arith.constant 5.000000e-01 : f32
    %549 = vector.broadcast %cst_220 : f32 to vector<8x128xf32>
    %550 = arith.mulf %549, %548 : vector<8x128xf32>
    %551 = math.tanh %550 : vector<8x128xf32>
    %cst_221 = arith.constant 5.000000e-01 : f32
    %552 = vector.broadcast %cst_221 : f32 to vector<8x128xf32>
    %553 = arith.mulf %552, %551 : vector<8x128xf32>
    %cst_222 = arith.constant 5.000000e-01 : f32
    %554 = vector.broadcast %cst_222 : f32 to vector<8x128xf32>
    %555 = arith.addf %553, %554 : vector<8x128xf32>
    %556 = vector.extract_strided_slice %539 {offsets = [0, 256], sizes = [8, 128], strides = [1, 1]} : vector<8x512xf32> to vector<8x128xf32>
    %557 = math.tanh %556 : vector<8x128xf32>
    %558 = vector.extract_strided_slice %539 {offsets = [0, 384], sizes = [8, 128], strides = [1, 1]} : vector<8x512xf32> to vector<8x128xf32>
    %cst_223 = arith.constant 5.000000e-01 : f32
    %559 = vector.broadcast %cst_223 : f32 to vector<8x128xf32>
    %560 = arith.mulf %559, %558 : vector<8x128xf32>
    %561 = math.tanh %560 : vector<8x128xf32>
    %cst_224 = arith.constant 5.000000e-01 : f32
    %562 = vector.broadcast %cst_224 : f32 to vector<8x128xf32>
    %563 = arith.mulf %562, %561 : vector<8x128xf32>
    %cst_225 = arith.constant 5.000000e-01 : f32
    %564 = vector.broadcast %cst_225 : f32 to vector<8x128xf32>
    %565 = arith.addf %563, %564 : vector<8x128xf32>
    %566 = arith.mulf %555, %493 : vector<8x128xf32>
    %567 = arith.mulf %547, %557 : vector<8x128xf32>
    %568 = arith.addf %566, %567 : vector<8x128xf32>
    %569 = math.tanh %568 : vector<8x128xf32>
    %570 = arith.mulf %565, %569 : vector<8x128xf32>
    %c7_i32_226 = arith.constant 7 : i32
    %c0_227 = arith.constant 0 : index
    %c0_228 = arith.constant 0 : index
    %571 = vector.load %arg4[%c0_227, %c0_228] : memref<128x512xf32, #tpu.memory_space<vmem>>, vector<128x512xf32>
    %cst_229 = arith.constant dense<0.000000e+00> : vector<8x512xf32>
    %572 = tpu.matmul %570, %571, %cst_229 {dimension_numbers = #tpu.dot_dimension_numbers<[1], [0], [0], [1], [0, 0, 1, 1], [], []>} : vector<8x128xf32>, vector<128x512xf32>, vector<8x512xf32> -> vector<8x512xf32>
    %c0_230 = arith.constant 0 : index
    %c0_231 = arith.constant 0 : index
    %573 = vector.load %arg5[%c0_230, %c0_231] : memref<128x512xf32, #tpu.memory_space<vmem>>, vector<128x512xf32>
    %cst_232 = arith.constant dense<0.000000e+00> : vector<8x512xf32>
    %574 = tpu.matmul %532, %573, %cst_232 {dimension_numbers = #tpu.dot_dimension_numbers<[1], [0], [0], [1], [0, 0, 1, 1], [], []>} : vector<8x128xf32>, vector<128x512xf32>, vector<8x512xf32> -> vector<8x512xf32>
    %575 = arith.addf %572, %574 : vector<8x512xf32>
    %576 = arith.addf %575, %2 : vector<8x512xf32>
    %577 = vector.extract_strided_slice %576 {offsets = [0, 0], sizes = [8, 128], strides = [1, 1]} : vector<8x512xf32> to vector<8x128xf32>
    %cst_233 = arith.constant 5.000000e-01 : f32
    %578 = vector.broadcast %cst_233 : f32 to vector<8x128xf32>
    %579 = arith.mulf %578, %577 : vector<8x128xf32>
    %580 = math.tanh %579 : vector<8x128xf32>
    %cst_234 = arith.constant 5.000000e-01 : f32
    %581 = vector.broadcast %cst_234 : f32 to vector<8x128xf32>
    %582 = arith.mulf %581, %580 : vector<8x128xf32>
    %cst_235 = arith.constant 5.000000e-01 : f32
    %583 = vector.broadcast %cst_235 : f32 to vector<8x128xf32>
    %584 = arith.addf %582, %583 : vector<8x128xf32>
    %585 = vector.extract_strided_slice %576 {offsets = [0, 128], sizes = [8, 128], strides = [1, 1]} : vector<8x512xf32> to vector<8x128xf32>
    %cst_236 = arith.constant 5.000000e-01 : f32
    %586 = vector.broadcast %cst_236 : f32 to vector<8x128xf32>
    %587 = arith.mulf %586, %585 : vector<8x128xf32>
    %588 = math.tanh %587 : vector<8x128xf32>
    %cst_237 = arith.constant 5.000000e-01 : f32
    %589 = vector.broadcast %cst_237 : f32 to vector<8x128xf32>
    %590 = arith.mulf %589, %588 : vector<8x128xf32>
    %cst_238 = arith.constant 5.000000e-01 : f32
    %591 = vector.broadcast %cst_238 : f32 to vector<8x128xf32>
    %592 = arith.addf %590, %591 : vector<8x128xf32>
    %593 = vector.extract_strided_slice %576 {offsets = [0, 256], sizes = [8, 128], strides = [1, 1]} : vector<8x512xf32> to vector<8x128xf32>
    %594 = math.tanh %593 : vector<8x128xf32>
    %595 = vector.extract_strided_slice %576 {offsets = [0, 384], sizes = [8, 128], strides = [1, 1]} : vector<8x512xf32> to vector<8x128xf32>
    %cst_239 = arith.constant 5.000000e-01 : f32
    %596 = vector.broadcast %cst_239 : f32 to vector<8x128xf32>
    %597 = arith.mulf %596, %595 : vector<8x128xf32>
    %598 = math.tanh %597 : vector<8x128xf32>
    %cst_240 = arith.constant 5.000000e-01 : f32
    %599 = vector.broadcast %cst_240 : f32 to vector<8x128xf32>
    %600 = arith.mulf %599, %598 : vector<8x128xf32>
    %cst_241 = arith.constant 5.000000e-01 : f32
    %601 = vector.broadcast %cst_241 : f32 to vector<8x128xf32>
    %602 = arith.addf %600, %601 : vector<8x128xf32>
    %603 = arith.mulf %592, %530 : vector<8x128xf32>
    %604 = arith.mulf %584, %594 : vector<8x128xf32>
    %605 = arith.addf %603, %604 : vector<8x128xf32>
    %606 = math.tanh %605 : vector<8x128xf32>
    %607 = arith.mulf %602, %606 : vector<8x128xf32>
    %c0_242 = arith.constant 0 : index
    %c0_243 = arith.constant 0 : index
    %608 = vector.load %arg7[%c0_242, %c0_243] : memref<128x128xf32, #tpu.memory_space<vmem>>, vector<128x128xf32>
    %cst_244 = arith.constant dense<0.000000e+00> : vector<8x128xf32>
    %609 = tpu.matmul %607, %608, %cst_244 {dimension_numbers = #tpu.dot_dimension_numbers<[1], [0], [0], [1], [0, 0, 1, 1], [], []>} : vector<8x128xf32>, vector<128x128xf32>, vector<8x128xf32> -> vector<8x128xf32>
    %c0_245 = arith.constant 0 : index
    %c0_246 = arith.constant 0 : index
    %610 = vector.load %arg8[%c0_245, %c0_246] : memref<1x128xf32, #tpu.memory_space<vmem>>, vector<1x128xf32>
    %611 = vector.broadcast %610 : vector<1x128xf32> to vector<8x128xf32>
    %612 = arith.addf %609, %611 : vector<8x128xf32>
    %cst_247 = arith.constant 0.000000e+00 : f32
    %613 = vector.broadcast %cst_247 : f32 to vector<8x128xf32>
    %614 = arith.maximumf %612, %613 : vector<8x128xf32>
    %c0_248 = arith.constant 0 : index
    %c0_249 = arith.constant 0 : index
    %615 = vector.load %arg9[%c0_248, %c0_249] : memref<128x128xf32, #tpu.memory_space<vmem>>, vector<128x128xf32>
    %cst_250 = arith.constant dense<0.000000e+00> : vector<8x128xf32>
    %616 = tpu.matmul %614, %615, %cst_250 {dimension_numbers = #tpu.dot_dimension_numbers<[1], [0], [0], [1], [0, 0, 1, 1], [], []>} : vector<8x128xf32>, vector<128x128xf32>, vector<8x128xf32> -> vector<8x128xf32>
    %c0_251 = arith.constant 0 : index
    %c0_252 = arith.constant 0 : index
    %617 = vector.load %arg10[%c0_251, %c0_252] : memref<1x128xf32, #tpu.memory_space<vmem>>, vector<1x128xf32>
    %618 = vector.broadcast %617 : vector<1x128xf32> to vector<8x128xf32>
    %619 = arith.addf %616, %618 : vector<8x128xf32>
    %c0_253 = arith.constant 0 : index
    %c0_254 = arith.constant 0 : index
    %620 = vector.load %arg11[%c0_253, %c0_254] : memref<8x128xf32, #tpu.memory_space<vmem>>, vector<8x128xf32>
    tpu.vector_store %arg11[%c0_253, %c0_254], %619 {strides = array<i32>} : memref<8x128xf32, #tpu.memory_space<vmem>>, vector<8x128xf32>,
    return
  }
}

</mosaic_0001>

<bundles_post_ra>
// kernel: lstm_forward.1
= control target key start
LH: loop header
LB: loop body
LE: loop exit
PB: predicated region body
PF: predicated region fallthrough
CT: control target
= control target key end

     0   :  { %16 = vsyncpa [#allocation4], 0  ;;  %s8301_s0 = inlined_call_operand.vmem [shape: f32[64,4], index: 0, kind: input, shape index: {}]   ;;  %s8302_s1 = inlined_call_operand.hbm [shape: f32[4,512], index: 1, kind: input, shape index: {}]   ;;  %s8303_s2 = inlined_call_operand.hbm [shape: f32[128,512], index: 2, kind: input, shape index: {}]   ;;  %s8304_s3 = inlined_call_operand.hbm [shape: f32[1,512], index: 3, kind: input, shape index: {}]   ;;  %s8305_s4 = inlined_call_operand.hbm [shape: f32[128,512], index: 4, kind: input, shape index: {}]   ;;  %s8306_s5 = inlined_call_operand.hbm [shape: f32[128,512], index: 5, kind: input, shape index: {}]   ;;  %s8307_s6 = inlined_call_operand.hbm [shape: f32[1,512], index: 6, kind: input, shape index: {}]   ;;  %s8308_s7 = inlined_call_operand.hbm [shape: f32[128,128], index: 7, kind: input, shape index: {}]   ;;  %s8309_s8 = inlined_call_operand.vmem [shape: f32[1,128], index: 8, kind: input, shape index: {}]   ;;  %s8310_s9 = inlined_call_operand.vmem [shape: f32[128,128], index: 9, kind: input, shape index: {}]   ;;  %s8311_s10 = inlined_call_operand.vmem [shape: f32[1,128], index: 10, kind: input, shape index: {}]   ;;  %s8312_s11 = inlined_call_operand.vmem [shape: f32[8,128], index: 11, kind: output, shape index: {}]  }
   0x1   :  { %17 = vsyncpa [#allocation6], 0 }
   0x2   :  { %18 = vsyncpa [#allocation9], 0 }
   0x3   :  { %19 = vsyncpa [#allocation12], 0  ;;  %s6829_s17 = smov [#allocation5]   ;;  %s6667_s21 = scalar_lea.hbm %s8303_s2, 8192 }
   0x4   :  { %s37_s18 = sshll.u32 %s6829_s17, 4  ;;  %p6668_p0 = scmp.ne.s32.totalorder %s8303_s2, %s6667_s21  ;;  %s38_s18 = int_to_ptr.vmem [resolvable:$true] %s37_s18 }
   0x5   :  { %p6671_p1 = scmp.lt.u32.totalorder %s6667_s21, %s8303_s2 }
   0x7   :  { %p6673_p2 = pnand %p6671_p1, %p6668_p0 }
   0x9   :  { %6676 = shalt.err (!%p6673_p2)
}
   0xa   :  { %s6677_s26 = scalar_lea.vmem %s38_s18, 8192  ;;  %p6682_p4 = scmp.lt.s32.totalorder %s38_s18, %s38_s18 }
   0xb   :  { %p6678_p3 = scmp.ne.s32.totalorder %s38_s18, %s6677_s26  ;;  %p6683_p5 = scmp.lt.s32.totalorder %s6677_s26, %s6677_s26 }
   0xd   :  { %p6684_p6 = por %p6683_p5, %p6682_p4 }
   0xf   :  { %p6685_p7 = pnand %p6684_p6, %p6678_p3 }
  0x11   :  { %6688 = shalt.err (!%p6685_p7)
}
  0x12   :  { %s6830_s27 = smov 512   ;;  %s6831_s28 = smov 32  }
  0x13   :  { %43 = dma.hbm_to_vmem [thread:$0]  %s8303_s2, 8192, %s38_s18, [#allocation6], %s6830_s27, %s6830_s27, %s6831_s28  }
  0x14   :  { %s6832_s12 = smov [#allocation8]   ;;  %s6833_s14 = smov [#allocation11]  }
  0x15   :  { %s59_s13 = sshll.u32 %s6832_s12, 4  ;;  %s84_s15 = sshll.u32 %s6833_s14, 4  ;;  %s60_s13 = int_to_ptr.vmem [resolvable:$true] %s59_s13  ;;  %s85_s15 = int_to_ptr.vmem [resolvable:$true] %s84_s15 }
  0x16   :  { %s6689_s19 = scalar_lea.hbm %s8305_s4, 8192 }
  0x17   :  { %p6690_p8 = scmp.ne.s32.totalorder %s8305_s4, %s6689_s19  ;;  %p6693_p9 = scmp.lt.u32.totalorder %s6689_s19, %s8305_s4 }
  0x19   :  { %p6695_p10 = pnand %p6693_p9, %p6690_p8 }
  0x1b   :  { %6698 = shalt.err (!%p6695_p10)
}
  0x1c   :  { %s6699_s2 = scalar_lea.vmem %s60_s13, 8192  ;;  %p6704_p12 = scmp.lt.s32.totalorder %s60_s13, %s60_s13 }
  0x1d   :  { %p6700_p11 = scmp.ne.s32.totalorder %s60_s13, %s6699_s2  ;;  %p6705_p13 = scmp.lt.s32.totalorder %s6699_s2, %s6699_s2 }
  0x1f   :  { %p6706_p0 = por %p6705_p13, %p6704_p12 }
  0x21   :  { %p6707_p1 = pnand %p6706_p0, %p6700_p11 }
  0x23   :  { %6710 = shalt.err (!%p6707_p1)
}
  0x24   :  { %65 = dma.hbm_to_vmem [thread:$0]  %s8305_s4, 8192, %s60_s13, [#allocation9], %s6830_s27, %s6830_s27, %s6831_s28  }
  0x25   :  { %s6711_s29 = scalar_lea.hbm %s8307_s6, 64 }
  0x26   :  { %p6712_p2 = scmp.ne.s32.totalorder %s8307_s6, %s6711_s29  ;;  %p6715_p3 = scmp.lt.u32.totalorder %s6711_s29, %s8307_s6 }
  0x28   :  { %p6717_p4 = pnand %p6715_p3, %p6712_p2 }
  0x2a   :  { %6720 = shalt.err (!%p6717_p4)
}
  0x2b   :  { %s6721_s17 = scalar_lea.vmem %s85_s15, 64  ;;  %p6726_p6 = scmp.lt.s32.totalorder %s85_s15, %s85_s15 }
  0x2c   :  { %p6722_p5 = scmp.ne.s32.totalorder %s85_s15, %s6721_s17  ;;  %p6727_p7 = scmp.lt.s32.totalorder %s6721_s17, %s6721_s17 }
  0x2e   :  { %p6728_p8 = por %p6727_p7, %p6726_p6 }
  0x30   :  { %p6729_p9 = pnand %p6728_p8, %p6722_p5 }
  0x32   :  { %6732 = shalt.err (!%p6729_p9)
}
  0x33   :  { %87 = dma.hbm_to_vmem [thread:$0]  %s8307_s6, 64, %s85_s15, [#allocation12]  }
  0x34   :  { %s6834_s19 = smov [#allocation3]   ;;  %s6835_s21 = smov [#allocation7]  }
  0x35   :  { %s28_s20 = sshll.u32 %s6834_s19, 4  ;;  %s50_s22 = sshll.u32 %s6835_s21, 4  ;;  %s29_s20 = int_to_ptr.vmem [resolvable:$true] %s28_s20  ;;  %s51_s22 = int_to_ptr.vmem [resolvable:$true] %s50_s22 }
  0x36   :  { %s6733_s18 = scalar_lea.hbm %s8302_s1, 256 }
  0x37   :  { %p6734_p10 = scmp.ne.s32.totalorder %s8302_s1, %s6733_s18  ;;  %p6737_p11 = scmp.lt.u32.totalorder %s6733_s18, %s8302_s1 }
  0x39   :  { %p6739_p12 = pnand %p6737_p11, %p6734_p10 }
  0x3b   :  { %6742 = shalt.err (!%p6739_p12)
}
  0x3c   :  { %s6743_s6 = scalar_lea.vmem %s29_s20, 256  ;;  %p6748_p0 = scmp.lt.s32.totalorder %s29_s20, %s29_s20 }
  0x3d   :  { %p6744_p13 = scmp.ne.s32.totalorder %s29_s20, %s6743_s6  ;;  %p6749_p1 = scmp.lt.s32.totalorder %s6743_s6, %s6743_s6 }
  0x3f   :  { %p6750_p2 = por %p6749_p1, %p6748_p0 }
  0x41   :  { %p6751_p3 = pnand %p6750_p2, %p6744_p13 }
  0x43   :  { %6754 = shalt.err (!%p6751_p3)
}
  0x44   :  { %31 = dma.hbm_to_vmem [thread:$0]  %s8302_s1, 256, %s29_s20, [#allocation4]  }
  0x45   :  { %s6755_s16 = scalar_lea.hbm %s8304_s3, 64 }
  0x46   :  { %p6756_p4 = scmp.ne.s32.totalorder %s8304_s3, %s6755_s16  ;;  %p6759_p5 = scmp.lt.u32.totalorder %s6755_s16, %s8304_s3 }
  0x48   :  { %p6761_p6 = pnand %p6759_p5, %p6756_p4 }
  0x4a   :  { %6764 = shalt.err (!%p6761_p6)
}
  0x4b   :  { %s6765_s21 = scalar_lea.vmem %s51_s22, 64  ;;  %p6770_p8 = scmp.lt.s32.totalorder %s51_s22, %s51_s22 }
  0x4c   :  { %p6766_p7 = scmp.ne.s32.totalorder %s51_s22, %s6765_s21  ;;  %p6771_p9 = scmp.lt.s32.totalorder %s6765_s21, %s6765_s21 }
  0x4e   :  { %p6772_p10 = por %p6771_p9, %p6770_p8 }
  0x50   :  { %p6773_p11 = pnand %p6772_p10, %p6766_p7 }
  0x52   :  { %6776 = shalt.err (!%p6773_p11)
}
  0x53   :  { %53 = dma.hbm_to_vmem [thread:$0]  %s8304_s3, 64, %s51_s22, [#allocation6]  }
  0x54   :  { %s6836_s23 = smov [#allocation10]   ;;  %s6837_s18 = smov [#allocation13]  }
  0x55   :  { %s71_s2 = sshll.u32 %s6836_s23, 4  ;;  %s93_s24 = sshll.u32 %s6837_s18, 4  ;;  %s72_s2 = int_to_ptr.vmem [resolvable:$true] %s71_s2  ;;  %s94_s24 = int_to_ptr.vmem [resolvable:$true] %s93_s24 }
  0x56   :  { %s6777_s29 = scalar_lea.hbm %s8306_s5, 8192 }
  0x57   :  { %p6778_p12 = scmp.ne.s32.totalorder %s8306_s5, %s6777_s29  ;;  %p6781_p13 = scmp.lt.u32.totalorder %s6777_s29, %s8306_s5 }
  0x59   :  { %p6783_p0 = pnand %p6781_p13, %p6778_p12 }
  0x5b   :  { %6786 = shalt.err (!%p6783_p0)
}
  0x5c   :  { %s6787_s3 = scalar_lea.vmem %s72_s2, 8192  ;;  %p6792_p2 = scmp.lt.s32.totalorder %s72_s2, %s72_s2 }
  0x5d   :  { %p6788_p1 = scmp.ne.s32.totalorder %s72_s2, %s6787_s3  ;;  %p6793_p3 = scmp.lt.s32.totalorder %s6787_s3, %s6787_s3 }
  0x5f   :  { %p6794_p4 = por %p6793_p3, %p6792_p2 }
  0x61   :  { %p6795_p5 = pnand %p6794_p4, %p6788_p1 }
  0x63   :  { %6798 = shalt.err (!%p6795_p5)
}
  0x64   :  { %77 = dma.hbm_to_vmem [thread:$0]  %s8306_s5, 8192, %s72_s2, [#allocation9], %s6830_s27, %s6830_s27, %s6831_s28  }
  0x65   :  { %s6799_s4 = scalar_lea.hbm %s8308_s7, 2048 }
  0x66   :  { %p6800_p6 = scmp.ne.s32.totalorder %s8308_s7, %s6799_s4  ;;  %p6803_p7 = scmp.lt.u32.totalorder %s6799_s4, %s8308_s7 }
  0x68   :  { %p6805_p8 = pnand %p6803_p7, %p6800_p6 }
  0x6a   :  { %6808 = shalt.err (!%p6805_p8)
}
  0x6b   :  { %s6809_s20 = scalar_lea.vmem %s94_s24, 2048  ;;  %p6814_p10 = scmp.lt.s32.totalorder %s94_s24, %s94_s24 }
  0x6c   :  { %p6810_p9 = scmp.ne.s32.totalorder %s94_s24, %s6809_s20  ;;  %p6815_p11 = scmp.lt.s32.totalorder %s6809_s20, %s6809_s20 }
  0x6e   :  { %p6816_p12 = por %p6815_p11, %p6814_p10 }
  0x70   :  { %p6817_p13 = pnand %p6816_p12, %p6810_p9 }
  0x72   :  { %6820 = shalt.err (!%p6817_p13)
}
  0x73   :  { %s6838_s5 = smov 128   ;;  %s6839_s27 = smov 8  }
  0x74   :  { %99 = dma.hbm_to_vmem [thread:$0]  %s8308_s7, 2048, %s94_s24, [#allocation12], %s6838_s5, %s6838_s5, %s6839_s27  }
  0x75   :  { %6821 = dma.done.wait [#allocation4], 256  }
  0x76   :  { %6822 = vsyncadd [#allocation4], 4294967040 }
  0x77   :  { %6823 = dma.done.wait [#allocation6], 8256  }
  0x78   :  { %6824 = vsyncadd [#allocation6], 4294959040 }
  0x79   :  { %6825 = dma.done.wait [#allocation9], 16384  }
  0x7a   :  { %6826 = vsyncadd [#allocation9], 4294950912 }
  0x7b   :  { %6827 = dma.done.wait [#allocation12], 2112  }
  0x7c   :  { %6828 = vsyncadd [#allocation12], 4294965184  ;;  %v8313_v0 = vmov 0.0   ;;  %v157_v1 = vld [vmem:[#allocation3] sm:$0xff]  ;;  %vm210_vm0 = vcmask 1043456   ;;  %v158_v2 = vld [vmem:[#allocation3 + $0x8] sm:$0xff] }
  0x7d   :  { %283 = vmatprep.mubr.f32.mxu0 %v8313_v0  ;;  %396 = vmatprep.mubr.f32.mxu1 %v8313_v0  ;;  %v149_v3 = vld [vmem:[%s8301_s0] sm:$0xff]  ;;  %v183_v4 = vcombine.high %v157_v1, %v157_v1  ;;  %v184_v5 = vcombine.high %v158_v2, %v158_v2  ;;  %v482_v6 = vld [vmem:[#allocation5 + $0x8] sm:$0xff]  ;;  %v484_v8 = vld [vmem:[#allocation5 + $0x18] sm:$0xff]  ;;  %vm185_vm1 = vcmask 31744   ;;  %vm6842_vm2 = vmmov 0  }
  0x7e   :  { %v486_v7 = vld [vmem:[#allocation5 + $0x28] sm:$0xff]  ;;  %v488_v10 = vld [vmem:[#allocation5 + $0x38] sm:$0xff]  ;;  %v481_v11 = vld [vmem:[#allocation5] sm:$0xff] }
  0x7f   :  { %v7001_v9 = vpack.c.bf16 %v486_v7, %v482_v6  ;;  %v485_v12 = vld [vmem:[#allocation5 + $0x20] sm:$0xff]  ;;  %4685 = vmatprep.subr.msk.mxu0 %vm210_vm0, %v183_v4  ;;  %4695 = vmatprep.subr.msk.mxu1 %vm210_vm0, %v184_v5  ;;  %v7005_v13 = vpack.c.bf16 %v488_v10, %v484_v8  ;;  %v483_v15 = vld [vmem:[#allocation5 + $0x10] sm:$0xff]  ;;  %v490_v18 = vld [vmem:[#allocation5 + $0x48] sm:$0xff] }
  0x80   :  { %v7007_v14 = vpack.c.bf16 %v485_v12, %v481_v11  ;;  %v487_v16 = vld [vmem:[#allocation5 + $0x30] sm:$0xff]  ;;  %4686 = vmatpush1.msk.msra.mxu0 %vm210_vm0, %v157_v1  ;;  %4696 = vmatpush1.msk.msra.mxu1 %vm210_vm0, %v158_v2  ;;  %v494_v19 = vld [vmem:[#allocation5 + $0x68] sm:$0xff]  ;;  %v492_v20 = vld [vmem:[#allocation5 + $0x58] sm:$0xff] }
  0x81   :  { %8518 = vst [vmem:[#allocation18_spill] sm:$0xff] %v7001_v9  ;;  %8519 = vst [vmem:[#allocation19_spill] sm:$0xff] %v7005_v13  ;;  %v7011_v17 = vpack.c.bf16 %v487_v16, %v483_v15  ;;  %4687 = vmatmul.mubr.msk.f32.vlgmr.msra.gmra.mrb[0].mxu0 %vm185_vm1, %v149_v3  ;;  %4697 = vmatmul.mubr.msk.f32.vlgmr.msra.gmra.mrb[0].mxu1 %vm185_vm1, %v149_v3  ;;  %v496_v21 = vld [vmem:[#allocation5 + $0x78] sm:$0xff]  ;;  %v489_v22 = vld [vmem:[#allocation5 + $0x40] sm:$0xff]  ;;  %v7020_v25 = vpack.c.bf16 %v494_v19, %v490_v18 }
  0x82   :  { %v493_v23 = vld [vmem:[#allocation5 + $0x60] sm:$0xff]  ;;  %4812 = vmatprep.subr.bf16.mxu0 %v7001_v9  ;;  %4844 = vmatprep.subr.bf16.mxu1 %v7005_v13  ;;  %v150_v24 = vld [vmem:[%s8301_s0 + $0x8] sm:$0xff]  ;;  %v7022_v26 = vpack.c.bf16 %v496_v21, %v492_v20  ;;  %v491_v27 = vld [vmem:[#allocation5 + $0x50] sm:$0xff] }
  0x83   :  { %v495_v28 = vld [vmem:[#allocation5 + $0x70] sm:$0xff]  ;;  %4814 = vmatpush1.bf16.msra.mxu0 %v7007_v14  ;;  %4846 = vmatpush1.bf16.msra.mxu1 %v7011_v17  ;;  %v7026_v29 = vpack.c.bf16 %v493_v23, %v489_v22  ;;  %v498_v31 = vld [vmem:[#allocation5 + $0x88] sm:$0xff]  ;;  %v500_v33 = vld [vmem:[#allocation5 + $0x98] sm:$0xff] }
  0x84   :  { %v7028_v30 = vpack.c.bf16 %v495_v28, %v491_v27  ;;  %v502_v32 = vld [vmem:[#allocation5 + $0xa8] sm:$0xff]  ;;  %289 = vmatprep.mubr.f32.mxu0 %v8313_v0  ;;  %402 = vmatprep.mubr.f32.mxu1 %v8313_v0  ;;  %v504_v34 = vld [vmem:[#allocation5 + $0xb8] sm:$0xff]  ;;  %v497_v35 = vld [vmem:[#allocation5 + $0x80] sm:$0xff] }
  0x85   :  { %8520 = vst [vmem:[#allocation20_spill] sm:$0xff] %v7026_v29  ;;  %v501_v36 = vld [vmem:[#allocation5 + $0xa0] sm:$0xff]  ;;  %4688 = vmatmul.mubr.msk.f32.gmra.mrb[2].mxu0 %vm185_vm1, %v150_v24  ;;  %4698 = vmatmul.mubr.msk.f32.gmra.mrb[2].mxu1 %vm185_vm1, %v150_v24  ;;  %v499_v37 = vld [vmem:[#allocation5 + $0x90] sm:$0xff]  ;;  %v7039_v40 = vpack.c.bf16 %v502_v32, %v498_v31  ;;  %v7041_v41 = vpack.c.bf16 %v504_v34, %v500_v33  ;;  %v506_v42 = vld [vmem:[#allocation5 + $0xc8] sm:$0xff] }
  0x86   :  { %8521 = vst [vmem:[#allocation21_spill] sm:$0xff] %v7028_v30  ;;  %v503_v38 = vld [vmem:[#allocation5 + $0xb0] sm:$0xff]  ;;  %4816 = vmatprep.subr.bf16.mxu0 %v7020_v25  ;;  %4848 = vmatprep.subr.bf16.mxu1 %v7022_v26  ;;  %v151_v39 = vld [vmem:[%s8301_s0 + $0x10] sm:$0xff]  ;;  %v510_v43 = vld [vmem:[#allocation5 + $0xe8] sm:$0xff]  ;;  %v7045_v44 = vpack.c.bf16 %v501_v36, %v497_v35 }
  0x87   :  { %8522 = vst [vmem:[#allocation22_spill] sm:$0xff] %v7039_v40  ;;  %8523 = vst [vmem:[#allocation23_spill] sm:$0xff] %v7041_v41  ;;  %4818 = vmatpush1.bf16.msra.mxu0 %v7026_v29  ;;  %4850 = vmatpush1.bf16.msra.mxu1 %v7028_v30  ;;  %v7047_v45 = vpack.c.bf16 %v503_v38, %v499_v37  ;;  %v508_v46 = vld [vmem:[#allocation5 + $0xd8] sm:$0xff]  ;;  %v505_v48 = vld [vmem:[#allocation5 + $0xc0] sm:$0xff]  ;;  %v7058_v53 = vpack.c.bf16 %v510_v43, %v506_v42 }
  0x88   :  { %8524 = vst [vmem:[#allocation24_spill] sm:$0xff] %v7045_v44  ;;  %v512_v47 = vld [vmem:[#allocation5 + $0xf8] sm:$0xff]  ;;  %295 = vmatprep.mubr.f32.mxu0 %v8313_v0  ;;  %408 = vmatprep.mubr.f32.mxu1 %v8313_v0  ;;  %v509_v49 = vld [vmem:[#allocation5 + $0xe0] sm:$0xff]  ;;  %v507_v50 = vld [vmem:[#allocation5 + $0xd0] sm:$0xff] }
  0x89   :  { %8525 = vst [vmem:[#allocation25_spill] sm:$0xff] %v7047_v45  ;;  %v511_v51 = vld [vmem:[#allocation5 + $0xf0] sm:$0xff]  ;;  %4689 = vmatmul.mubr.msk.f32.gmra.mrb[4].mxu0 %vm185_vm1, %v151_v39  ;;  %4699 = vmatmul.mubr.msk.f32.gmra.mrb[4].mxu1 %vm185_vm1, %v151_v39  ;;  %v152_v52 = vld [vmem:[%s8301_s0 + $0x18] sm:$0xff]  ;;  %8526 = vst [vmem:[#allocation26_spill] sm:$0xff] %v7058_v53  ;;  %v7060_v54 = vpack.c.bf16 %v512_v47, %v508_v46  ;;  %v7064_v57 = vpack.c.bf16 %v509_v49, %v505_v48 }
  0x8a   :  { %4820 = vmatprep.subr.bf16.mxu0 %v7039_v40  ;;  %4852 = vmatprep.subr.bf16.mxu1 %v7041_v41  ;;  %v514_v55 = vld [vmem:[#allocation5 + $0x108] sm:$0xff]  ;;  %v7066_v58 = vpack.c.bf16 %v511_v51, %v507_v50  ;;  %v516_v59 = vld [vmem:[#allocation5 + $0x118] sm:$0xff]  ;;  %v513_v61 = vld [vmem:[#allocation5 + $0x100] sm:$0xff] }
  0x8b   :  { %8527 = vst [vmem:[#allocation27_spill] sm:$0xff] %v7060_v54  ;;  %v518_v56 = vld [vmem:[#allocation5 + $0x128] sm:$0xff]  ;;  %4822 = vmatpush1.bf16.msra.mxu0 %v7045_v44  ;;  %4854 = vmatpush1.bf16.msra.mxu1 %v7047_v45  ;;  %8528 = vst [vmem:[#allocation28_spill] sm:$0xff] %v7064_v57  ;;  %v520_v60 = vld [vmem:[#allocation5 + $0x138] sm:$0xff] }
  0x8c   :  { %8529 = vst [vmem:[#allocation29_spill] sm:$0xff] %v7066_v58  ;;  %301 = vmatprep.mubr.f32.mxu0 %v8313_v0  ;;  %414 = vmatprep.mubr.f32.mxu1 %v8313_v0  ;;  %v517_v62 = vld [vmem:[#allocation5 + $0x120] sm:$0xff]  ;;  %v515_v63 = vld [vmem:[#allocation5 + $0x110] sm:$0xff]  ;;  %v7077_v3 = vpack.c.bf16 %v518_v56, %v514_v55  ;;  %v7079_v4 = vpack.c.bf16 %v520_v60, %v516_v59  ;;  %v522_v5 = vld [vmem:[#allocation5 + $0x148] sm:$0xff] }
  0x8d   :  { %v519_v1 = vld [vmem:[#allocation5 + $0x130] sm:$0xff]  ;;  %4690 = vmatmul.mubr.msk.f32.gmra.mrb[6].mxu0 %vm185_vm1, %v152_v52  ;;  %4700 = vmatmul.mubr.msk.f32.gmra.mrb[6].mxu1 %vm185_vm1, %v152_v52  ;;  %v526_v6 = vld [vmem:[#allocation5 + $0x168] sm:$0xff]  ;;  %v7083_v7 = vpack.c.bf16 %v517_v62, %v513_v61  ;;  %v524_v10 = vld [vmem:[#allocation5 + $0x158] sm:$0xff] }
  0x8e   :  { %4824 = vmatprep.subr.bf16.mxu0 %v7058_v53  ;;  %4856 = vmatprep.subr.bf16.mxu1 %v7060_v54  ;;  %v153_v2 = vld [vmem:[%s8301_s0 + $0x20] sm:$0xff]  ;;  %8530 = vst [vmem:[#allocation30_spill] sm:$0xff] %v7077_v3  ;;  %8531 = vst [vmem:[#allocation31_spill] sm:$0xff] %v7079_v4  ;;  %v7085_v8 = vpack.c.bf16 %v519_v1, %v515_v63  ;;  %v528_v11 = vld [vmem:[#allocation5 + $0x178] sm:$0xff]  ;;  %v7096_v20 = vpack.c.bf16 %v526_v6, %v522_v5 }
  0x8f   :  { %4826 = vmatpush1.bf16.msra.mxu0 %v7064_v57  ;;  %4858 = vmatpush1.bf16.msra.mxu1 %v7066_v58  ;;  %8532 = vst [vmem:[#allocation32_spill] sm:$0xff] %v7083_v7  ;;  %v521_v12 = vld [vmem:[#allocation5 + $0x140] sm:$0xff]  ;;  %v523_v16 = vld [vmem:[#allocation5 + $0x150] sm:$0xff]  ;;  %v154_v19 = vld [vmem:[%s8301_s0 + $0x28] sm:$0xff]  ;;  %v7098_v21 = vpack.c.bf16 %v528_v11, %v524_v10 }
  0x90   :  { %8533 = vst [vmem:[#allocation33_spill] sm:$0xff] %v7085_v8  ;;  %307 = vmatprep.mubr.f32.mxu0 %v8313_v0  ;;  %420 = vmatprep.mubr.f32.mxu1 %v8313_v0  ;;  %v525_v15 = vld [vmem:[#allocation5 + $0x160] sm:$0xff]  ;;  %v527_v18 = vld [vmem:[#allocation5 + $0x170] sm:$0xff]  ;;  %8534 = vst [vmem:[#allocation34_spill] sm:$0xff] %v7096_v20 }
  0x91   :  { %4691 = vmatmul.mubr.msk.f32.gmra.mrb[8].mxu0 %vm185_vm1, %v153_v2  ;;  %4701 = vmatmul.mubr.msk.f32.gmra.mrb[8].mxu1 %vm185_vm1, %v153_v2  ;;  %8535 = vst [vmem:[#allocation35_spill] sm:$0xff] %v7098_v21  ;;  %v530_v22 = vld [vmem:[#allocation5 + $0x188] sm:$0xff]  ;;  %v7102_v24 = vpack.c.bf16 %v525_v15, %v521_v12  ;;  %v7104_v27 = vpack.c.bf16 %v527_v18, %v523_v16  ;;  %v532_v28 = vld [vmem:[#allocation5 + $0x198] sm:$0xff]  ;;  %v529_v32 = vld [vmem:[#allocation5 + $0x180] sm:$0xff] }
  0x92   :  { %4828 = vmatprep.subr.bf16.mxu0 %v7077_v3  ;;  %4860 = vmatprep.subr.bf16.mxu1 %v7079_v4  ;;  %v534_v23 = vld [vmem:[#allocation5 + $0x1a8] sm:$0xff]  ;;  %v536_v31 = vld [vmem:[#allocation5 + $0x1b8] sm:$0xff]  ;;  %v533_v33 = vld [vmem:[#allocation5 + $0x1a0] sm:$0xff] }
  0x93   :  { %4830 = vmatpush1.bf16.msra.mxu0 %v7083_v7  ;;  %4862 = vmatpush1.bf16.msra.mxu1 %v7085_v8  ;;  %8536 = vst [vmem:[#allocation36_spill] sm:$0xff] %v7102_v24  ;;  %8537 = vst [vmem:[#allocation37_spill] sm:$0xff] %v7104_v27  ;;  %v531_v34 = vld [vmem:[#allocation5 + $0x190] sm:$0xff]  ;;  %v155_v36 = vld [vmem:[%s8301_s0 + $0x30] sm:$0xff]  ;;  %v7115_v37 = vpack.c.bf16 %v534_v23, %v530_v22  ;;  %v7117_v38 = vpack.c.bf16 %v536_v31, %v532_v28 }
  0x94   :  { %313 = vmatprep.mubr.f32.mxu0 %v8313_v0  ;;  %426 = vmatprep.mubr.f32.mxu1 %v8313_v0  ;;  %v535_v35 = vld [vmem:[#allocation5 + $0x1b0] sm:$0xff]  ;;  %v538_v39 = vld [vmem:[#allocation5 + $0x1c8] sm:$0xff]  ;;  %v7121_v43 = vpack.c.bf16 %v533_v33, %v529_v32  ;;  %v540_v47 = vld [vmem:[#allocation5 + $0x1d8] sm:$0xff] }
  0x95   :  { %4692 = vmatmul.mubr.msk.f32.gmra.mrb[10].mxu0 %vm185_vm1, %v154_v19  ;;  %4702 = vmatmul.mubr.msk.f32.gmra.mrb[10].mxu1 %vm185_vm1, %v154_v19  ;;  %8538 = vst [vmem:[#allocation38_spill] sm:$0xff] %v7115_v37  ;;  %8539 = vst [vmem:[#allocation39_spill] sm:$0xff] %v7117_v38  ;;  %v542_v42 = vld [vmem:[#allocation5 + $0x1e8] sm:$0xff]  ;;  %v7123_v46 = vpack.c.bf16 %v535_v35, %v531_v34  ;;  %v544_v48 = vld [vmem:[#allocation5 + $0x1f8] sm:$0xff] }
  0x96   :  { %4832 = vmatprep.subr.bf16.mxu0 %v7096_v20  ;;  %4864 = vmatprep.subr.bf16.mxu1 %v7098_v21  ;;  %8540 = vst [vmem:[#allocation40_spill] sm:$0xff] %v7121_v43  ;;  %v537_v49 = vld [vmem:[#allocation5 + $0x1c0] sm:$0xff]  ;;  %v539_v51 = vld [vmem:[#allocation5 + $0x1d0] sm:$0xff]  ;;  %v156_v55 = vld [vmem:[%s8301_s0 + $0x38] sm:$0xff]  ;;  %v7134_v59 = vpack.c.bf16 %v542_v42, %v538_v39  ;;  %v7136_v60 = vpack.c.bf16 %v544_v48, %v540_v47 }
  0x97   :  { %4834 = vmatpush1.bf16.msra.mxu0 %v7102_v24  ;;  %4866 = vmatpush1.bf16.msra.mxu1 %v7104_v27  ;;  %8541 = vst [vmem:[#allocation41_spill] sm:$0xff] %v7123_v46  ;;  %v541_v50 = vld [vmem:[#allocation5 + $0x1e0] sm:$0xff]  ;;  %v543_v52 = vld [vmem:[#allocation5 + $0x1f0] sm:$0xff] }
  0x98   :  { %319 = vmatprep.mubr.f32.mxu0 %v8313_v0  ;;  %432 = vmatprep.mubr.f32.mxu1 %v8313_v0  ;;  %v774_v56 = vld [vmem:[#allocation10 + $0x8] sm:$0xff]  ;;  %8542 = vst [vmem:[#allocation42_spill] sm:$0xff] %v7134_v59  ;;  %8543 = vst [vmem:[#allocation43_spill] sm:$0xff] %v7136_v60  ;;  %v776_v62 = vld [vmem:[#allocation10 + $0x18] sm:$0xff]  ;;  %v7140_v1 = vpack.c.bf16 %v541_v50, %v537_v49  ;;  %v7142_v2 = vpack.c.bf16 %v543_v52, %v539_v51 }
  0x99   :  { %4693 = vmatmul.mubr.msk.f32.gmra.mrb[12].mxu0 %vm185_vm1, %v155_v36  ;;  %4703 = vmatmul.mubr.msk.f32.gmra.mrb[12].mxu1 %vm185_vm1, %v155_v36  ;;  %v778_v61 = vld [vmem:[#allocation10 + $0x28] sm:$0xff]  ;;  %v780_v63 = vld [vmem:[#allocation10 + $0x38] sm:$0xff]  ;;  %v773_v5 = vld [vmem:[#allocation10] sm:$0xff] }
  0x9a   :  { %4836 = vmatprep.subr.bf16.mxu0 %v7115_v37  ;;  %4868 = vmatprep.subr.bf16.mxu1 %v7117_v38  ;;  %8544 = vst [vmem:[#allocation44_spill] sm:$0xff] %v7140_v1  ;;  %8545 = vst [vmem:[#allocation45_spill] sm:$0xff] %v7142_v2  ;;  %v777_v6 = vld [vmem:[#allocation10 + $0x20] sm:$0xff]  ;;  %v775_v10 = vld [vmem:[#allocation10 + $0x10] sm:$0xff]  ;;  %v7148_v15 = vpack.c.bf16 %v778_v61, %v774_v56  ;;  %v7150_v16 = vpack.c.bf16 %v780_v63, %v776_v62 }
  0x9b   :  { %4838 = vmatpush1.bf16.msra.mxu0 %v7121_v43  ;;  %4870 = vmatpush1.bf16.msra.mxu1 %v7123_v46  ;;  %v779_v11 = vld [vmem:[#allocation10 + $0x30] sm:$0xff]  ;;  %v782_v12 = vld [vmem:[#allocation10 + $0x48] sm:$0xff]  ;;  %v784_v19 = vld [vmem:[#allocation10 + $0x58] sm:$0xff]  ;;  %v7156_v23 = vpack.c.bf16 %v777_v6, %v773_v5 }
  0x9c   :  { %325 = vmatprep.mubr.f32.mxu0 %v8313_v0  ;;  %438 = vmatprep.mubr.f32.mxu1 %v8313_v0  ;;  %8546 = vst [vmem:[#allocation46_spill] sm:$0xff] %v7148_v15  ;;  %8547 = vst [vmem:[#allocation47_spill] sm:$0xff] %v7150_v16  ;;  %v786_v18 = vld [vmem:[#allocation10 + $0x68] sm:$0xff]  ;;  %v788_v22 = vld [vmem:[#allocation10 + $0x78] sm:$0xff]  ;;  %v7158_v28 = vpack.c.bf16 %v779_v11, %v775_v10 }
  0x9d   :  { %4694 = vmatmul.mubr.msk.f32.gmra.mrb[14].mxu0 %vm185_vm1, %v156_v55  ;;  %4704 = vmatmul.mubr.msk.f32.gmra.mrb[14].mxu1 %vm185_vm1, %v156_v55  ;;  %8548 = vst [vmem:[#allocation48_spill] sm:$0xff] %v7156_v23  ;;  %v781_v31 = vld [vmem:[#allocation10 + $0x40] sm:$0xff]  ;;  %v7162_v33 = vpack.c.bf16 %v786_v18, %v782_v12  ;;  %v7164_v34 = vpack.c.bf16 %v788_v22, %v784_v19  ;;  %v783_v35 = vld [vmem:[#allocation10 + $0x50] sm:$0xff]  ;;  %v790_v39 = vld [vmem:[#allocation10 + $0x88] sm:$0xff] }
  0x9e   :  { %4840 = vmatprep.subr.bf16.mxu0 %v7134_v59  ;;  %4872 = vmatprep.subr.bf16.mxu1 %v7136_v60  ;;  %8549 = vst [vmem:[#allocation49_spill] sm:$0xff] %v7158_v28  ;;  %v785_v32 = vld [vmem:[#allocation10 + $0x60] sm:$0xff]  ;;  %v787_v36 = vld [vmem:[#allocation10 + $0x70] sm:$0xff]  ;;  %v794_v42 = vld [vmem:[#allocation10 + $0xa8] sm:$0xff] }
  0x9f   :  { %4842 = vmatpush1.bf16.msra.mxu0 %v7140_v1  ;;  %4874 = vmatpush1.bf16.msra.mxu1 %v7142_v2  ;;  %8550 = vst [vmem:[#allocation50_spill] sm:$0xff] %v7162_v33  ;;  %8551 = vst [vmem:[#allocation51_spill] sm:$0xff] %v7164_v34  ;;  %v792_v47 = vld [vmem:[#allocation10 + $0x98] sm:$0xff]  ;;  %v7172_v49 = vpack.c.bf16 %v785_v32, %v781_v31  ;;  %v7174_v50 = vpack.c.bf16 %v787_v36, %v783_v35  ;;  %v789_v51 = vld [vmem:[#allocation10 + $0x80] sm:$0xff] }
  0xa0   :  { %609 = vmatprep.mubr.f32.mxu0 %v8313_v0  ;;  %680 = vmatprep.mubr.f32.mxu1 %v8313_v0  ;;  %v796_v48 = vld [vmem:[#allocation10 + $0xb8] sm:$0xff]  ;;  %v793_v52 = vld [vmem:[#allocation10 + $0xa0] sm:$0xff]  ;;  %v7178_v55 = vpack.c.bf16 %v794_v42, %v790_v39  ;;  %v791_v61 = vld [vmem:[#allocation10 + $0x90] sm:$0xff] }
  0xa1   :  { %4876 = vmatprep.subr.bf16.mxu0 %v7148_v15  ;;  %4908 = vmatprep.subr.bf16.mxu1 %v7150_v16  ;;  %8552 = vst [vmem:[#allocation52_spill] sm:$0xff] %v7172_v49  ;;  %8553 = vst [vmem:[#allocation53_spill] sm:$0xff] %v7174_v50  ;;  %v7180_v56 = vpack.c.bf16 %v796_v48, %v792_v47  ;;  %v795_v62 = vld [vmem:[#allocation10 + $0xb0] sm:$0xff]  ;;  %v798_v63 = vld [vmem:[#allocation10 + $0xc8] sm:$0xff]  ;;  %v7186_v11 = vpack.c.bf16 %v793_v52, %v789_v51 }
  0xa2   :  { %610 = vmatmul.mubr.f32.vlgmr.msra.gmra.mrb[0].mxu0 %v8313_v0  ;;  %681 = vmatmul.mubr.f32.vlgmr.msra.gmra.mrb[0].mxu1 %v8313_v0  ;;  %8554 = vst [vmem:[#allocation54_spill] sm:$0xff] %v7178_v55  ;;  %v802_v5 = vld [vmem:[#allocation10 + $0xe8] sm:$0xff]  ;;  %v800_v6 = vld [vmem:[#allocation10 + $0xd8] sm:$0xff]  ;;  %v7188_v12 = vpack.c.bf16 %v795_v62, %v791_v61  ;;  %v797_v18 = vld [vmem:[#allocation10 + $0xc0] sm:$0xff] }
  0xa3   :  { %4878 = vmatpush1.bf16.msra.mxu0 %v7156_v23  ;;  %4910 = vmatpush1.bf16.msra.mxu1 %v7158_v28  ;;  %8555 = vst [vmem:[#allocation55_spill] sm:$0xff] %v7180_v56  ;;  %v804_v10 = vld [vmem:[#allocation10 + $0xf8] sm:$0xff]  ;;  %8556 = vst [vmem:[#allocation56_spill] sm:$0xff] %v7186_v11  ;;  %v801_v19 = vld [vmem:[#allocation10 + $0xe0] sm:$0xff]  ;;  %v7192_v22 = vpack.c.bf16 %v802_v5, %v798_v63 }
  0xa4   :  { %4880 = vmatprep.subr.bf16.mxu0 %v7162_v33  ;;  %4912 = vmatprep.subr.bf16.mxu1 %v7164_v34  ;;  %8557 = vst [vmem:[#allocation57_spill] sm:$0xff] %v7188_v12  ;;  %v7194_v31 = vpack.c.bf16 %v804_v10, %v800_v6  ;;  %v799_v32 = vld [vmem:[#allocation10 + $0xd0] sm:$0xff]  ;;  %v806_v36 = vld [vmem:[#allocation10 + $0x108] sm:$0xff]  ;;  %v808_v42 = vld [vmem:[#allocation10 + $0x118] sm:$0xff]  ;;  %v7198_v48 = vpack.c.bf16 %v801_v19, %v797_v18 }
  0xa5   :  { %901 = vmatprep.mubr.f32.mxu0 %v8313_v0  ;;  %972 = vmatprep.mubr.f32.mxu1 %v8313_v0  ;;  %8558 = vst [vmem:[#allocation58_spill] sm:$0xff] %v7192_v22  ;;  %v803_v35 = vld [vmem:[#allocation10 + $0xf0] sm:$0xff]  ;;  %v810_v39 = vld [vmem:[#allocation10 + $0x128] sm:$0xff]  ;;  %v812_v47 = vld [vmem:[#allocation10 + $0x138] sm:$0xff] }
  0xa6   :  { %8559 = vst [vmem:[#allocation59_spill] sm:$0xff] %v7194_v31  ;;  %8560 = vst [vmem:[#allocation60_spill] sm:$0xff] %v7198_v48  ;;  %v7200_v51 = vpack.c.bf16 %v803_v35, %v799_v32  ;;  %v805_v52 = vld [vmem:[#allocation10 + $0x100] sm:$0xff]  ;;  %v7204_v62 = vpack.c.bf16 %v810_v39, %v806_v36  ;;  %v7206_v63 = vpack.c.bf16 %v812_v47, %v808_v42  ;;  %v807_v5 = vld [vmem:[#allocation10 + $0x110] sm:$0xff] }
  0xa7   :  { %4882 = vmatpush1.bf16.msra.mxu0 %v7172_v49  ;;  %4914 = vmatpush1.bf16.msra.mxu1 %v7174_v50  ;;  %v809_v61 = vld [vmem:[#allocation10 + $0x120] sm:$0xff]  ;;  %v811_v6 = vld [vmem:[#allocation10 + $0x130] sm:$0xff]  ;;  %v814_v10 = vld [vmem:[#allocation10 + $0x148] sm:$0xff] }
  0xa8   :  { %4884 = vmatprep.subr.bf16.mxu0 %v7178_v55  ;;  %4916 = vmatprep.subr.bf16.mxu1 %v7180_v56  ;;  %8561 = vst [vmem:[#allocation61_spill] sm:$0xff] %v7200_v51  ;;  %8562 = vst [vmem:[#allocation62_spill] sm:$0xff] %v7204_v62  ;;  %v818_v0 = vld [vmem:[#allocation10 + $0x168] sm:$0xff]  ;;  %v7210_v18 = vpack.c.bf16 %v809_v61, %v805_v52  ;;  %v7212_v19 = vpack.c.bf16 %v811_v6, %v807_v5  ;;  %v813_v32 = vld [vmem:[#allocation10 + $0x140] sm:$0xff] }
  0xa9   :  { %8563 = vst [vmem:[#allocation63_spill] sm:$0xff] %v7206_v63  ;;  %v817_v35 = vld [vmem:[#allocation10 + $0x160] sm:$0xff]  ;;  %v7216_v36 = vpack.c.bf16 %v818_v0, %v814_v10  ;;  %v815_v42 = vld [vmem:[#allocation10 + $0x150] sm:$0xff] }
  0xaa   :  { %8564 = vst [vmem:[#allocation64_spill] sm:$0xff] %v7210_v18  ;;  %8565 = vst [vmem:[#allocation65_spill] sm:$0xff] %v7212_v19  ;;  %v819_v47 = vld [vmem:[#allocation10 + $0x170] sm:$0xff]  ;;  %v7222_v52 = vpack.c.bf16 %v817_v35, %v813_v32  ;;  %v821_v5 = vld [vmem:[#allocation10 + $0x180] sm:$0xff] }
  0xab   :  { %4886 = vmatpush1.bf16.msra.mxu0 %v7186_v11  ;;  %4918 = vmatpush1.bf16.msra.mxu1 %v7188_v12  ;;  %v816_v11 = vld [vmem:[#allocation10 + $0x158] sm:$0xff]  ;;  %8566 = vst [vmem:[#allocation66_spill] sm:$0xff] %v7216_v36  ;;  %v7224_v61 = vpack.c.bf16 %v819_v47, %v815_v42  ;;  %v823_v6 = vld [vmem:[#allocation10 + $0x190] sm:$0xff]  ;;  %v829_v47 = vld [vmem:[#allocation10 + $0x1c0] sm:$0xff] }
  0xac   :  { %4888 = vmatprep.subr.bf16.mxu0 %v7192_v22  ;;  %4920 = vmatprep.subr.bf16.mxu1 %v7194_v31  ;;  %v820_v12 = vld [vmem:[#allocation10 + $0x178] sm:$0xff]  ;;  %v822_v31 = vld [vmem:[#allocation10 + $0x188] sm:$0xff]  ;;  %8568 = vst [vmem:[#allocation68_spill] sm:$0xff] %v7222_v52  ;;  %v827_v10 = vld [vmem:[#allocation10 + $0x1b0] sm:$0xff] }
  0xad   :  { %v7218_v39 = vpack.c.bf16 %v820_v12, %v816_v11  ;;  %v824_v22 = vld [vmem:[#allocation10 + $0x198] sm:$0xff]  ;;  %8569 = vst [vmem:[#allocation69_spill] sm:$0xff] %v7224_v61  ;;  %v825_v12 = vld [vmem:[#allocation10 + $0x1a0] sm:$0xff]  ;;  %v7236_v35 = vpack.c.bf16 %v827_v10, %v823_v6  ;;  %v831_v6 = vld [vmem:[#allocation10 + $0x1d0] sm:$0xff] }
  0xae   :  { %v7234_v32 = vpack.c.bf16 %v825_v12, %v821_v5  ;;  %v836_v42 = vld [vmem:[#allocation10 + $0x1f8] sm:$0xff]  ;;  %v835_v10 = vld [vmem:[#allocation10 + $0x1f0] sm:$0xff] }
  0xaf   :  { %4890 = vmatpush1.bf16.msra.mxu0 %v7198_v48  ;;  %4922 = vmatpush1.bf16.msra.mxu1 %v7200_v51  ;;  %8567 = vst [vmem:[#allocation67_spill] sm:$0xff] %v7218_v39  ;;  %v826_v48 = vld [vmem:[#allocation10 + $0x1a8] sm:$0xff]  ;;  %v828_v51 = vld [vmem:[#allocation10 + $0x1b8] sm:$0xff]  ;;  %8573 = vst [vmem:[#allocation73_spill] sm:$0xff] %v7236_v35 }
  0xb0   :  { %4892 = vmatprep.subr.bf16.mxu0 %v7204_v62  ;;  %4924 = vmatprep.subr.bf16.mxu1 %v7206_v63  ;;  %v7228_v0 = vpack.c.bf16 %v826_v48, %v822_v31  ;;  %v7230_v11 = vpack.c.bf16 %v828_v51, %v824_v22  ;;  %8572 = vst [vmem:[#allocation72_spill] sm:$0xff] %v7234_v32  ;;  %v830_v22 = vld [vmem:[#allocation10 + $0x1c8] sm:$0xff]  ;;  %v832_v48 = vld [vmem:[#allocation10 + $0x1d8] sm:$0xff] }
  0xb1   :  { %v834_v31 = vld [vmem:[#allocation10 + $0x1e8] sm:$0xff]  ;;  %v7244_v5 = vpack.c.bf16 %v836_v42, %v832_v48  ;;  %v716_v48 = vld [vmem:[#allocation8 + $0x38] sm:$0xff]  ;;  %v713_v42 = vld [vmem:[#allocation8 + $0x20] sm:$0xff] }
  0xb2   :  { %8570 = vst [vmem:[#allocation70_spill] sm:$0xff] %v7228_v0  ;;  %8571 = vst [vmem:[#allocation71_spill] sm:$0xff] %v7230_v11  ;;  %v7242_v51 = vpack.c.bf16 %v834_v31, %v830_v22  ;;  %v714_v22 = vld [vmem:[#allocation8 + $0x28] sm:$0xff]  ;;  %v712_v31 = vld [vmem:[#allocation8 + $0x18] sm:$0xff] }
  0xb3   :  { %4894 = vmatpush1.bf16.msra.mxu0 %v7210_v18  ;;  %4926 = vmatpush1.bf16.msra.mxu1 %v7212_v19  ;;  %8575 = vst [vmem:[#allocation75_spill] sm:$0xff] %v7244_v5 }
  0xb4   :  { %4896 = vmatprep.subr.bf16.mxu0 %v7216_v36  ;;  %4928 = vmatprep.subr.bf16.mxu1 %v7218_v39  ;;  %8574 = vst [vmem:[#allocation74_spill] sm:$0xff] %v7242_v51 }
  0xb7   :  { %4898 = vmatpush1.bf16.msra.mxu0 %v7222_v52  ;;  %4930 = vmatpush1.bf16.msra.mxu1 %v7224_v61  ;;  %v833_v61 = vld [vmem:[#allocation10 + $0x1e0] sm:$0xff] }
  0xb8   :  { %4900 = vmatprep.subr.bf16.mxu0 %v7228_v0  ;;  %4932 = vmatprep.subr.bf16.mxu1 %v7230_v11  ;;  %v7246_v12 = vpack.c.bf16 %v833_v61, %v829_v47  ;;  %v7249_v11 = vpack.c.bf16 %v835_v10, %v831_v6  ;;  %v709_v61 = vld [vmem:[#allocation8] sm:$0xff]  ;;  %v7256_v47 = vpack.c.bf16 %v716_v48, %v712_v31  ;;  %v711_v6 = vld [vmem:[#allocation8 + $0x10] sm:$0xff]  ;;  %v724_v48 = vld [vmem:[#allocation8 + $0x78] sm:$0xff] }
  0xb9   :  { %v7258_v0 = vpack.c.bf16 %v713_v42, %v709_v61  ;;  %v715_v10 = vld [vmem:[#allocation8 + $0x30] sm:$0xff]  ;;  %v717_v61 = vld [vmem:[#allocation8 + $0x40] sm:$0xff] }
  0xba   :  { %8576 = vst [vmem:[#allocation76_spill] sm:$0xff] %v7246_v12  ;;  %8577 = vst [vmem:[#allocation77_spill] sm:$0xff] %v7249_v11  ;;  %v721_v42 = vld [vmem:[#allocation8 + $0x60] sm:$0xff] }
  0xbb   :  { %4902 = vmatpush1.bf16.msra.mxu0 %v7234_v32  ;;  %4934 = vmatpush1.bf16.msra.mxu1 %v7236_v35  ;;  %v710_v35 = vld [vmem:[#allocation8 + $0x8] sm:$0xff]  ;;  %8579 = vst [vmem:[#allocation79_spill] sm:$0xff] %v7256_v47  ;;  %8580 = vst [vmem:[#allocation80_spill] sm:$0xff] %v7258_v0 }
  0xbc   :  { %4904 = vmatprep.subr.bf16.mxu0 %v7242_v51  ;;  %4936 = vmatprep.subr.bf16.mxu1 %v7244_v5  ;;  %v7254_v32 = vpack.c.bf16 %v714_v22, %v710_v35  ;;  %v8581_v5 = vmov 0.0   ;;  %v718_v35 = vld [vmem:[#allocation8 + $0x48] sm:$0xff] }
  0xbd   :  { %v722_v22 = vld [vmem:[#allocation8 + $0x68] sm:$0xff] }
  0xbe   :  { %8578 = vst [vmem:[#allocation78_spill] sm:$0xff] %v7254_v32  ;;  %v7268_v31 = vpack.c.bf16 %v722_v22, %v718_v35  ;;  %v726_v35 = vld [vmem:[#allocation8 + $0x88] sm:$0xff] }
  0xbf   :  { %4906 = vmatpush1.bf16.msra.mxu0 %v7246_v12  ;;  %4938 = vmatpush1.bf16.msra.mxu1 %v7249_v11  ;;  %v7262_v12 = vpack.c.bf16 %v715_v10, %v711_v6  ;;  %v720_v11 = vld [vmem:[#allocation8 + $0x58] sm:$0xff]  ;;  %v7272_v6 = vpack.c.bf16 %v721_v42, %v717_v61  ;;  %v719_v10 = vld [vmem:[#allocation8 + $0x50] sm:$0xff]  ;;  %v730_v22 = vld [vmem:[#allocation8 + $0xa8] sm:$0xff] }
  0xc0   :  { %4940 = vmatprep.subr.bf16.mxu0 %v7254_v32  ;;  %4972 = vmatprep.subr.bf16.mxu1 %v7256_v47  ;;  %8583 = vst [vmem:[#allocation82_spill] sm:$0xff] %v7268_v31  ;;  %v7270_v32 = vpack.c.bf16 %v724_v48, %v720_v11  ;;  %v723_v47 = vld [vmem:[#allocation8 + $0x70] sm:$0xff]  ;;  %v7282_v11 = vpack.c.bf16 %v730_v22, %v726_v35  ;;  %v732_v48 = vld [vmem:[#allocation8 + $0xb8] sm:$0xff]  ;;  %v725_v61 = vld [vmem:[#allocation8 + $0x80] sm:$0xff] }
  0xc1   :  { %8582 = vst [vmem:[#allocation81_spill] sm:$0xff] %v7262_v12  ;;  %8585 = vst [vmem:[#allocation84_spill] sm:$0xff] %v7272_v6  ;;  %v729_v42 = vld [vmem:[#allocation8 + $0xa0] sm:$0xff] }
  0xc2   :  { %902 = vmatmul.mubr.f32.vlgmr.msra.gmra.mrb[16].mxu0 %v8581_v5  ;;  %973 = vmatmul.mubr.f32.vlgmr.msra.gmra.mrb[16].mxu1 %v8581_v5  ;;  %8584 = vst [vmem:[#allocation83_spill] sm:$0xff] %v7270_v32  ;;  %8587 = vst [vmem:[#allocation86_spill] sm:$0xff] %v7282_v11  ;;  %v7286_v52 = vpack.c.bf16 %v729_v42, %v725_v61  ;;  %v733_v22 = vld [vmem:[#allocation8 + $0xc0] sm:$0xff] }
  0xc3   :  { %4942 = vmatpush1.bf16.msra.mxu0 %v7258_v0  ;;  %4974 = vmatpush1.bf16.msra.mxu1 %v7262_v12  ;;  %v7277_v0 = vpack.c.bf16 %v723_v47, %v719_v10  ;;  %v728_v12 = vld [vmem:[#allocation8 + $0x98] sm:$0xff]  ;;  %v727_v47 = vld [vmem:[#allocation8 + $0x90] sm:$0xff] }
  0xc4   :  { %1043 = vmatprep.mubr.f32.mxu0 %v8581_v5  ;;  %1114 = vmatprep.mubr.f32.mxu1 %v8581_v5  ;;  %v7284_v51 = vpack.c.bf16 %v732_v48, %v728_v12  ;;  %8589 = vst [vmem:[#allocation88_spill] sm:$0xff] %v7286_v52  ;;  %v731_v10 = vld [vmem:[#allocation8 + $0xb0] sm:$0xff]  ;;  %v740_v12 = vld [vmem:[#allocation8 + $0xf8] sm:$0xff]  ;;  %v737_v48 = vld [vmem:[#allocation8 + $0xe0] sm:$0xff] }
  0xc5   :  { %4944 = vmatprep.subr.bf16.mxu0 %v7268_v31  ;;  %8586 = vst [vmem:[#allocation85_spill] sm:$0xff] %v7277_v0  ;;  %4976 = vmatprep.subr.bf16.mxu1 %v7270_v32  ;;  %v7289_v32 = vpack.c.bf16 %v731_v10, %v727_v47  ;;  %v738_v31 = vld [vmem:[#allocation8 + $0xe8] sm:$0xff]  ;;  %v7298_v42 = vpack.c.bf16 %v737_v48, %v733_v22  ;;  %v735_v47 = vld [vmem:[#allocation8 + $0xd0] sm:$0xff] }
  0xc6   :  { %8588 = vst [vmem:[#allocation87_spill] sm:$0xff] %v7284_v51  ;;  %v739_v10 = vld [vmem:[#allocation8 + $0xf0] sm:$0xff] }
  0xc7   :  { %4946 = vmatpush1.bf16.msra.mxu0 %v7272_v6  ;;  %4978 = vmatpush1.bf16.msra.mxu1 %v7277_v0  ;;  %8590 = vst [vmem:[#allocation89_spill] sm:$0xff] %v7289_v32  ;;  %v734_v6 = vld [vmem:[#allocation8 + $0xc8] sm:$0xff]  ;;  %v736_v0 = vld [vmem:[#allocation8 + $0xd8] sm:$0xff]  ;;  %8593 = vst [vmem:[#allocation92_spill] sm:$0xff] %v7298_v42 }
  0xc8   :  { %4948 = vmatprep.subr.bf16.mxu0 %v7282_v11  ;;  %4980 = vmatprep.subr.bf16.mxu1 %v7284_v51  ;;  %v7294_v35 = vpack.c.bf16 %v738_v31, %v734_v6  ;;  %v7296_v61 = vpack.c.bf16 %v740_v12, %v736_v0  ;;  %v7301_v51 = vpack.c.bf16 %v739_v10, %v735_v47  ;;  %v746_v11 = vld [vmem:[#allocation8 + $0x128] sm:$0xff]  ;;  %v748_v0 = vld [vmem:[#allocation8 + $0x138] sm:$0xff]  ;;  %v741_v6 = vld [vmem:[#allocation8 + $0x100] sm:$0xff] }
  0xc9   :  { %v745_v12 = vld [vmem:[#allocation8 + $0x120] sm:$0xff]  ;;  %v743_v47 = vld [vmem:[#allocation8 + $0x110] sm:$0xff] }
  0xca   :  { %8591 = vst [vmem:[#allocation90_spill] sm:$0xff] %v7294_v35  ;;  %8592 = vst [vmem:[#allocation91_spill] sm:$0xff] %v7296_v61  ;;  %v7310_v48 = vpack.c.bf16 %v745_v12, %v741_v6  ;;  %v747_v10 = vld [vmem:[#allocation8 + $0x130] sm:$0xff] }
  0xcb   :  { %4950 = vmatpush1.bf16.msra.mxu0 %v7286_v52  ;;  %4982 = vmatpush1.bf16.msra.mxu1 %v7289_v32  ;;  %8594 = vst [vmem:[#allocation93_spill] sm:$0xff] %v7301_v51  ;;  %v742_v52 = vld [vmem:[#allocation8 + $0x108] sm:$0xff]  ;;  %v744_v32 = vld [vmem:[#allocation8 + $0x118] sm:$0xff] }
  0xcc   :  { %4952 = vmatprep.subr.bf16.mxu0 %v7294_v35  ;;  %4984 = vmatprep.subr.bf16.mxu1 %v7296_v61  ;;  %v7306_v31 = vpack.c.bf16 %v746_v11, %v742_v52  ;;  %v7308_v22 = vpack.c.bf16 %v748_v0, %v744_v32  ;;  %8597 = vst [vmem:[#allocation96_spill] sm:$0xff] %v7310_v48  ;;  %v754_v35 = vld [vmem:[#allocation8 + $0x168] sm:$0xff]  ;;  %v756_v32 = vld [vmem:[#allocation8 + $0x178] sm:$0xff]  ;;  %v749_v11 = vld [vmem:[#allocation8 + $0x140] sm:$0xff] }
  0xcd   :  { %v7313_v61 = vpack.c.bf16 %v747_v10, %v743_v47  ;;  %v753_v0 = vld [vmem:[#allocation8 + $0x160] sm:$0xff]  ;;  %v751_v47 = vld [vmem:[#allocation8 + $0x150] sm:$0xff] }
  0xce   :  { %8595 = vst [vmem:[#allocation94_spill] sm:$0xff] %v7306_v31  ;;  %8596 = vst [vmem:[#allocation95_spill] sm:$0xff] %v7308_v22  ;;  %v7322_v12 = vpack.c.bf16 %v753_v0, %v749_v11  ;;  %v755_v10 = vld [vmem:[#allocation8 + $0x170] sm:$0xff] }
  0xcf   :  { %4954 = vmatpush1.bf16.msra.mxu0 %v7298_v42  ;;  %4986 = vmatpush1.bf16.msra.mxu1 %v7301_v51  ;;  %8598 = vst [vmem:[#allocation97_spill] sm:$0xff] %v7313_v61  ;;  %v750_v42 = vld [vmem:[#allocation8 + $0x148] sm:$0xff]  ;;  %v752_v51 = vld [vmem:[#allocation8 + $0x158] sm:$0xff] }
  0xd0   :  { %4956 = vmatprep.subr.bf16.mxu0 %v7306_v31  ;;  %4988 = vmatprep.subr.bf16.mxu1 %v7308_v22  ;;  %v7318_v52 = vpack.c.bf16 %v754_v35, %v750_v42  ;;  %v7320_v6 = vpack.c.bf16 %v756_v32, %v752_v51  ;;  %8601 = vst [vmem:[#allocation100_spill] sm:$0xff] %v7322_v12  ;;  %v762_v31 = vld [vmem:[#allocation8 + $0x1a8] sm:$0xff]  ;;  %v764_v51 = vld [vmem:[#allocation8 + $0x1b8] sm:$0xff]  ;;  %v757_v42 = vld [vmem:[#allocation8 + $0x180] sm:$0xff] }
  0xd1   :  { %v7325_v22 = vpack.c.bf16 %v755_v10, %v751_v47  ;;  %v761_v32 = vld [vmem:[#allocation8 + $0x1a0] sm:$0xff]  ;;  %v759_v47 = vld [vmem:[#allocation8 + $0x190] sm:$0xff] }
  0xd2   :  { %8599 = vst [vmem:[#allocation98_spill] sm:$0xff] %v7318_v52  ;;  %8600 = vst [vmem:[#allocation99_spill] sm:$0xff] %v7320_v6  ;;  %v7334_v0 = vpack.c.bf16 %v761_v32, %v757_v42  ;;  %v763_v10 = vld [vmem:[#allocation8 + $0x1b0] sm:$0xff] }
  0xd3   :  { %4958 = vmatpush1.bf16.msra.mxu0 %v7310_v48  ;;  %4990 = vmatpush1.bf16.msra.mxu1 %v7313_v61  ;;  %8602 = vst [vmem:[#allocation101_spill] sm:$0xff] %v7325_v22  ;;  %v758_v48 = vld [vmem:[#allocation8 + $0x188] sm:$0xff]  ;;  %v760_v61 = vld [vmem:[#allocation8 + $0x198] sm:$0xff] }
  0xd4   :  { %4960 = vmatprep.subr.bf16.mxu0 %v7318_v52  ;;  %4992 = vmatprep.subr.bf16.mxu1 %v7320_v6  ;;  %v7330_v35 = vpack.c.bf16 %v762_v31, %v758_v48  ;;  %v7332_v11 = vpack.c.bf16 %v764_v51, %v760_v61  ;;  %8605 = vst [vmem:[#allocation104_spill] sm:$0xff] %v7334_v0  ;;  %v770_v52 = vld [vmem:[#allocation8 + $0x1e8] sm:$0xff]  ;;  %v772_v61 = vld [vmem:[#allocation8 + $0x1f8] sm:$0xff]  ;;  %v765_v48 = vld [vmem:[#allocation8 + $0x1c0] sm:$0xff] }
  0xd5   :  { %v7337_v6 = vpack.c.bf16 %v763_v10, %v759_v47  ;;  %v769_v51 = vld [vmem:[#allocation8 + $0x1e0] sm:$0xff]  ;;  %v767_v47 = vld [vmem:[#allocation8 + $0x1d0] sm:$0xff] }
  0xd6   :  { %8603 = vst [vmem:[#allocation102_spill] sm:$0xff] %v7330_v35  ;;  %8604 = vst [vmem:[#allocation103_spill] sm:$0xff] %v7332_v11  ;;  %v7346_v32 = vpack.c.bf16 %v769_v51, %v765_v48  ;;  %v771_v10 = vld [vmem:[#allocation8 + $0x1f0] sm:$0xff] }
  0xd7   :  { %4962 = vmatpush1.bf16.msra.mxu0 %v7322_v12  ;;  %4994 = vmatpush1.bf16.msra.mxu1 %v7325_v22  ;;  %8606 = vst [vmem:[#allocation105_spill] sm:$0xff] %v7337_v6  ;;  %v766_v12 = vld [vmem:[#allocation8 + $0x1c8] sm:$0xff]  ;;  %v768_v22 = vld [vmem:[#allocation8 + $0x1d8] sm:$0xff] }
  0xd8   :  { %4964 = vmatprep.subr.bf16.mxu0 %v7330_v35  ;;  %4996 = vmatprep.subr.bf16.mxu1 %v7332_v11  ;;  %v7342_v31 = vpack.c.bf16 %v770_v52, %v766_v12  ;;  %v7344_v42 = vpack.c.bf16 %v772_v61, %v768_v22  ;;  %8609 = vst [vmem:[#allocation108_spill] sm:$0xff] %v7346_v32  ;;  %v129_v22 = vlaneseq  ;;  %v159_v61 = vld [vmem:[#allocation7] sm:$0xf] }
  0xd9   :  { %v7349_v11 = vpack.c.bf16 %v771_v10, %v767_v47 }
  0xda   :  { %8607 = vst [vmem:[#allocation106_spill] sm:$0xff] %v7342_v31  ;;  %8608 = vst [vmem:[#allocation107_spill] sm:$0xff] %v7344_v42  ;;  %v7356_v52 = vshrl.u32 %v129_v22, 7 }
  0xdb   :  { %4966 = vmatpush1.bf16.msra.mxu0 %v7334_v0  ;;  %4998 = vmatpush1.bf16.msra.mxu1 %v7337_v6  ;;  %8610 = vst [vmem:[#allocation109_spill] sm:$0xff] %v7349_v11 }
  0xdc   :  { %4968 = vmatprep.subr.bf16.mxu0 %v7342_v31  ;;  %5000 = vmatprep.subr.bf16.mxu1 %v7344_v42  ;;  %v8409_v12 = vsub.s32 0, %v7356_v52  ;;  %v8414_v48 = vsub.s32 1, %v7356_v52  ;;  %v8417_v47 = vsub.s32 2, %v7356_v52  ;;  %v8428_v42 = vsub.s32 3, %v7356_v52 }
  0xde   :  { %v7362_v51 = vrot.slane %v159_v61, %v8409_v12  ;;  %v7367_v10 = vrot.slane %v159_v61, %v8414_v48  ;;  %v7379_v35 = vrot.slane %v159_v61, %v8428_v42 }
  0xdf   :  { %4970 = vmatpush1.bf16.msra.mxu0 %v7346_v32  ;;  %5002 = vmatpush1.bf16.msra.mxu1 %v7349_v11  ;;  %v7372_v11 = vrot.slane %v159_v61, %v8417_v47 }
  0xe0   :  { %5004 = vmatprep.subr.bf16.mxu0 %v7001_v9  ;;  %5036 = vmatprep.subr.bf16.mxu1 %v7005_v13  ;;  %8611 = vst [vmem:[#allocation110_spill] sm:$0xff] %v7362_v51  ;;  %8612 = vst [vmem:[#allocation111_spill] sm:$0xff] %v7367_v10 }
  0xe1   :  { %8613 = vst [vmem:[#allocation112_spill] sm:$0xff] %v7379_v35 }
 0x175   :  { %v611_v9 = vpop.f32.mrb[0].mxu0  ;;  %v682_v13 = vpop.f32.mrb[0].mxu1 }
 0x176   :  { %v6395_v22 = vadd.f32 %v611_v9, %v7362_v51  ;;  %v613_v32 = vpop.f32.mrb[1].mxu0  ;;  %v684_v31 = vpop.f32.mrb[1].mxu1  ;;  %v6411_v48 = vadd.f32 %v682_v13, %v7372_v11 }
 0x177   :  { %v6396_v12 = vadd.f32 %v613_v32, %v7367_v10  ;;  %v6412_v9 = vadd.f32 %v684_v31, %v7379_v35 }
 0x178   :  { %v691_v6 = vmul.f32 0.5, %v6395_v22 }
 0x179   :  { %v695_v0 = vmul.f32 0.5, %v6396_v12  ;;  %v700_v47 = vmul.f32 0.5, %v6412_v9  ;;  %v8621_v9 = vld [vmem:[#allocation66_spill] sm:$0xff] }
 0x17a   :  { %6507 = vtanh.f32 %v691_v6 }
 0x17b   :  { %6509 = vtanh.f32 %v695_v0 }
 0x17c   :  { %6511 = vtanh.f32 %v6411_v48 }
 0x17d   :  { %6513 = vtanh.f32 %v700_v47  ;;  %v8619_v47 = vld [vmem:[#allocation61_spill] sm:$0xff] }
 0x184   :  { %v6508_v51 = vpop.eup %6507 }
 0x185   :  { %v6510_v39 = vpop.eup %6509  ;;  %v693_v36 = vmul.f32 0.5, %v6508_v51  ;;  %v8618_v51 = vld [vmem:[#allocation60_spill] sm:$0xff] }
 0x186   :  { %v697_v19 = vmul.f32 0.5, %v6510_v39  ;;  %v6512_v22 = vpop.eup %6511  ;;  %v8616_v39 = vld [vmem:[#allocation58_spill] sm:$0xff] }
 0x187   :  { %v694_v32 = vadd.f32 0.5, %v693_v36  ;;  %v6514_v61 = vpop.eup %6513  ;;  %v8615_v36 = vld [vmem:[#allocation57_spill] sm:$0xff] }
 0x188   :  { %v698_v12 = vadd.f32 0.5, %v697_v19  ;;  %v702_v0 = vmul.f32 0.5, %v6514_v61  ;;  %v8614_v19 = vld [vmem:[#allocation56_spill] sm:$0xff]  ;;  %v8626_v61 = vld [vmem:[#allocation71_spill] sm:$0xff] }
 0x189   :  { %v705_v6 = vmul.f32 %v6512_v22, %v694_v32  ;;  %v8622_v32 = vld [vmem:[#allocation67_spill] sm:$0xff]  ;;  %v8623_v22 = vld [vmem:[#allocation68_spill] sm:$0xff] }
 0x18a   :  { %v704_v10 = vmul.f32 0.0, %v698_v12  ;;  %v703_v48 = vadd.f32 0.5, %v702_v0  ;;  %v8624_v12 = vld [vmem:[#allocation69_spill] sm:$0xff]  ;;  %v8627_v0 = vld [vmem:[#allocation72_spill] sm:$0xff] }
 0x18c   :  { %v7382_v13 = vadd.f32 %v705_v6, %v704_v10  ;;  %v8620_v10 = vld [vmem:[#allocation65_spill] sm:$0xff]  ;;  %v8625_v6 = vld [vmem:[#allocation70_spill] sm:$0xff] }
 0x18e   :  { %6515 = vtanh.f32 %v7382_v13 }
 0x198   :  { %v6516_v42 = vpop.eup %6515 }
 0x199   :  { %v708_v31 = vmul.f32 %v6516_v42, %v703_v48  ;;  %v8617_v42 = vld [vmem:[#allocation59_spill] sm:$0xff]  ;;  %v8628_v48 = vld [vmem:[#allocation73_spill] sm:$0xff] }
 0x19b   :  { %1044 = vmatmul.mubr.f32.vlgmr.msra.gmra.mrb[16].mxu0 %v708_v31  ;;  %1115 = vmatmul.mubr.f32.vlgmr.msra.gmra.mrb[16].mxu1 %v708_v31 }
 0x19c   :  { %5006 = vmatpush1.bf16.msra.mxu0 %v7007_v14  ;;  %5038 = vmatpush1.bf16.msra.mxu1 %v7011_v17 }
 0x19d   :  { %5008 = vmatprep.subr.bf16.mxu0 %v7020_v25  ;;  %5040 = vmatprep.subr.bf16.mxu1 %v7022_v26 }
 0x19e   :  { %1214 = vmatprep.mubr.f32.mxu0 %v8581_v5  ;;  %1285 = vmatprep.mubr.f32.mxu1 %v8581_v5 }
 0x1a0   :  { %5010 = vmatpush1.bf16.msra.mxu0 %v7026_v29  ;;  %5042 = vmatpush1.bf16.msra.mxu1 %v7028_v30 }
 0x1a1   :  { %5012 = vmatprep.subr.bf16.mxu0 %v7039_v40  ;;  %5044 = vmatprep.subr.bf16.mxu1 %v7041_v41 }
 0x1a4   :  { %5014 = vmatpush1.bf16.msra.mxu0 %v7045_v44  ;;  %5046 = vmatpush1.bf16.msra.mxu1 %v7047_v45 }
 0x1a5   :  { %5016 = vmatprep.subr.bf16.mxu0 %v7058_v53  ;;  %5048 = vmatprep.subr.bf16.mxu1 %v7060_v54 }
 0x1a8   :  { %5018 = vmatpush1.bf16.msra.mxu0 %v7064_v57  ;;  %5050 = vmatpush1.bf16.msra.mxu1 %v7066_v58 }
 0x1a9   :  { %5020 = vmatprep.subr.bf16.mxu0 %v7077_v3  ;;  %5052 = vmatprep.subr.bf16.mxu1 %v7079_v4 }
 0x1ac   :  { %5022 = vmatpush1.bf16.msra.mxu0 %v7083_v7  ;;  %5054 = vmatpush1.bf16.msra.mxu1 %v7085_v8 }
 0x1ad   :  { %5024 = vmatprep.subr.bf16.mxu0 %v7096_v20  ;;  %5056 = vmatprep.subr.bf16.mxu1 %v7098_v21 }
 0x1b0   :  { %5026 = vmatpush1.bf16.msra.mxu0 %v7102_v24  ;;  %5058 = vmatpush1.bf16.msra.mxu1 %v7104_v27 }
 0x1b1   :  { %5028 = vmatprep.subr.bf16.mxu0 %v7115_v37  ;;  %5060 = vmatprep.subr.bf16.mxu1 %v7117_v38 }
 0x1b4   :  { %5030 = vmatpush1.bf16.msra.mxu0 %v7121_v43  ;;  %5062 = vmatpush1.bf16.msra.mxu1 %v7123_v46 }
 0x1b5   :  { %5032 = vmatprep.subr.bf16.mxu0 %v7134_v59  ;;  %5064 = vmatprep.subr.bf16.mxu1 %v7136_v60 }
 0x1b8   :  { %5034 = vmatpush1.bf16.msra.mxu0 %v7140_v1  ;;  %5066 = vmatpush1.bf16.msra.mxu1 %v7142_v2 }
 0x1b9   :  { %5068 = vmatprep.subr.bf16.mxu0 %v7148_v15  ;;  %5100 = vmatprep.subr.bf16.mxu1 %v7150_v16 }
 0x1bb   :  { %1215 = vmatmul.mubr.f32.vlgmr.msra.gmra.mrb[2].mxu0 %v708_v31  ;;  %1286 = vmatmul.mubr.f32.vlgmr.msra.gmra.mrb[2].mxu1 %v708_v31  ;;  %v8629_v31 = vld [vmem:[#allocation74_spill] sm:$0xff] }
 0x1bc   :  { %5070 = vmatpush1.bf16.msra.mxu0 %v7156_v23  ;;  %5102 = vmatpush1.bf16.msra.mxu1 %v7158_v28 }
 0x1bd   :  { %5072 = vmatprep.subr.bf16.mxu0 %v7162_v33  ;;  %5104 = vmatprep.subr.bf16.mxu1 %v7164_v34 }
 0x1be   :  { %1378 = vmatprep.mubr.f32.mxu0 %v8581_v5  ;;  %1449 = vmatprep.mubr.f32.mxu1 %v8581_v5 }
 0x1c0   :  { %5074 = vmatpush1.bf16.msra.mxu0 %v7172_v49  ;;  %5106 = vmatpush1.bf16.msra.mxu1 %v7174_v50 }
 0x1c1   :  { %5076 = vmatprep.subr.bf16.mxu0 %v7178_v55  ;;  %5108 = vmatprep.subr.bf16.mxu1 %v7180_v56 }
 0x1c4   :  { %5078 = vmatpush1.bf16.msra.mxu0 %v8614_v19  ;;  %5110 = vmatpush1.bf16.msra.mxu1 %v8615_v36 }
 0x1c5   :  { %5080 = vmatprep.subr.bf16.mxu0 %v8616_v39  ;;  %5112 = vmatprep.subr.bf16.mxu1 %v8617_v42 }
 0x1c8   :  { %5082 = vmatpush1.bf16.msra.mxu0 %v8618_v51  ;;  %5114 = vmatpush1.bf16.msra.mxu1 %v8619_v47 }
 0x1c9   :  { %5084 = vmatprep.subr.bf16.mxu0 %v7204_v62  ;;  %5116 = vmatprep.subr.bf16.mxu1 %v7206_v63 }
 0x1cc   :  { %5086 = vmatpush1.bf16.msra.mxu0 %v7210_v18  ;;  %5118 = vmatpush1.bf16.msra.mxu1 %v8620_v10  ;;  %v8630_v18 = vld [vmem:[#allocation75_spill] sm:$0xff]  ;;  %v8631_v10 = vld [vmem:[#allocation76_spill] sm:$0xff] }
 0x1cd   :  { %5088 = vmatprep.subr.bf16.mxu0 %v8621_v9  ;;  %5120 = vmatprep.subr.bf16.mxu1 %v8622_v32  ;;  %v8632_v9 = vld [vmem:[#allocation77_spill] sm:$0xff]  ;;  %v8633_v32 = vld [vmem:[#allocation78_spill] sm:$0xff] }
 0x1d0   :  { %5090 = vmatpush1.bf16.msra.mxu0 %v8623_v22  ;;  %5122 = vmatpush1.bf16.msra.mxu1 %v8624_v12  ;;  %v8634_v22 = vld [vmem:[#allocation79_spill] sm:$0xff]  ;;  %v127_v12 = vld [vmem:[#allocation11] sm:$0xf] }
 0x1d1   :  { %5092 = vmatprep.subr.bf16.mxu0 %v8625_v6  ;;  %5124 = vmatprep.subr.bf16.mxu1 %v8626_v61  ;;  %v8635_v6 = vsub.s32 0, %v7356_v52 }
 0x1d3   :  { %v7455_v61 = vrot.slane %v127_v12, %v8635_v6 }
 0x1d4   :  { %5094 = vmatpush1.bf16.msra.mxu0 %v8627_v0  ;;  %5126 = vmatpush1.bf16.msra.mxu1 %v8628_v48  ;;  %v8637_v0 = vsub.s32 1, %v7356_v52 }
 0x1d5   :  { %5096 = vmatprep.subr.bf16.mxu0 %v8629_v31  ;;  %5128 = vmatprep.subr.bf16.mxu1 %v8630_v18  ;;  %8636 = vst [vmem:[#allocation113_spill] sm:$0xff] %v7455_v61 }
 0x1d6   :  { %v7459_v48 = vrot.slane %v127_v12, %v8637_v0  ;;  %v8641_v0 = vsub.s32 3, %v7356_v52 }
 0x1d8   :  { %5098 = vmatpush1.bf16.msra.mxu0 %v8631_v10  ;;  %5130 = vmatpush1.bf16.msra.mxu1 %v8632_v9  ;;  %8638 = vst [vmem:[#allocation114_spill] sm:$0xff] %v7459_v48  ;;  %v8639_v10 = vsub.s32 2, %v7356_v52  ;;  %v7470_v42 = vrot.slane %v127_v12, %v8641_v0 }
 0x1d9   :  { %5132 = vmatprep.subr.bf16.mxu0 %v8633_v32  ;;  %5164 = vmatprep.subr.bf16.mxu1 %v8634_v22 }
 0x1da   :  { %v7464_v9 = vrot.slane %v127_v12, %v8639_v10  ;;  %8642 = vst [vmem:[#allocation116_spill] sm:$0xff] %v7470_v42 }
 0x1dc   :  { %8640 = vst [vmem:[#allocation115_spill] sm:$0xff] %v7464_v9 }
 0x26e   :  { %v1045_v31 = vpop.f32.mrb[16].mxu0  ;;  %v1116_v63 = vpop.f32.mrb[16].mxu1 }
 0x26f   :  { %v1121_v18 = vadd.f32 %v1045_v31, %v7455_v61  ;;  %v1047_v32 = vpop.f32.mrb[17].mxu0  ;;  %v1118_v62 = vpop.f32.mrb[17].mxu1  ;;  %v1123_v6 = vadd.f32 %v1116_v63, %v7464_v9 }
 0x270   :  { %v1122_v22 = vadd.f32 %v1047_v32, %v7459_v48  ;;  %v1124_v31 = vadd.f32 %v1118_v62, %v7470_v42  ;;  %v8643_v62 = vld [vmem:[#allocation110_spill] sm:$0xff] }
 0x271   :  { %v1125_v47 = vmul.f32 0.5, %v1121_v18 }
 0x272   :  { %v1129_v51 = vmul.f32 0.5, %v1122_v22  ;;  %v1134_v61 = vmul.f32 0.5, %v1124_v31 }
 0x273   :  { %6517 = vtanh.f32 %v1125_v47 }
 0x274   :  { %6519 = vtanh.f32 %v1129_v51 }
 0x275   :  { %6521 = vtanh.f32 %v1123_v6 }
 0x276   :  { %6523 = vtanh.f32 %v1134_v61 }
 0x27d   :  { %v6518_v10 = vpop.eup %6517 }
 0x27e   :  { %v6520_v39 = vpop.eup %6519  ;;  %v1127_v36 = vmul.f32 0.5, %v6518_v10 }
 0x27f   :  { %v1131_v19 = vmul.f32 0.5, %v6520_v39  ;;  %v6522_v18 = vpop.eup %6521  ;;  %v8644_v39 = vld [vmem:[#allocation111_spill] sm:$0xff] }
 0x280   :  { %v1128_v32 = vadd.f32 0.5, %v1127_v36  ;;  %v6524_v52 = vpop.eup %6523 }
 0x281   :  { %v1132_v22 = vadd.f32 0.5, %v1131_v19  ;;  %v1136_v51 = vmul.f32 0.5, %v6524_v52  ;;  %v8648_v52 = vld [vmem:[#allocation83_spill] sm:$0xff] }
 0x282   :  { %v1139_v47 = vmul.f32 %v6522_v18, %v1128_v32  ;;  %v8645_v18 = vld [vmem:[#allocation80_spill] sm:$0xff] }
 0x283   :  { %v1138_v48 = vmul.f32 0.0, %v1132_v22  ;;  %v1137_v10 = vadd.f32 0.5, %v1136_v51  ;;  %v8646_v22 = vld [vmem:[#allocation81_spill] sm:$0xff] }
 0x285   :  { %v7473_v63 = vadd.f32 %v1139_v47, %v1138_v48  ;;  %v8647_v47 = vld [vmem:[#allocation82_spill] sm:$0xff] }
 0x287   :  { %6525 = vtanh.f32 %v7473_v63 }
 0x28e   :  { %v1216_v12 = vpop.f32.mrb[2].mxu0  ;;  %v1287_v6 = vpop.f32.mrb[2].mxu1 }
 0x28f   :  { %v6397_v0 = vadd.f32 %v1216_v12, %v8643_v62  ;;  %v1218_v31 = vpop.f32.mrb[3].mxu0  ;;  %v1289_v42 = vpop.f32.mrb[3].mxu1  ;;  %v6413_v48 = vadd.f32 %v1287_v6, %v7372_v11  ;;  %v8650_v12 = vld [vmem:[#allocation85_spill] sm:$0xff]  ;;  %v8651_v6 = vld [vmem:[#allocation86_spill] sm:$0xff] }
 0x290   :  { %v6398_v61 = vadd.f32 %v1218_v31, %v8644_v39  ;;  %v6414_v51 = vadd.f32 %v1289_v42, %v7379_v35 }
 0x291   :  { %v6526_v36 = vpop.eup %6525  ;;  %v1296_v9 = vmul.f32 0.5, %v6397_v0  ;;  %v8652_v0 = vld [vmem:[#allocation87_spill] sm:$0xff] }
 0x292   :  { %v1142_v19 = vmul.f32 %v6526_v36, %v1137_v10  ;;  %v1300_v32 = vmul.f32 0.5, %v6398_v61  ;;  %v1305_v31 = vmul.f32 0.5, %v6414_v51  ;;  %v8653_v61 = vld [vmem:[#allocation88_spill] sm:$0xff]  ;;  %v8654_v36 = vld [vmem:[#allocation89_spill] sm:$0xff] }
 0x293   :  { %6527 = vtanh.f32 %v1296_v9  ;;  %v8649_v9 = vld [vmem:[#allocation84_spill] sm:$0xff] }
 0x294   :  { %6529 = vtanh.f32 %v1300_v32  ;;  %1379 = vmatmul.mubr.f32.vlgmr.msra.gmra.mrb[18].mxu0 %v1142_v19  ;;  %1450 = vmatmul.mubr.f32.vlgmr.msra.gmra.mrb[18].mxu1 %v1142_v19  ;;  %v8655_v32 = vld [vmem:[#allocation90_spill] sm:$0xff] }
 0x295   :  { %5134 = vmatpush1.bf16.msra.mxu0 %v8645_v18  ;;  %5166 = vmatpush1.bf16.msra.mxu1 %v8646_v22  ;;  %6531 = vtanh.f32 %v6413_v48  ;;  %v8656_v48 = vld [vmem:[#allocation91_spill] sm:$0xff] }
 0x296   :  { %5136 = vmatprep.subr.bf16.mxu0 %v8647_v47  ;;  %5168 = vmatprep.subr.bf16.mxu1 %v8648_v52  ;;  %6533 = vtanh.f32 %v1305_v31  ;;  %v8659_v47 = vld [vmem:[#allocation94_spill] sm:$0xff] }
 0x297   :  { %1520 = vmatprep.mubr.f32.mxu0 %v8581_v5  ;;  %1591 = vmatprep.mubr.f32.mxu1 %v8581_v5  ;;  %v8664_v31 = vld [vmem:[#allocation98_spill] sm:$0xff] }
 0x299   :  { %5138 = vmatpush1.bf16.msra.mxu0 %v8649_v9  ;;  %5170 = vmatpush1.bf16.msra.mxu1 %v8650_v12 }
 0x29a   :  { %5140 = vmatprep.subr.bf16.mxu0 %v8651_v6  ;;  %5172 = vmatprep.subr.bf16.mxu1 %v8652_v0  ;;  %v8657_v6 = vld [vmem:[#allocation92_spill] sm:$0xff]  ;;  %v8658_v0 = vld [vmem:[#allocation93_spill] sm:$0xff] }
 0x29d   :  { %v6528_v10 = vpop.eup %6527  ;;  %5142 = vmatpush1.bf16.msra.mxu0 %v8653_v61  ;;  %5174 = vmatpush1.bf16.msra.mxu1 %v8654_v36  ;;  %v8660_v61 = vld [vmem:[#allocation95_spill] sm:$0xff] }
 0x29e   :  { %v6530_v19 = vpop.eup %6529  ;;  %v1298_v42 = vmul.f32 0.5, %v6528_v10  ;;  %5144 = vmatprep.subr.bf16.mxu0 %v8655_v32  ;;  %5176 = vmatprep.subr.bf16.mxu1 %v8656_v48  ;;  %v8662_v32 = vld [vmem:[#allocation96_spill] sm:$0xff] }
 0x29f   :  { %v1302_v35 = vmul.f32 0.5, %v6530_v19  ;;  %v6532_v12 = vpop.eup %6531  ;;  %v8663_v19 = vld [vmem:[#allocation97_spill] sm:$0xff] }
 0x2a0   :  { %v1299_v9 = vadd.f32 0.5, %v1298_v42  ;;  %v6534_v42 = vpop.eup %6533 }
 0x2a1   :  { %v1303_v52 = vadd.f32 0.5, %v1302_v35  ;;  %5146 = vmatpush1.bf16.msra.mxu0 %v8657_v6  ;;  %5178 = vmatpush1.bf16.msra.mxu1 %v8658_v0  ;;  %v8665_v35 = vld [vmem:[#allocation99_spill] sm:$0xff] }
 0x2a2   :  { %v1310_v51 = vmul.f32 %v6532_v12, %v1299_v9  ;;  %5148 = vmatprep.subr.bf16.mxu0 %v8659_v47  ;;  %5180 = vmatprep.subr.bf16.mxu1 %v8660_v61  ;;  %v8666_v9 = vld [vmem:[#allocation100_spill] sm:$0xff]  ;;  %v8667_v12 = vld [vmem:[#allocation101_spill] sm:$0xff]  ;;  %v8668_v61 = vld [vmem:[#allocation102_spill] sm:$0xff] }
 0x2a3   :  { %v1309_v10 = vmul.f32 %v1303_v52, %v7382_v13  ;;  %v8669_v13 = vld [vmem:[#allocation103_spill] sm:$0xff]  ;;  %v1307_v52 = vmul.f32 0.5, %v6534_v42  ;;  %v8676_v47 = vld [vmem:[#allocation18_spill] sm:$0xff] }
 0x2a4   :  { %v8680_v42 = vld [vmem:[#allocation58_spill] sm:$0xff] }
 0x2a5   :  { %v7499_v36 = vadd.f32 %v1310_v51, %v1309_v10  ;;  %5150 = vmatpush1.bf16.msra.mxu0 %v8662_v32  ;;  %5182 = vmatpush1.bf16.msra.mxu1 %v8663_v19  ;;  %v8670_v51 = vld [vmem:[#allocation104_spill] sm:$0xff]  ;;  %v8671_v10 = vld [vmem:[#allocation105_spill] sm:$0xff]  ;;  %v8672_v19 = vld [vmem:[#allocation106_spill] sm:$0xff] }
 0x2a6   :  { %5152 = vmatprep.subr.bf16.mxu0 %v8664_v31  ;;  %5184 = vmatprep.subr.bf16.mxu1 %v8665_v35  ;;  %v8673_v31 = vld [vmem:[#allocation107_spill] sm:$0xff]  ;;  %v1308_v35 = vadd.f32 0.5, %v1307_v52  ;;  %v8682_v52 = vld [vmem:[#allocation60_spill] sm:$0xff] }
 0x2a7   :  { %8661 = vst [vmem:[#allocation110_spill] sm:$0xff] %v7499_v36  ;;  %6535 = vtanh.f32 %v7499_v36  ;;  %v8674_v36 = vld [vmem:[#allocation108_spill] sm:$0xff] }
 0x2a9   :  { %5154 = vmatpush1.bf16.msra.mxu0 %v8666_v9  ;;  %5186 = vmatpush1.bf16.msra.mxu1 %v8667_v12  ;;  %v8675_v9 = vld [vmem:[#allocation109_spill] sm:$0xff] }
 0x2aa   :  { %5156 = vmatprep.subr.bf16.mxu0 %v8668_v61  ;;  %5188 = vmatprep.subr.bf16.mxu1 %v8669_v13  ;;  %v8677_v61 = vld [vmem:[#allocation19_spill] sm:$0xff] }
 0x2ad   :  { %5158 = vmatpush1.bf16.msra.mxu0 %v8670_v51  ;;  %5190 = vmatpush1.bf16.msra.mxu1 %v8671_v10 }
 0x2ae   :  { %5160 = vmatprep.subr.bf16.mxu0 %v8672_v19  ;;  %5192 = vmatprep.subr.bf16.mxu1 %v8673_v31 }
 0x2b1   :  { %v6536_v32 = vpop.eup %6535  ;;  %5162 = vmatpush1.bf16.msra.mxu0 %v8674_v36  ;;  %5194 = vmatpush1.bf16.msra.mxu1 %v8675_v9 }
 0x2b2   :  { %v1313_v12 = vmul.f32 %v6536_v32, %v1308_v35  ;;  %5196 = vmatprep.subr.bf16.mxu0 %v8676_v47  ;;  %5228 = vmatprep.subr.bf16.mxu1 %v8677_v61  ;;  %v8678_v32 = vld [vmem:[#allocation56_spill] sm:$0xff]  ;;  %v8679_v35 = vld [vmem:[#allocation57_spill] sm:$0xff] }
 0x2b4   :  { %1521 = vmatmul.mubr.f32.vlgmr.msra.gmra.mrb[18].mxu0 %v1313_v12  ;;  %1592 = vmatmul.mubr.f32.vlgmr.msra.gmra.mrb[18].mxu1 %v1313_v12 }
 0x2b5   :  { %5198 = vmatpush1.bf16.msra.mxu0 %v7007_v14  ;;  %5230 = vmatpush1.bf16.msra.mxu1 %v7011_v17 }
 0x2b6   :  { %5200 = vmatprep.subr.bf16.mxu0 %v7020_v25  ;;  %5232 = vmatprep.subr.bf16.mxu1 %v7022_v26 }
 0x2b7   :  { %1691 = vmatprep.mubr.f32.mxu0 %v8581_v5  ;;  %1762 = vmatprep.mubr.f32.mxu1 %v8581_v5 }
 0x2b9   :  { %5202 = vmatpush1.bf16.msra.mxu0 %v7026_v29  ;;  %5234 = vmatpush1.bf16.msra.mxu1 %v7028_v30 }
 0x2ba   :  { %5204 = vmatprep.subr.bf16.mxu0 %v7039_v40  ;;  %5236 = vmatprep.subr.bf16.mxu1 %v7041_v41 }
 0x2bd   :  { %5206 = vmatpush1.bf16.msra.mxu0 %v7045_v44  ;;  %5238 = vmatpush1.bf16.msra.mxu1 %v7047_v45 }
 0x2be   :  { %5208 = vmatprep.subr.bf16.mxu0 %v7058_v53  ;;  %5240 = vmatprep.subr.bf16.mxu1 %v7060_v54 }
 0x2c1   :  { %5210 = vmatpush1.bf16.msra.mxu0 %v7064_v57  ;;  %5242 = vmatpush1.bf16.msra.mxu1 %v7066_v58 }
 0x2c2   :  { %5212 = vmatprep.subr.bf16.mxu0 %v7077_v3  ;;  %5244 = vmatprep.subr.bf16.mxu1 %v7079_v4 }
 0x2c5   :  { %5214 = vmatpush1.bf16.msra.mxu0 %v7083_v7  ;;  %5246 = vmatpush1.bf16.msra.mxu1 %v7085_v8 }
 0x2c6   :  { %5216 = vmatprep.subr.bf16.mxu0 %v7096_v20  ;;  %5248 = vmatprep.subr.bf16.mxu1 %v7098_v21 }
 0x2c9   :  { %5218 = vmatpush1.bf16.msra.mxu0 %v7102_v24  ;;  %5250 = vmatpush1.bf16.msra.mxu1 %v7104_v27 }
 0x2ca   :  { %5220 = vmatprep.subr.bf16.mxu0 %v7115_v37  ;;  %5252 = vmatprep.subr.bf16.mxu1 %v7117_v38 }
 0x2cd   :  { %5222 = vmatpush1.bf16.msra.mxu0 %v7121_v43  ;;  %5254 = vmatpush1.bf16.msra.mxu1 %v7123_v46 }
 0x2ce   :  { %5224 = vmatprep.subr.bf16.mxu0 %v7134_v59  ;;  %5256 = vmatprep.subr.bf16.mxu1 %v7136_v60 }
 0x2d1   :  { %5226 = vmatpush1.bf16.msra.mxu0 %v7140_v1  ;;  %5258 = vmatpush1.bf16.msra.mxu1 %v7142_v2 }
 0x2d2   :  { %5260 = vmatprep.subr.bf16.mxu0 %v7148_v15  ;;  %5292 = vmatprep.subr.bf16.mxu1 %v7150_v16  ;;  %v8703_v16 = vld [vmem:[#allocation114_spill] sm:$0xff] }
 0x2d4   :  { %1692 = vmatmul.mubr.f32.vlgmr.msra.gmra.mrb[4].mxu0 %v1313_v12  ;;  %1763 = vmatmul.mubr.f32.vlgmr.msra.gmra.mrb[4].mxu1 %v1313_v12  ;;  %v8681_v12 = vld [vmem:[#allocation59_spill] sm:$0xff] }
 0x2d5   :  { %5262 = vmatpush1.bf16.msra.mxu0 %v7156_v23  ;;  %5294 = vmatpush1.bf16.msra.mxu1 %v7158_v28  ;;  %v8702_v28 = vld [vmem:[#allocation113_spill] sm:$0xff] }
 0x2d6   :  { %5264 = vmatprep.subr.bf16.mxu0 %v7162_v33  ;;  %5296 = vmatprep.subr.bf16.mxu1 %v7164_v34  ;;  %v8683_v34 = vld [vmem:[#allocation61_spill] sm:$0xff]  ;;  %v8684_v33 = vld [vmem:[#allocation62_spill] sm:$0xff] }
 0x2d7   :  { %1855 = vmatprep.mubr.f32.mxu0 %v8581_v5  ;;  %1926 = vmatprep.mubr.f32.mxu1 %v8581_v5 }
 0x2d9   :  { %5266 = vmatpush1.bf16.msra.mxu0 %v7172_v49  ;;  %5298 = vmatpush1.bf16.msra.mxu1 %v7174_v50  ;;  %v8685_v49 = vld [vmem:[#allocation63_spill] sm:$0xff]  ;;  %v8686_v50 = vld [vmem:[#allocation64_spill] sm:$0xff] }
 0x2da   :  { %5268 = vmatprep.subr.bf16.mxu0 %v7178_v55  ;;  %5300 = vmatprep.subr.bf16.mxu1 %v7180_v56  ;;  %v8687_v55 = vld [vmem:[#allocation65_spill] sm:$0xff]  ;;  %v8688_v56 = vld [vmem:[#allocation66_spill] sm:$0xff] }
 0x2dd   :  { %5270 = vmatpush1.bf16.msra.mxu0 %v8678_v32  ;;  %5302 = vmatpush1.bf16.msra.mxu1 %v8679_v35  ;;  %v8689_v32 = vld [vmem:[#allocation67_spill] sm:$0xff]  ;;  %v8690_v35 = vld [vmem:[#allocation68_spill] sm:$0xff] }
 0x2de   :  { %5272 = vmatprep.subr.bf16.mxu0 %v8680_v42  ;;  %5304 = vmatprep.subr.bf16.mxu1 %v8681_v12  ;;  %v8691_v42 = vld [vmem:[#allocation69_spill] sm:$0xff]  ;;  %v8692_v12 = vld [vmem:[#allocation70_spill] sm:$0xff] }
 0x2e1   :  { %5274 = vmatpush1.bf16.msra.mxu0 %v8682_v52  ;;  %5306 = vmatpush1.bf16.msra.mxu1 %v8683_v34  ;;  %v8693_v52 = vld [vmem:[#allocation71_spill] sm:$0xff]  ;;  %v8694_v34 = vld [vmem:[#allocation72_spill] sm:$0xff] }
 0x2e2   :  { %5276 = vmatprep.subr.bf16.mxu0 %v8684_v33  ;;  %5308 = vmatprep.subr.bf16.mxu1 %v8685_v49  ;;  %v8695_v33 = vld [vmem:[#allocation73_spill] sm:$0xff]  ;;  %v8696_v49 = vld [vmem:[#allocation74_spill] sm:$0xff] }
 0x2e5   :  { %5278 = vmatpush1.bf16.msra.mxu0 %v8686_v50  ;;  %5310 = vmatpush1.bf16.msra.mxu1 %v8687_v55  ;;  %v8697_v50 = vld [vmem:[#allocation75_spill] sm:$0xff]  ;;  %v8698_v55 = vld [vmem:[#allocation76_spill] sm:$0xff] }
 0x2e6   :  { %5280 = vmatprep.subr.bf16.mxu0 %v8688_v56  ;;  %5312 = vmatprep.subr.bf16.mxu1 %v8689_v32  ;;  %v8699_v56 = vld [vmem:[#allocation77_spill] sm:$0xff]  ;;  %v8700_v32 = vld [vmem:[#allocation78_spill] sm:$0xff] }
 0x2e9   :  { %5282 = vmatpush1.bf16.msra.mxu0 %v8690_v35  ;;  %5314 = vmatpush1.bf16.msra.mxu1 %v8691_v42  ;;  %v8701_v35 = vld [vmem:[#allocation79_spill] sm:$0xff] }
 0x2ea   :  { %5284 = vmatprep.subr.bf16.mxu0 %v8692_v12  ;;  %5316 = vmatprep.subr.bf16.mxu1 %v8693_v52 }
 0x2ed   :  { %5286 = vmatpush1.bf16.msra.mxu0 %v8694_v34  ;;  %5318 = vmatpush1.bf16.msra.mxu1 %v8695_v33 }
 0x2ee   :  { %5288 = vmatprep.subr.bf16.mxu0 %v8696_v49  ;;  %5320 = vmatprep.subr.bf16.mxu1 %v8697_v50  ;;  %v8704_v50 = vld [vmem:[#allocation115_spill] sm:$0xff] }
 0x2f1   :  { %5290 = vmatpush1.bf16.msra.mxu0 %v8698_v55  ;;  %5322 = vmatpush1.bf16.msra.mxu1 %v8699_v56  ;;  %v8705_v56 = vld [vmem:[#allocation116_spill] sm:$0xff] }
 0x2f2   :  { %5324 = vmatprep.subr.bf16.mxu0 %v8700_v32  ;;  %5356 = vmatprep.subr.bf16.mxu1 %v8701_v35 }
 0x387   :  { %v1522_v42 = vpop.f32.mrb[18].mxu0  ;;  %v1593_v12 = vpop.f32.mrb[18].mxu1 }
 0x388   :  { %v1598_v52 = vadd.f32 %v1522_v42, %v8702_v28  ;;  %v1524_v23 = vpop.f32.mrb[19].mxu0  ;;  %v1595_v34 = vpop.f32.mrb[19].mxu1  ;;  %v1600_v2 = vadd.f32 %v1593_v12, %v8704_v50 }
 0x389   :  { %v1599_v33 = vadd.f32 %v1524_v23, %v8703_v16  ;;  %v1601_v55 = vadd.f32 %v1595_v34, %v8705_v56 }
 0x38a   :  { %v1602_v15 = vmul.f32 0.5, %v1598_v52 }
 0x38b   :  { %v1606_v49 = vmul.f32 0.5, %v1599_v33  ;;  %v1611_v32 = vmul.f32 0.5, %v1601_v55 }
 0x38c   :  { %6537 = vtanh.f32 %v1602_v15 }
 0x38d   :  { %6539 = vtanh.f32 %v1606_v49 }
 0x38e   :  { %6541 = vtanh.f32 %v1600_v2 }
 0x38f   :  { %6543 = vtanh.f32 %v1611_v32 }
 0x396   :  { %v6538_v1 = vpop.eup %6537 }
 0x397   :  { %v6540_v35 = vpop.eup %6539  ;;  %v1604_v60 = vmul.f32 0.5, %v6538_v1 }
 0x398   :  { %v1608_v59 = vmul.f32 0.5, %v6540_v35  ;;  %v6542_v28 = vpop.eup %6541 }
 0x399   :  { %v1605_v42 = vadd.f32 0.5, %v1604_v60  ;;  %v6544_v15 = vpop.eup %6543 }
 0x39a   :  { %v1609_v46 = vadd.f32 0.5, %v1608_v59  ;;  %v1613_v2 = vmul.f32 0.5, %v6544_v15  ;;  %v8709_v15 = vld [vmem:[#allocation84_spill] sm:$0xff] }
 0x39b   :  { %v1616_v43 = vmul.f32 %v6542_v28, %v1605_v42  ;;  %v8708_v42 = vld [vmem:[#allocation112_spill] sm:$0xff] }
 0x39c   :  { %v1615_v23 = vmul.f32 %v1609_v46, %v7473_v63  ;;  %v1614_v35 = vadd.f32 0.5, %v1613_v2  ;;  %v8706_v46 = vld [vmem:[#allocation82_spill] sm:$0xff]  ;;  %v8707_v63 = vld [vmem:[#allocation83_spill] sm:$0xff]  ;;  %v8710_v2 = vld [vmem:[#allocation85_spill] sm:$0xff] }
 0x39e   :  { %v7591_v33 = vadd.f32 %v1616_v43, %v1615_v23 }
 0x3a0   :  { %6545 = vtanh.f32 %v7591_v33 }
 0x3a7   :  { %v1693_v49 = vpop.f32.mrb[4].mxu0  ;;  %v1764_v34 = vpop.f32.mrb[4].mxu1 }
 0x3a8   :  { %v6399_v55 = vadd.f32 %v1693_v49, %v8643_v62  ;;  %v1695_v12 = vpop.f32.mrb[5].mxu0  ;;  %v1766_v1 = vpop.f32.mrb[5].mxu1  ;;  %v6415_v43 = vadd.f32 %v1764_v34, %v7372_v11  ;;  %v8711_v49 = vld [vmem:[#allocation86_spill] sm:$0xff]  ;;  %v8712_v34 = vld [vmem:[#allocation87_spill] sm:$0xff] }
 0x3a9   :  { %v6400_v60 = vadd.f32 %v1695_v12, %v8644_v39  ;;  %v6416_v23 = vadd.f32 %v1766_v1, %v8708_v42 }
 0x3aa   :  { %v6546_v32 = vpop.eup %6545  ;;  %v1773_v59 = vmul.f32 0.5, %v6399_v55 }
 0x3ab   :  { %v1619_v28 = vmul.f32 %v6546_v32, %v1614_v35  ;;  %v1777_v52 = vmul.f32 0.5, %v6400_v60  ;;  %v1782_v55 = vmul.f32 0.5, %v6416_v23  ;;  %v8713_v35 = vld [vmem:[#allocation88_spill] sm:$0xff]  ;;  %v8714_v60 = vld [vmem:[#allocation89_spill] sm:$0xff] }
 0x3ac   :  { %6547 = vtanh.f32 %v1773_v59  ;;  %v8715_v59 = vld [vmem:[#allocation90_spill] sm:$0xff] }
 0x3ad   :  { %6549 = vtanh.f32 %v1777_v52  ;;  %1856 = vmatmul.mubr.f32.vlgmr.msra.gmra.mrb[20].mxu0 %v1619_v28  ;;  %1927 = vmatmul.mubr.f32.vlgmr.msra.gmra.mrb[20].mxu1 %v1619_v28 }
 0x3ae   :  { %5326 = vmatpush1.bf16.msra.mxu0 %v8645_v18  ;;  %5358 = vmatpush1.bf16.msra.mxu1 %v8646_v22  ;;  %6551 = vtanh.f32 %v6415_v43 }
 0x3af   :  { %5328 = vmatprep.subr.bf16.mxu0 %v8706_v46  ;;  %5360 = vmatprep.subr.bf16.mxu1 %v8707_v63  ;;  %6553 = vtanh.f32 %v1782_v55  ;;  %v8721_v55 = vld [vmem:[#allocation98_spill] sm:$0xff] }
 0x3b0   :  { %1997 = vmatprep.mubr.f32.mxu0 %v8581_v5  ;;  %2068 = vmatprep.mubr.f32.mxu1 %v8581_v5 }
 0x3b2   :  { %5330 = vmatpush1.bf16.msra.mxu0 %v8709_v15  ;;  %5362 = vmatpush1.bf16.msra.mxu1 %v8710_v2 }
 0x3b3   :  { %5332 = vmatprep.subr.bf16.mxu0 %v8711_v49  ;;  %5364 = vmatprep.subr.bf16.mxu1 %v8712_v34  ;;  %v8716_v34 = vld [vmem:[#allocation94_spill] sm:$0xff] }
 0x3b6   :  { %v6548_v12 = vpop.eup %6547  ;;  %5334 = vmatpush1.bf16.msra.mxu0 %v8713_v35  ;;  %5366 = vmatpush1.bf16.msra.mxu1 %v8714_v60  ;;  %v8717_v35 = vld [vmem:[#allocation95_spill] sm:$0xff]  ;;  %v8718_v60 = vld [vmem:[#allocation110_spill] sm:$0xff] }
 0x3b7   :  { %v6550_v32 = vpop.eup %6549  ;;  %v1775_v1 = vmul.f32 0.5, %v6548_v12  ;;  %5336 = vmatprep.subr.bf16.mxu0 %v8715_v59  ;;  %5368 = vmatprep.subr.bf16.mxu1 %v8656_v48  ;;  %v8719_v59 = vld [vmem:[#allocation96_spill] sm:$0xff] }
 0x3b8   :  { %v1779_v28 = vmul.f32 0.5, %v6550_v32  ;;  %v6552_v43 = vpop.eup %6551  ;;  %v8720_v32 = vld [vmem:[#allocation97_spill] sm:$0xff] }
 0x3b9   :  { %v1776_v52 = vadd.f32 0.5, %v1775_v1  ;;  %v8722_v1 = vld [vmem:[#allocation99_spill] sm:$0xff] }
 0x3ba   :  { %v1780_v2 = vadd.f32 0.5, %v1779_v28  ;;  %5338 = vmatpush1.bf16.msra.mxu0 %v8657_v6  ;;  %5370 = vmatpush1.bf16.msra.mxu1 %v8658_v0  ;;  %v6554_v28 = vpop.eup %6553 }
 0x3bb   :  { %v1787_v23 = vmul.f32 %v6552_v43, %v1776_v52  ;;  %5340 = vmatprep.subr.bf16.mxu0 %v8716_v34  ;;  %5372 = vmatprep.subr.bf16.mxu1 %v8717_v35  ;;  %v8723_v52 = vld [vmem:[#allocation100_spill] sm:$0xff]  ;;  %v8724_v43 = vld [vmem:[#allocation101_spill] sm:$0xff]  ;;  %v8725_v35 = vld [vmem:[#allocation102_spill] sm:$0xff] }
 0x3bc   :  { %v1786_v12 = vmul.f32 %v1780_v2, %v8718_v60  ;;  %v1784_v2 = vmul.f32 0.5, %v6554_v28  ;;  %v8726_v28 = vld [vmem:[#allocation40_spill] sm:$0xff] }
 0x3be   :  { %v7617_v49 = vadd.f32 %v1787_v23, %v1786_v12  ;;  %5342 = vmatpush1.bf16.msra.mxu0 %v8719_v59  ;;  %5374 = vmatpush1.bf16.msra.mxu1 %v8720_v32  ;;  %v1785_v60 = vadd.f32 0.5, %v1784_v2  ;;  %v8727_v2 = vld [vmem:[#allocation41_spill] sm:$0xff] }
 0x3bf   :  { %5344 = vmatprep.subr.bf16.mxu0 %v8721_v55  ;;  %5376 = vmatprep.subr.bf16.mxu1 %v8722_v1 }
 0x3c0   :  { %6555 = vtanh.f32 %v7617_v49 }
 0x3c2   :  { %5346 = vmatpush1.bf16.msra.mxu0 %v8723_v52  ;;  %5378 = vmatpush1.bf16.msra.mxu1 %v8724_v43 }
 0x3c3   :  { %5348 = vmatprep.subr.bf16.mxu0 %v8725_v35  ;;  %5380 = vmatprep.subr.bf16.mxu1 %v8669_v13 }
 0x3c6   :  { %5350 = vmatpush1.bf16.msra.mxu0 %v8670_v51  ;;  %5382 = vmatpush1.bf16.msra.mxu1 %v8671_v10 }
 0x3c7   :  { %5352 = vmatprep.subr.bf16.mxu0 %v8672_v19  ;;  %5384 = vmatprep.subr.bf16.mxu1 %v8673_v31 }
 0x3ca   :  { %v6556_v23 = vpop.eup %6555  ;;  %5354 = vmatpush1.bf16.msra.mxu0 %v8674_v36  ;;  %5386 = vmatpush1.bf16.msra.mxu1 %v8675_v9 }
 0x3cb   :  { %v1790_v12 = vmul.f32 %v6556_v23, %v1785_v60  ;;  %5388 = vmatprep.subr.bf16.mxu0 %v8676_v47  ;;  %5420 = vmatprep.subr.bf16.mxu1 %v8677_v61  ;;  %v8728_v60 = vld [vmem:[#allocation42_spill] sm:$0xff]  ;;  %v8729_v23 = vld [vmem:[#allocation43_spill] sm:$0xff] }
 0x3cd   :  { %1998 = vmatmul.mubr.f32.vlgmr.msra.gmra.mrb[20].mxu0 %v1790_v12  ;;  %2069 = vmatmul.mubr.f32.vlgmr.msra.gmra.mrb[20].mxu1 %v1790_v12 }
 0x3ce   :  { %5390 = vmatpush1.bf16.msra.mxu0 %v7007_v14  ;;  %5422 = vmatpush1.bf16.msra.mxu1 %v7011_v17 }
 0x3cf   :  { %5392 = vmatprep.subr.bf16.mxu0 %v7020_v25  ;;  %5424 = vmatprep.subr.bf16.mxu1 %v7022_v26 }
 0x3d0   :  { %2168 = vmatprep.mubr.f32.mxu0 %v8581_v5  ;;  %2239 = vmatprep.mubr.f32.mxu1 %v8581_v5 }
 0x3d2   :  { %5394 = vmatpush1.bf16.msra.mxu0 %v7026_v29  ;;  %5426 = vmatpush1.bf16.msra.mxu1 %v7028_v30 }
 0x3d3   :  { %5396 = vmatprep.subr.bf16.mxu0 %v7039_v40  ;;  %5428 = vmatprep.subr.bf16.mxu1 %v7041_v41 }
 0x3d6   :  { %5398 = vmatpush1.bf16.msra.mxu0 %v7045_v44  ;;  %5430 = vmatpush1.bf16.msra.mxu1 %v7047_v45 }
 0x3d7   :  { %5400 = vmatprep.subr.bf16.mxu0 %v7058_v53  ;;  %5432 = vmatprep.subr.bf16.mxu1 %v7060_v54 }
 0x3da   :  { %5402 = vmatpush1.bf16.msra.mxu0 %v7064_v57  ;;  %5434 = vmatpush1.bf16.msra.mxu1 %v7066_v58 }
 0x3db   :  { %5404 = vmatprep.subr.bf16.mxu0 %v7077_v3  ;;  %5436 = vmatprep.subr.bf16.mxu1 %v7079_v4 }
 0x3de   :  { %5406 = vmatpush1.bf16.msra.mxu0 %v7083_v7  ;;  %5438 = vmatpush1.bf16.msra.mxu1 %v7085_v8  ;;  %v8730_v8 = vld [vmem:[#allocation44_spill] sm:$0xff] }
 0x3df   :  { %5408 = vmatprep.subr.bf16.mxu0 %v7096_v20  ;;  %5440 = vmatprep.subr.bf16.mxu1 %v7098_v21  ;;  %v8731_v20 = vld [vmem:[#allocation45_spill] sm:$0xff]  ;;  %v8732_v21 = vld [vmem:[#allocation46_spill] sm:$0xff] }
 0x3e2   :  { %5410 = vmatpush1.bf16.msra.mxu0 %v7102_v24  ;;  %5442 = vmatpush1.bf16.msra.mxu1 %v7104_v27  ;;  %v8733_v24 = vld [vmem:[#allocation47_spill] sm:$0xff]  ;;  %v8766_v27 = vld [vmem:[#allocation113_spill] sm:$0xff] }
 0x3e3   :  { %5412 = vmatprep.subr.bf16.mxu0 %v7115_v37  ;;  %5444 = vmatprep.subr.bf16.mxu1 %v7117_v38  ;;  %v8734_v37 = vld [vmem:[#allocation48_spill] sm:$0xff]  ;;  %v8735_v38 = vld [vmem:[#allocation49_spill] sm:$0xff] }
 0x3e6   :  { %5414 = vmatpush1.bf16.msra.mxu0 %v8726_v28  ;;  %5446 = vmatpush1.bf16.msra.mxu1 %v8727_v2  ;;  %v8736_v28 = vld [vmem:[#allocation50_spill] sm:$0xff]  ;;  %v8737_v2 = vld [vmem:[#allocation51_spill] sm:$0xff] }
 0x3e7   :  { %5416 = vmatprep.subr.bf16.mxu0 %v8728_v60  ;;  %5448 = vmatprep.subr.bf16.mxu1 %v8729_v23  ;;  %v8747_v23 = vld [vmem:[#allocation61_spill] sm:$0xff]  ;;  %v8748_v60 = vld [vmem:[#allocation62_spill] sm:$0xff] }
 0x3ea   :  { %5418 = vmatpush1.bf16.msra.mxu0 %v8730_v8  ;;  %5450 = vmatpush1.bf16.msra.mxu1 %v8731_v20  ;;  %v8738_v8 = vld [vmem:[#allocation52_spill] sm:$0xff]  ;;  %v8739_v20 = vld [vmem:[#allocation53_spill] sm:$0xff] }
 0x3eb   :  { %5452 = vmatprep.subr.bf16.mxu0 %v8732_v21  ;;  %5484 = vmatprep.subr.bf16.mxu1 %v8733_v24  ;;  %v8740_v21 = vld [vmem:[#allocation54_spill] sm:$0xff]  ;;  %v8741_v24 = vld [vmem:[#allocation55_spill] sm:$0xff] }
 0x3ed   :  { %2169 = vmatmul.mubr.f32.vlgmr.msra.gmra.mrb[6].mxu0 %v1790_v12  ;;  %2240 = vmatmul.mubr.f32.vlgmr.msra.gmra.mrb[6].mxu1 %v1790_v12  ;;  %v8742_v12 = vld [vmem:[#allocation56_spill] sm:$0xff] }
 0x3ee   :  { %5454 = vmatpush1.bf16.msra.mxu0 %v8734_v37  ;;  %5486 = vmatpush1.bf16.msra.mxu1 %v8735_v38  ;;  %v8743_v37 = vld [vmem:[#allocation57_spill] sm:$0xff]  ;;  %v8744_v38 = vld [vmem:[#allocation58_spill] sm:$0xff] }
 0x3ef   :  { %5456 = vmatprep.subr.bf16.mxu0 %v8736_v28  ;;  %5488 = vmatprep.subr.bf16.mxu1 %v8737_v2  ;;  %v8745_v28 = vld [vmem:[#allocation59_spill] sm:$0xff]  ;;  %v8746_v2 = vld [vmem:[#allocation60_spill] sm:$0xff] }
 0x3f0   :  { %2332 = vmatprep.mubr.f32.mxu0 %v8581_v5  ;;  %2403 = vmatprep.mubr.f32.mxu1 %v8581_v5 }
 0x3f2   :  { %5458 = vmatpush1.bf16.msra.mxu0 %v8738_v8  ;;  %5490 = vmatpush1.bf16.msra.mxu1 %v8739_v20  ;;  %v8749_v8 = vld [vmem:[#allocation63_spill] sm:$0xff]  ;;  %v8750_v20 = vld [vmem:[#allocation64_spill] sm:$0xff] }
 0x3f3   :  { %5460 = vmatprep.subr.bf16.mxu0 %v8740_v21  ;;  %5492 = vmatprep.subr.bf16.mxu1 %v8741_v24  ;;  %v8751_v21 = vld [vmem:[#allocation65_spill] sm:$0xff]  ;;  %v8752_v24 = vld [vmem:[#allocation66_spill] sm:$0xff] }
 0x3f6   :  { %5462 = vmatpush1.bf16.msra.mxu0 %v8742_v12  ;;  %5494 = vmatpush1.bf16.msra.mxu1 %v8743_v37  ;;  %v8753_v12 = vld [vmem:[#allocation67_spill] sm:$0xff]  ;;  %v8754_v37 = vld [vmem:[#allocation68_spill] sm:$0xff] }
 0x3f7   :  { %5464 = vmatprep.subr.bf16.mxu0 %v8744_v38  ;;  %5496 = vmatprep.subr.bf16.mxu1 %v8745_v28  ;;  %v8755_v38 = vld [vmem:[#allocation69_spill] sm:$0xff]  ;;  %v8756_v28 = vld [vmem:[#allocation70_spill] sm:$0xff] }
 0x3fa   :  { %5466 = vmatpush1.bf16.msra.mxu0 %v8746_v2  ;;  %5498 = vmatpush1.bf16.msra.mxu1 %v8747_v23  ;;  %v8757_v2 = vld [vmem:[#allocation71_spill] sm:$0xff]  ;;  %v8758_v23 = vld [vmem:[#allocation72_spill] sm:$0xff] }
 0x3fb   :  { %5468 = vmatprep.subr.bf16.mxu0 %v8748_v60  ;;  %5500 = vmatprep.subr.bf16.mxu1 %v8749_v8  ;;  %v8759_v60 = vld [vmem:[#allocation73_spill] sm:$0xff]  ;;  %v8760_v8 = vld [vmem:[#allocation74_spill] sm:$0xff] }
 0x3fe   :  { %5470 = vmatpush1.bf16.msra.mxu0 %v8750_v20  ;;  %5502 = vmatpush1.bf16.msra.mxu1 %v8751_v21  ;;  %v8761_v20 = vld [vmem:[#allocation75_spill] sm:$0xff]  ;;  %v8762_v21 = vld [vmem:[#allocation76_spill] sm:$0xff] }
 0x3ff   :  { %5472 = vmatprep.subr.bf16.mxu0 %v8752_v24  ;;  %5504 = vmatprep.subr.bf16.mxu1 %v8753_v12  ;;  %v8763_v24 = vld [vmem:[#allocation77_spill] sm:$0xff]  ;;  %v8764_v12 = vld [vmem:[#allocation78_spill] sm:$0xff] }
 0x402   :  { %5474 = vmatpush1.bf16.msra.mxu0 %v8754_v37  ;;  %5506 = vmatpush1.bf16.msra.mxu1 %v8755_v38  ;;  %v8765_v37 = vld [vmem:[#allocation79_spill] sm:$0xff] }
 0x403   :  { %5476 = vmatprep.subr.bf16.mxu0 %v8756_v28  ;;  %5508 = vmatprep.subr.bf16.mxu1 %v8757_v2 }
 0x406   :  { %5478 = vmatpush1.bf16.msra.mxu0 %v8758_v23  ;;  %5510 = vmatpush1.bf16.msra.mxu1 %v8759_v60 }
 0x407   :  { %5480 = vmatprep.subr.bf16.mxu0 %v8760_v8  ;;  %5512 = vmatprep.subr.bf16.mxu1 %v8761_v20 }
 0x40a   :  { %5482 = vmatpush1.bf16.msra.mxu0 %v8762_v21  ;;  %5514 = vmatpush1.bf16.msra.mxu1 %v8763_v24 }
 0x40b   :  { %5516 = vmatprep.subr.bf16.mxu0 %v8764_v12  ;;  %5548 = vmatprep.subr.bf16.mxu1 %v8765_v37 }
 0x4a0   :  { %v1999_v38 = vpop.f32.mrb[20].mxu0  ;;  %v2070_v28 = vpop.f32.mrb[20].mxu1 }
 0x4a1   :  { %v2075_v2 = vadd.f32 %v1999_v38, %v8766_v27  ;;  %v2001_v7 = vpop.f32.mrb[21].mxu0  ;;  %v2072_v23 = vpop.f32.mrb[21].mxu1  ;;  %v2077_v20 = vadd.f32 %v2070_v28, %v8704_v50 }
 0x4a2   :  { %v2076_v60 = vadd.f32 %v2001_v7, %v8703_v16  ;;  %v2078_v24 = vadd.f32 %v2072_v23, %v8705_v56 }
 0x4a3   :  { %v2079_v4 = vmul.f32 0.5, %v2075_v2 }
 0x4a4   :  { %v2083_v8 = vmul.f32 0.5, %v2076_v60  ;;  %v2088_v12 = vmul.f32 0.5, %v2078_v24 }
 0x4a5   :  { %6557 = vtanh.f32 %v2079_v4 }
 0x4a6   :  { %6559 = vtanh.f32 %v2083_v8 }
 0x4a7   :  { %6561 = vtanh.f32 %v2077_v20 }
 0x4a8   :  { %6563 = vtanh.f32 %v2088_v12 }
 0x4af   :  { %v6558_v21 = vpop.eup %6557 }
 0x4b0   :  { %v6560_v37 = vpop.eup %6559  ;;  %v2081_v3 = vmul.f32 0.5, %v6558_v21 }
 0x4b1   :  { %v2085_v58 = vmul.f32 0.5, %v6560_v37  ;;  %v6562_v27 = vpop.eup %6561 }
 0x4b2   :  { %v2082_v38 = vadd.f32 0.5, %v2081_v3  ;;  %v6564_v4 = vpop.eup %6563 }
 0x4b3   :  { %v2086_v57 = vadd.f32 0.5, %v2085_v58  ;;  %v2090_v8 = vmul.f32 0.5, %v6564_v4 }
 0x4b4   :  { %v2093_v54 = vmul.f32 %v6562_v27, %v2082_v38  ;;  %v8768_v38 = vld [vmem:[#allocation86_spill] sm:$0xff] }
 0x4b5   :  { %v2092_v7 = vmul.f32 %v2086_v57, %v7591_v33  ;;  %v2091_v37 = vadd.f32 0.5, %v2090_v8  ;;  %v8767_v33 = vld [vmem:[#allocation85_spill] sm:$0xff] }
 0x4b7   :  { %v7709_v2 = vadd.f32 %v2093_v54, %v2092_v7  ;;  %v8769_v7 = vld [vmem:[#allocation87_spill] sm:$0xff] }
 0x4b9   :  { %6565 = vtanh.f32 %v7709_v2 }
 0x4c0   :  { %v2170_v20 = vpop.f32.mrb[6].mxu0  ;;  %v2241_v28 = vpop.f32.mrb[6].mxu1 }
 0x4c1   :  { %v6401_v24 = vadd.f32 %v2170_v20, %v8643_v62  ;;  %v2172_v60 = vpop.f32.mrb[7].mxu0  ;;  %v2243_v21 = vpop.f32.mrb[7].mxu1  ;;  %v6417_v54 = vadd.f32 %v2241_v28, %v7372_v11  ;;  %v8770_v20 = vld [vmem:[#allocation88_spill] sm:$0xff]  ;;  %v8771_v28 = vld [vmem:[#allocation89_spill] sm:$0xff] }
 0x4c2   :  { %v6402_v3 = vadd.f32 %v2172_v60, %v8644_v39  ;;  %v6418_v57 = vadd.f32 %v2243_v21, %v8708_v42  ;;  %v8772_v21 = vld [vmem:[#allocation90_spill] sm:$0xff] }
 0x4c3   :  { %v6566_v23 = vpop.eup %6565  ;;  %v2250_v58 = vmul.f32 0.5, %v6401_v24 }
 0x4c4   :  { %v2096_v27 = vmul.f32 %v6566_v23, %v2091_v37  ;;  %v2254_v12 = vmul.f32 0.5, %v6402_v3  ;;  %v2259_v4 = vmul.f32 0.5, %v6418_v57 }
 0x4c5   :  { %6567 = vtanh.f32 %v2250_v58 }
 0x4c6   :  { %6569 = vtanh.f32 %v2254_v12  ;;  %2333 = vmatmul.mubr.f32.vlgmr.msra.gmra.mrb[22].mxu0 %v2096_v27  ;;  %2404 = vmatmul.mubr.f32.vlgmr.msra.gmra.mrb[22].mxu1 %v2096_v27  ;;  %v8773_v12 = vld [vmem:[#allocation95_spill] sm:$0xff] }
 0x4c7   :  { %5518 = vmatpush1.bf16.msra.mxu0 %v8645_v18  ;;  %5550 = vmatpush1.bf16.msra.mxu1 %v8646_v22  ;;  %6571 = vtanh.f32 %v6417_v54 }
 0x4c8   :  { %5520 = vmatprep.subr.bf16.mxu0 %v8706_v46  ;;  %5552 = vmatprep.subr.bf16.mxu1 %v8707_v63  ;;  %6573 = vtanh.f32 %v2259_v4 }
 0x4c9   :  { %2474 = vmatprep.mubr.f32.mxu0 %v8581_v5  ;;  %2545 = vmatprep.mubr.f32.mxu1 %v8581_v5 }
 0x4cb   :  { %5522 = vmatpush1.bf16.msra.mxu0 %v8709_v15  ;;  %5554 = vmatpush1.bf16.msra.mxu1 %v8767_v33 }
 0x4cc   :  { %5524 = vmatprep.subr.bf16.mxu0 %v8768_v38  ;;  %5556 = vmatprep.subr.bf16.mxu1 %v8769_v7 }
 0x4cf   :  { %v6568_v8 = vpop.eup %6567  ;;  %5526 = vmatpush1.bf16.msra.mxu0 %v8770_v20  ;;  %5558 = vmatpush1.bf16.msra.mxu1 %v8771_v28 }
 0x4d0   :  { %v6570_v24 = vpop.eup %6569  ;;  %v2252_v60 = vmul.f32 0.5, %v6568_v8  ;;  %5528 = vmatprep.subr.bf16.mxu0 %v8772_v21  ;;  %5560 = vmatprep.subr.bf16.mxu1 %v8656_v48 }
 0x4d1   :  { %v2256_v37 = vmul.f32 0.5, %v6570_v24  ;;  %v6572_v23 = vpop.eup %6571 }
 0x4d2   :  { %v2253_v3 = vadd.f32 0.5, %v2252_v60  ;;  %v6574_v4 = vpop.eup %6573 }
 0x4d3   :  { %v2257_v58 = vadd.f32 0.5, %v2256_v37  ;;  %5530 = vmatpush1.bf16.msra.mxu0 %v8657_v6  ;;  %5562 = vmatpush1.bf16.msra.mxu1 %v8658_v0  ;;  %v8774_v37 = vld [vmem:[#allocation27_spill] sm:$0xff] }
 0x4d4   :  { %v2264_v27 = vmul.f32 %v6572_v23, %v2253_v3  ;;  %5532 = vmatprep.subr.bf16.mxu0 %v8716_v34  ;;  %5564 = vmatprep.subr.bf16.mxu1 %v8773_v12  ;;  %v8775_v3 = vld [vmem:[#allocation28_spill] sm:$0xff]  ;;  %v8776_v23 = vld [vmem:[#allocation29_spill] sm:$0xff] }
 0x4d5   :  { %v2263_v54 = vmul.f32 %v2257_v58, %v7617_v49  ;;  %v2261_v49 = vmul.f32 0.5, %v6574_v4  ;;  %v8777_v58 = vld [vmem:[#allocation30_spill] sm:$0xff]  ;;  %v8780_v4 = vld [vmem:[#allocation33_spill] sm:$0xff] }
 0x4d7   :  { %v7735_v57 = vadd.f32 %v2264_v27, %v2263_v54  ;;  %5534 = vmatpush1.bf16.msra.mxu0 %v8719_v59  ;;  %5566 = vmatpush1.bf16.msra.mxu1 %v8720_v32  ;;  %v2262_v8 = vadd.f32 0.5, %v2261_v49  ;;  %v8778_v27 = vld [vmem:[#allocation31_spill] sm:$0xff]  ;;  %v8779_v54 = vld [vmem:[#allocation32_spill] sm:$0xff]  ;;  %v8781_v49 = vld [vmem:[#allocation34_spill] sm:$0xff] }
 0x4d8   :  { %5536 = vmatprep.subr.bf16.mxu0 %v8721_v55  ;;  %5568 = vmatprep.subr.bf16.mxu1 %v8722_v1 }
 0x4d9   :  { %6575 = vtanh.f32 %v7735_v57 }
 0x4db   :  { %5538 = vmatpush1.bf16.msra.mxu0 %v8723_v52  ;;  %5570 = vmatpush1.bf16.msra.mxu1 %v8724_v43 }
 0x4dc   :  { %5540 = vmatprep.subr.bf16.mxu0 %v8725_v35  ;;  %5572 = vmatprep.subr.bf16.mxu1 %v8669_v13 }
 0x4df   :  { %5542 = vmatpush1.bf16.msra.mxu0 %v8670_v51  ;;  %5574 = vmatpush1.bf16.msra.mxu1 %v8671_v10 }
 0x4e0   :  { %5544 = vmatprep.subr.bf16.mxu0 %v8672_v19  ;;  %5576 = vmatprep.subr.bf16.mxu1 %v8673_v31 }
 0x4e3   :  { %v6576_v24 = vpop.eup %6575  ;;  %5546 = vmatpush1.bf16.msra.mxu0 %v8674_v36  ;;  %5578 = vmatpush1.bf16.msra.mxu1 %v8675_v9 }
 0x4e4   :  { %v2267_v60 = vmul.f32 %v6576_v24, %v2262_v8  ;;  %5580 = vmatprep.subr.bf16.mxu0 %v8676_v47  ;;  %5612 = vmatprep.subr.bf16.mxu1 %v8677_v61  ;;  %v8782_v8 = vld [vmem:[#allocation35_spill] sm:$0xff]  ;;  %v8783_v24 = vld [vmem:[#allocation36_spill] sm:$0xff] }
 0x4e6   :  { %2475 = vmatmul.mubr.f32.vlgmr.msra.gmra.mrb[22].mxu0 %v2267_v60  ;;  %2546 = vmatmul.mubr.f32.vlgmr.msra.gmra.mrb[22].mxu1 %v2267_v60 }
 0x4e7   :  { %5582 = vmatpush1.bf16.msra.mxu0 %v7007_v14  ;;  %5614 = vmatpush1.bf16.msra.mxu1 %v7011_v17 }
 0x4e8   :  { %5584 = vmatprep.subr.bf16.mxu0 %v7020_v25  ;;  %5616 = vmatprep.subr.bf16.mxu1 %v7022_v26 }
 0x4e9   :  { %2645 = vmatprep.mubr.f32.mxu0 %v8581_v5  ;;  %2716 = vmatprep.mubr.f32.mxu1 %v8581_v5 }
 0x4eb   :  { %5586 = vmatpush1.bf16.msra.mxu0 %v7026_v29  ;;  %5618 = vmatpush1.bf16.msra.mxu1 %v7028_v30 }
 0x4ec   :  { %5588 = vmatprep.subr.bf16.mxu0 %v7039_v40  ;;  %5620 = vmatprep.subr.bf16.mxu1 %v7041_v41 }
 0x4ef   :  { %5590 = vmatpush1.bf16.msra.mxu0 %v7045_v44  ;;  %5622 = vmatpush1.bf16.msra.mxu1 %v7047_v45 }
 0x4f0   :  { %5592 = vmatprep.subr.bf16.mxu0 %v7058_v53  ;;  %5624 = vmatprep.subr.bf16.mxu1 %v8774_v37  ;;  %v8784_v53 = vld [vmem:[#allocation37_spill] sm:$0xff]  ;;  %v8785_v37 = vld [vmem:[#allocation38_spill] sm:$0xff] }
 0x4f3   :  { %5594 = vmatpush1.bf16.msra.mxu0 %v8775_v3  ;;  %5626 = vmatpush1.bf16.msra.mxu1 %v8776_v23  ;;  %v8786_v3 = vld [vmem:[#allocation39_spill] sm:$0xff]  ;;  %v8787_v23 = vld [vmem:[#allocation40_spill] sm:$0xff] }
 0x4f4   :  { %5596 = vmatprep.subr.bf16.mxu0 %v8777_v58  ;;  %5628 = vmatprep.subr.bf16.mxu1 %v8778_v27  ;;  %v8788_v58 = vld [vmem:[#allocation41_spill] sm:$0xff]  ;;  %v8789_v27 = vld [vmem:[#allocation42_spill] sm:$0xff] }
 0x4f7   :  { %5598 = vmatpush1.bf16.msra.mxu0 %v8779_v54  ;;  %5630 = vmatpush1.bf16.msra.mxu1 %v8780_v4  ;;  %v8790_v54 = vld [vmem:[#allocation43_spill] sm:$0xff]  ;;  %v8791_v4 = vld [vmem:[#allocation44_spill] sm:$0xff] }
 0x4f8   :  { %5600 = vmatprep.subr.bf16.mxu0 %v8781_v49  ;;  %5632 = vmatprep.subr.bf16.mxu1 %v8782_v8  ;;  %v8792_v49 = vld [vmem:[#allocation45_spill] sm:$0xff]  ;;  %v8793_v8 = vld [vmem:[#allocation46_spill] sm:$0xff] }
 0x4fb   :  { %5602 = vmatpush1.bf16.msra.mxu0 %v8783_v24  ;;  %5634 = vmatpush1.bf16.msra.mxu1 %v8784_v53  ;;  %v8794_v24 = vld [vmem:[#allocation47_spill] sm:$0xff]  ;;  %v8827_v53 = vld [vmem:[#allocation113_spill] sm:$0xff] }
 0x4fc   :  { %5604 = vmatprep.subr.bf16.mxu0 %v8785_v37  ;;  %5636 = vmatprep.subr.bf16.mxu1 %v8786_v3  ;;  %v8795_v37 = vld [vmem:[#allocation48_spill] sm:$0xff]  ;;  %v8796_v3 = vld [vmem:[#allocation49_spill] sm:$0xff] }
 0x4ff   :  { %5606 = vmatpush1.bf16.msra.mxu0 %v8787_v23  ;;  %5638 = vmatpush1.bf16.msra.mxu1 %v8788_v58  ;;  %v8797_v23 = vld [vmem:[#allocation50_spill] sm:$0xff]  ;;  %v8798_v58 = vld [vmem:[#allocation51_spill] sm:$0xff] }
 0x500   :  { %5608 = vmatprep.subr.bf16.mxu0 %v8789_v27  ;;  %5640 = vmatprep.subr.bf16.mxu1 %v8790_v54  ;;  %v8808_v54 = vld [vmem:[#allocation61_spill] sm:$0xff]  ;;  %v8809_v27 = vld [vmem:[#allocation62_spill] sm:$0xff] }
 0x503   :  { %5610 = vmatpush1.bf16.msra.mxu0 %v8791_v4  ;;  %5642 = vmatpush1.bf16.msra.mxu1 %v8792_v49  ;;  %v8799_v4 = vld [vmem:[#allocation52_spill] sm:$0xff]  ;;  %v8800_v49 = vld [vmem:[#allocation53_spill] sm:$0xff] }
 0x504   :  { %5644 = vmatprep.subr.bf16.mxu0 %v8793_v8  ;;  %5676 = vmatprep.subr.bf16.mxu1 %v8794_v24  ;;  %v8801_v8 = vld [vmem:[#allocation54_spill] sm:$0xff]  ;;  %v8802_v24 = vld [vmem:[#allocation55_spill] sm:$0xff] }
 0x506   :  { %2646 = vmatmul.mubr.f32.vlgmr.msra.gmra.mrb[8].mxu0 %v2267_v60  ;;  %2717 = vmatmul.mubr.f32.vlgmr.msra.gmra.mrb[8].mxu1 %v2267_v60  ;;  %v8803_v60 = vld [vmem:[#allocation56_spill] sm:$0xff] }
 0x507   :  { %5646 = vmatpush1.bf16.msra.mxu0 %v8795_v37  ;;  %5678 = vmatpush1.bf16.msra.mxu1 %v8796_v3  ;;  %v8804_v37 = vld [vmem:[#allocation57_spill] sm:$0xff]  ;;  %v8805_v3 = vld [vmem:[#allocation58_spill] sm:$0xff] }
 0x508   :  { %5648 = vmatprep.subr.bf16.mxu0 %v8797_v23  ;;  %5680 = vmatprep.subr.bf16.mxu1 %v8798_v58  ;;  %v8806_v23 = vld [vmem:[#allocation59_spill] sm:$0xff]  ;;  %v8807_v58 = vld [vmem:[#allocation60_spill] sm:$0xff] }
 0x509   :  { %2809 = vmatprep.mubr.f32.mxu0 %v8581_v5  ;;  %2880 = vmatprep.mubr.f32.mxu1 %v8581_v5 }
 0x50b   :  { %5650 = vmatpush1.bf16.msra.mxu0 %v8799_v4  ;;  %5682 = vmatpush1.bf16.msra.mxu1 %v8800_v49  ;;  %v8810_v4 = vld [vmem:[#allocation63_spill] sm:$0xff]  ;;  %v8811_v49 = vld [vmem:[#allocation64_spill] sm:$0xff] }
 0x50c   :  { %5652 = vmatprep.subr.bf16.mxu0 %v8801_v8  ;;  %5684 = vmatprep.subr.bf16.mxu1 %v8802_v24  ;;  %v8812_v8 = vld [vmem:[#allocation65_spill] sm:$0xff]  ;;  %v8813_v24 = vld [vmem:[#allocation66_spill] sm:$0xff] }
 0x50f   :  { %5654 = vmatpush1.bf16.msra.mxu0 %v8803_v60  ;;  %5686 = vmatpush1.bf16.msra.mxu1 %v8804_v37  ;;  %v8814_v60 = vld [vmem:[#allocation67_spill] sm:$0xff]  ;;  %v8815_v37 = vld [vmem:[#allocation68_spill] sm:$0xff] }
 0x510   :  { %5656 = vmatprep.subr.bf16.mxu0 %v8805_v3  ;;  %5688 = vmatprep.subr.bf16.mxu1 %v8806_v23  ;;  %v8816_v3 = vld [vmem:[#allocation69_spill] sm:$0xff]  ;;  %v8817_v23 = vld [vmem:[#allocation70_spill] sm:$0xff] }
 0x513   :  { %5658 = vmatpush1.bf16.msra.mxu0 %v8807_v58  ;;  %5690 = vmatpush1.bf16.msra.mxu1 %v8808_v54  ;;  %v8818_v58 = vld [vmem:[#allocation71_spill] sm:$0xff]  ;;  %v8819_v54 = vld [vmem:[#allocation72_spill] sm:$0xff] }
 0x514   :  { %5660 = vmatprep.subr.bf16.mxu0 %v8809_v27  ;;  %5692 = vmatprep.subr.bf16.mxu1 %v8810_v4  ;;  %v8820_v27 = vld [vmem:[#allocation73_spill] sm:$0xff]  ;;  %v8821_v4 = vld [vmem:[#allocation74_spill] sm:$0xff] }
 0x517   :  { %5662 = vmatpush1.bf16.msra.mxu0 %v8811_v49  ;;  %5694 = vmatpush1.bf16.msra.mxu1 %v8812_v8  ;;  %v8822_v49 = vld [vmem:[#allocation75_spill] sm:$0xff]  ;;  %v8823_v8 = vld [vmem:[#allocation76_spill] sm:$0xff] }
 0x518   :  { %5664 = vmatprep.subr.bf16.mxu0 %v8813_v24  ;;  %5696 = vmatprep.subr.bf16.mxu1 %v8814_v60  ;;  %v8824_v24 = vld [vmem:[#allocation77_spill] sm:$0xff]  ;;  %v8825_v60 = vld [vmem:[#allocation78_spill] sm:$0xff] }
 0x51b   :  { %5666 = vmatpush1.bf16.msra.mxu0 %v8815_v37  ;;  %5698 = vmatpush1.bf16.msra.mxu1 %v8816_v3  ;;  %v8826_v37 = vld [vmem:[#allocation79_spill] sm:$0xff] }
 0x51c   :  { %5668 = vmatprep.subr.bf16.mxu0 %v8817_v23  ;;  %5700 = vmatprep.subr.bf16.mxu1 %v8818_v58 }
 0x51f   :  { %5670 = vmatpush1.bf16.msra.mxu0 %v8819_v54  ;;  %5702 = vmatpush1.bf16.msra.mxu1 %v8820_v27 }
 0x520   :  { %5672 = vmatprep.subr.bf16.mxu0 %v8821_v4  ;;  %5704 = vmatprep.subr.bf16.mxu1 %v8822_v49 }
 0x523   :  { %5674 = vmatpush1.bf16.msra.mxu0 %v8823_v8  ;;  %5706 = vmatpush1.bf16.msra.mxu1 %v8824_v24 }
 0x524   :  { %5708 = vmatprep.subr.bf16.mxu0 %v8825_v60  ;;  %5740 = vmatprep.subr.bf16.mxu1 %v8826_v37 }
 0x5b9   :  { %v2476_v3 = vpop.f32.mrb[22].mxu0  ;;  %v2547_v23 = vpop.f32.mrb[22].mxu1 }
 0x5ba   :  { %v2552_v58 = vadd.f32 %v2476_v3, %v8827_v53  ;;  %v2478_v45 = vpop.f32.mrb[23].mxu0  ;;  %v2549_v54 = vpop.f32.mrb[23].mxu1  ;;  %v2554_v49 = vadd.f32 %v2547_v23, %v8704_v50 }
 0x5bb   :  { %v2553_v27 = vadd.f32 %v2478_v45, %v8703_v16  ;;  %v2555_v24 = vadd.f32 %v2549_v54, %v8705_v56 }
 0x5bc   :  { %v2556_v44 = vmul.f32 0.5, %v2552_v58 }
 0x5bd   :  { %v2560_v4 = vmul.f32 0.5, %v2553_v27  ;;  %v2565_v60 = vmul.f32 0.5, %v2555_v24 }
 0x5be   :  { %6577 = vtanh.f32 %v2556_v44 }
 0x5bf   :  { %6579 = vtanh.f32 %v2560_v4 }
 0x5c0   :  { %6581 = vtanh.f32 %v2554_v49 }
 0x5c1   :  { %6583 = vtanh.f32 %v2565_v60 }
 0x5c8   :  { %v6578_v8 = vpop.eup %6577 }
 0x5c9   :  { %v6580_v37 = vpop.eup %6579  ;;  %v2558_v41 = vmul.f32 0.5, %v6578_v8 }
 0x5ca   :  { %v2562_v40 = vmul.f32 0.5, %v6580_v37  ;;  %v6582_v53 = vpop.eup %6581 }
 0x5cb   :  { %v2559_v3 = vadd.f32 0.5, %v2558_v41  ;;  %v6584_v44 = vpop.eup %6583 }
 0x5cc   :  { %v2563_v30 = vadd.f32 0.5, %v2562_v40  ;;  %v2567_v23 = vmul.f32 0.5, %v6584_v44 }
 0x5cd   :  { %v2570_v29 = vmul.f32 %v6582_v53, %v2559_v3 }
 0x5ce   :  { %v2569_v45 = vmul.f32 %v2563_v30, %v7709_v2  ;;  %v2568_v37 = vadd.f32 0.5, %v2567_v23 }
 0x5d0   :  { %v7827_v58 = vadd.f32 %v2570_v29, %v2569_v45 }
 0x5d2   :  { %6585 = vtanh.f32 %v7827_v58 }
 0x5d9   :  { %v2647_v27 = vpop.f32.mrb[8].mxu0  ;;  %v2718_v54 = vpop.f32.mrb[8].mxu1 }
 0x5da   :  { %v6403_v4 = vadd.f32 %v2647_v27, %v8643_v62  ;;  %v2649_v49 = vpop.f32.mrb[9].mxu0  ;;  %v2720_v8 = vpop.f32.mrb[9].mxu1  ;;  %v6419_v29 = vadd.f32 %v2718_v54, %v7372_v11 }
 0x5db   :  { %v6404_v41 = vadd.f32 %v2649_v49, %v8644_v39  ;;  %v6420_v30 = vadd.f32 %v2720_v8, %v8708_v42 }
 0x5dc   :  { %v6586_v24 = vpop.eup %6585  ;;  %v2727_v40 = vmul.f32 0.5, %v6403_v4 }
 0x5dd   :  { %v2573_v53 = vmul.f32 %v6586_v24, %v2568_v37  ;;  %v2731_v60 = vmul.f32 0.5, %v6404_v41  ;;  %v2736_v2 = vmul.f32 0.5, %v6420_v30  ;;  %v8830_v30 = vld [vmem:[#allocation22_spill] sm:$0xff] }
 0x5de   :  { %6587 = vtanh.f32 %v2727_v40 }
 0x5df   :  { %6589 = vtanh.f32 %v2731_v60  ;;  %2810 = vmatmul.mubr.f32.vlgmr.msra.gmra.mrb[24].mxu0 %v2573_v53  ;;  %2881 = vmatmul.mubr.f32.vlgmr.msra.gmra.mrb[24].mxu1 %v2573_v53  ;;  %v8828_v60 = vld [vmem:[#allocation20_spill] sm:$0xff] }
 0x5e0   :  { %5710 = vmatpush1.bf16.msra.mxu0 %v8645_v18  ;;  %5742 = vmatpush1.bf16.msra.mxu1 %v8646_v22  ;;  %6591 = vtanh.f32 %v6419_v29  ;;  %v8829_v29 = vld [vmem:[#allocation21_spill] sm:$0xff] }
 0x5e1   :  { %5712 = vmatprep.subr.bf16.mxu0 %v8706_v46  ;;  %5744 = vmatprep.subr.bf16.mxu1 %v8707_v63  ;;  %6593 = vtanh.f32 %v2736_v2  ;;  %v8831_v2 = vld [vmem:[#allocation23_spill] sm:$0xff] }
 0x5e2   :  { %2951 = vmatprep.mubr.f32.mxu0 %v8581_v5  ;;  %3022 = vmatprep.mubr.f32.mxu1 %v8581_v5 }
 0x5e4   :  { %5714 = vmatpush1.bf16.msra.mxu0 %v8709_v15  ;;  %5746 = vmatpush1.bf16.msra.mxu1 %v8767_v33 }
 0x5e5   :  { %5716 = vmatprep.subr.bf16.mxu0 %v8768_v38  ;;  %5748 = vmatprep.subr.bf16.mxu1 %v8769_v7 }
 0x5e8   :  { %v6588_v3 = vpop.eup %6587  ;;  %5718 = vmatpush1.bf16.msra.mxu0 %v8770_v20  ;;  %5750 = vmatpush1.bf16.msra.mxu1 %v8771_v28 }
 0x5e9   :  { %v6590_v45 = vpop.eup %6589  ;;  %v2729_v44 = vmul.f32 0.5, %v6588_v3  ;;  %5720 = vmatprep.subr.bf16.mxu0 %v8772_v21  ;;  %5752 = vmatprep.subr.bf16.mxu1 %v8656_v48  ;;  %v8832_v3 = vld [vmem:[#allocation24_spill] sm:$0xff] }
 0x5ea   :  { %v2733_v23 = vmul.f32 0.5, %v6590_v45  ;;  %v6592_v54 = vpop.eup %6591  ;;  %v8833_v45 = vld [vmem:[#allocation25_spill] sm:$0xff] }
 0x5eb   :  { %v2730_v27 = vadd.f32 0.5, %v2729_v44  ;;  %v6594_v41 = vpop.eup %6593  ;;  %v8834_v44 = vld [vmem:[#allocation26_spill] sm:$0xff] }
 0x5ec   :  { %v2734_v4 = vadd.f32 0.5, %v2733_v23  ;;  %5722 = vmatpush1.bf16.msra.mxu0 %v8657_v6  ;;  %5754 = vmatpush1.bf16.msra.mxu1 %v8658_v0  ;;  %v8835_v23 = vld [vmem:[#allocation27_spill] sm:$0xff] }
 0x5ed   :  { %v2741_v49 = vmul.f32 %v6592_v54, %v2730_v27  ;;  %5724 = vmatprep.subr.bf16.mxu0 %v8716_v34  ;;  %5756 = vmatprep.subr.bf16.mxu1 %v8773_v12  ;;  %v8836_v27 = vld [vmem:[#allocation28_spill] sm:$0xff]  ;;  %v8837_v54 = vld [vmem:[#allocation29_spill] sm:$0xff] }
 0x5ee   :  { %v2740_v8 = vmul.f32 %v2734_v4, %v7735_v57  ;;  %v2738_v57 = vmul.f32 0.5, %v6594_v41  ;;  %v8838_v4 = vld [vmem:[#allocation30_spill] sm:$0xff]  ;;  %v8841_v41 = vld [vmem:[#allocation33_spill] sm:$0xff] }
 0x5f0   :  { %v7853_v37 = vadd.f32 %v2741_v49, %v2740_v8  ;;  %5726 = vmatpush1.bf16.msra.mxu0 %v8719_v59  ;;  %5758 = vmatpush1.bf16.msra.mxu1 %v8720_v32  ;;  %v2739_v24 = vadd.f32 0.5, %v2738_v57  ;;  %v8839_v49 = vld [vmem:[#allocation31_spill] sm:$0xff]  ;;  %v8840_v8 = vld [vmem:[#allocation32_spill] sm:$0xff]  ;;  %v8842_v57 = vld [vmem:[#allocation34_spill] sm:$0xff] }
 0x5f1   :  { %5728 = vmatprep.subr.bf16.mxu0 %v8721_v55  ;;  %5760 = vmatprep.subr.bf16.mxu1 %v8722_v1 }
 0x5f2   :  { %6595 = vtanh.f32 %v7853_v37 }
 0x5f4   :  { %5730 = vmatpush1.bf16.msra.mxu0 %v8723_v52  ;;  %5762 = vmatpush1.bf16.msra.mxu1 %v8724_v43 }
 0x5f5   :  { %5732 = vmatprep.subr.bf16.mxu0 %v8725_v35  ;;  %5764 = vmatprep.subr.bf16.mxu1 %v8669_v13 }
 0x5f8   :  { %5734 = vmatpush1.bf16.msra.mxu0 %v8670_v51  ;;  %5766 = vmatpush1.bf16.msra.mxu1 %v8671_v10 }
 0x5f9   :  { %5736 = vmatprep.subr.bf16.mxu0 %v8672_v19  ;;  %5768 = vmatprep.subr.bf16.mxu1 %v8673_v31 }
 0x5fc   :  { %v6596_v40 = vpop.eup %6595  ;;  %5738 = vmatpush1.bf16.msra.mxu0 %v8674_v36  ;;  %5770 = vmatpush1.bf16.msra.mxu1 %v8675_v9 }
 0x5fd   :  { %v2744_v53 = vmul.f32 %v6596_v40, %v2739_v24  ;;  %5772 = vmatprep.subr.bf16.mxu0 %v8676_v47  ;;  %5804 = vmatprep.subr.bf16.mxu1 %v8677_v61  ;;  %v8843_v24 = vld [vmem:[#allocation35_spill] sm:$0xff]  ;;  %v8844_v40 = vld [vmem:[#allocation36_spill] sm:$0xff] }
 0x5ff   :  { %2952 = vmatmul.mubr.f32.vlgmr.msra.gmra.mrb[24].mxu0 %v2744_v53  ;;  %3023 = vmatmul.mubr.f32.vlgmr.msra.gmra.mrb[24].mxu1 %v2744_v53 }
 0x600   :  { %5774 = vmatpush1.bf16.msra.mxu0 %v7007_v14  ;;  %5806 = vmatpush1.bf16.msra.mxu1 %v7011_v17 }
 0x601   :  { %5776 = vmatprep.subr.bf16.mxu0 %v7020_v25  ;;  %5808 = vmatprep.subr.bf16.mxu1 %v7022_v26 }
 0x602   :  { %3122 = vmatprep.mubr.f32.mxu0 %v8581_v5  ;;  %3193 = vmatprep.mubr.f32.mxu1 %v8581_v5 }
 0x604   :  { %5778 = vmatpush1.bf16.msra.mxu0 %v8828_v60  ;;  %5810 = vmatpush1.bf16.msra.mxu1 %v8829_v29 }
 0x605   :  { %5780 = vmatprep.subr.bf16.mxu0 %v8830_v30  ;;  %5812 = vmatprep.subr.bf16.mxu1 %v8831_v2 }
 0x608   :  { %5782 = vmatpush1.bf16.msra.mxu0 %v8832_v3  ;;  %5814 = vmatpush1.bf16.msra.mxu1 %v8833_v45 }
 0x609   :  { %5784 = vmatprep.subr.bf16.mxu0 %v8834_v44  ;;  %5816 = vmatprep.subr.bf16.mxu1 %v8835_v23  ;;  %v8845_v44 = vld [vmem:[#allocation37_spill] sm:$0xff]  ;;  %v8846_v23 = vld [vmem:[#allocation38_spill] sm:$0xff] }
 0x60c   :  { %5786 = vmatpush1.bf16.msra.mxu0 %v8836_v27  ;;  %5818 = vmatpush1.bf16.msra.mxu1 %v8837_v54  ;;  %v8847_v27 = vld [vmem:[#allocation39_spill] sm:$0xff]  ;;  %v8848_v54 = vld [vmem:[#allocation40_spill] sm:$0xff] }
 0x60d   :  { %5788 = vmatprep.subr.bf16.mxu0 %v8838_v4  ;;  %5820 = vmatprep.subr.bf16.mxu1 %v8839_v49  ;;  %v8849_v4 = vld [vmem:[#allocation41_spill] sm:$0xff]  ;;  %v8850_v49 = vld [vmem:[#allocation42_spill] sm:$0xff] }
 0x610   :  { %5790 = vmatpush1.bf16.msra.mxu0 %v8840_v8  ;;  %5822 = vmatpush1.bf16.msra.mxu1 %v8841_v41  ;;  %v8851_v8 = vld [vmem:[#allocation43_spill] sm:$0xff]  ;;  %v8852_v41 = vld [vmem:[#allocation44_spill] sm:$0xff] }
 0x611   :  { %5792 = vmatprep.subr.bf16.mxu0 %v8842_v57  ;;  %5824 = vmatprep.subr.bf16.mxu1 %v8843_v24  ;;  %v8853_v57 = vld [vmem:[#allocation45_spill] sm:$0xff]  ;;  %v8854_v24 = vld [vmem:[#allocation46_spill] sm:$0xff] }
 0x614   :  { %5794 = vmatpush1.bf16.msra.mxu0 %v8844_v40  ;;  %5826 = vmatpush1.bf16.msra.mxu1 %v8845_v44  ;;  %v8855_v40 = vld [vmem:[#allocation47_spill] sm:$0xff]  ;;  %v8888_v44 = vld [vmem:[#allocation113_spill] sm:$0xff] }
 0x615   :  { %5796 = vmatprep.subr.bf16.mxu0 %v8846_v23  ;;  %5828 = vmatprep.subr.bf16.mxu1 %v8847_v27  ;;  %v8856_v23 = vld [vmem:[#allocation48_spill] sm:$0xff]  ;;  %v8857_v27 = vld [vmem:[#allocation49_spill] sm:$0xff] }
 0x618   :  { %5798 = vmatpush1.bf16.msra.mxu0 %v8848_v54  ;;  %5830 = vmatpush1.bf16.msra.mxu1 %v8849_v4  ;;  %v8858_v54 = vld [vmem:[#allocation50_spill] sm:$0xff]  ;;  %v8859_v4 = vld [vmem:[#allocation51_spill] sm:$0xff] }
 0x619   :  { %5800 = vmatprep.subr.bf16.mxu0 %v8850_v49  ;;  %5832 = vmatprep.subr.bf16.mxu1 %v8851_v8  ;;  %v8869_v8 = vld [vmem:[#allocation61_spill] sm:$0xff]  ;;  %v8870_v49 = vld [vmem:[#allocation62_spill] sm:$0xff] }
 0x61c   :  { %5802 = vmatpush1.bf16.msra.mxu0 %v8852_v41  ;;  %5834 = vmatpush1.bf16.msra.mxu1 %v8853_v57  ;;  %v8860_v41 = vld [vmem:[#allocation52_spill] sm:$0xff]  ;;  %v8861_v57 = vld [vmem:[#allocation53_spill] sm:$0xff] }
 0x61d   :  { %5836 = vmatprep.subr.bf16.mxu0 %v8854_v24  ;;  %5868 = vmatprep.subr.bf16.mxu1 %v8855_v40  ;;  %v8862_v24 = vld [vmem:[#allocation54_spill] sm:$0xff]  ;;  %v8863_v40 = vld [vmem:[#allocation55_spill] sm:$0xff] }
 0x61f   :  { %3123 = vmatmul.mubr.f32.vlgmr.msra.gmra.mrb[10].mxu0 %v2744_v53  ;;  %3194 = vmatmul.mubr.f32.vlgmr.msra.gmra.mrb[10].mxu1 %v2744_v53  ;;  %v8864_v53 = vld [vmem:[#allocation56_spill] sm:$0xff] }
 0x620   :  { %5838 = vmatpush1.bf16.msra.mxu0 %v8856_v23  ;;  %5870 = vmatpush1.bf16.msra.mxu1 %v8857_v27  ;;  %v8865_v23 = vld [vmem:[#allocation57_spill] sm:$0xff]  ;;  %v8866_v27 = vld [vmem:[#allocation58_spill] sm:$0xff] }
 0x621   :  { %5840 = vmatprep.subr.bf16.mxu0 %v8858_v54  ;;  %5872 = vmatprep.subr.bf16.mxu1 %v8859_v4  ;;  %v8867_v54 = vld [vmem:[#allocation59_spill] sm:$0xff]  ;;  %v8868_v4 = vld [vmem:[#allocation60_spill] sm:$0xff] }
 0x622   :  { %3286 = vmatprep.mubr.f32.mxu0 %v8581_v5  ;;  %3357 = vmatprep.mubr.f32.mxu1 %v8581_v5 }
 0x624   :  { %5842 = vmatpush1.bf16.msra.mxu0 %v8860_v41  ;;  %5874 = vmatpush1.bf16.msra.mxu1 %v8861_v57  ;;  %v8871_v41 = vld [vmem:[#allocation63_spill] sm:$0xff]  ;;  %v8872_v57 = vld [vmem:[#allocation64_spill] sm:$0xff] }
 0x625   :  { %5844 = vmatprep.subr.bf16.mxu0 %v8862_v24  ;;  %5876 = vmatprep.subr.bf16.mxu1 %v8863_v40  ;;  %v8873_v24 = vld [vmem:[#allocation65_spill] sm:$0xff]  ;;  %v8874_v40 = vld [vmem:[#allocation66_spill] sm:$0xff] }
 0x628   :  { %5846 = vmatpush1.bf16.msra.mxu0 %v8864_v53  ;;  %5878 = vmatpush1.bf16.msra.mxu1 %v8865_v23  ;;  %v8875_v53 = vld [vmem:[#allocation67_spill] sm:$0xff]  ;;  %v8876_v23 = vld [vmem:[#allocation68_spill] sm:$0xff] }
 0x629   :  { %5848 = vmatprep.subr.bf16.mxu0 %v8866_v27  ;;  %5880 = vmatprep.subr.bf16.mxu1 %v8867_v54  ;;  %v8877_v27 = vld [vmem:[#allocation69_spill] sm:$0xff]  ;;  %v8878_v54 = vld [vmem:[#allocation70_spill] sm:$0xff] }
 0x62c   :  { %5850 = vmatpush1.bf16.msra.mxu0 %v8868_v4  ;;  %5882 = vmatpush1.bf16.msra.mxu1 %v8869_v8  ;;  %v8879_v4 = vld [vmem:[#allocation71_spill] sm:$0xff]  ;;  %v8880_v8 = vld [vmem:[#allocation72_spill] sm:$0xff] }
 0x62d   :  { %5852 = vmatprep.subr.bf16.mxu0 %v8870_v49  ;;  %5884 = vmatprep.subr.bf16.mxu1 %v8871_v41  ;;  %v8881_v49 = vld [vmem:[#allocation73_spill] sm:$0xff]  ;;  %v8882_v41 = vld [vmem:[#allocation74_spill] sm:$0xff] }
 0x630   :  { %5854 = vmatpush1.bf16.msra.mxu0 %v8872_v57  ;;  %5886 = vmatpush1.bf16.msra.mxu1 %v8873_v24  ;;  %v8883_v57 = vld [vmem:[#allocation75_spill] sm:$0xff]  ;;  %v8884_v24 = vld [vmem:[#allocation76_spill] sm:$0xff] }
 0x631   :  { %5856 = vmatprep.subr.bf16.mxu0 %v8874_v40  ;;  %5888 = vmatprep.subr.bf16.mxu1 %v8875_v53  ;;  %v8885_v40 = vld [vmem:[#allocation77_spill] sm:$0xff]  ;;  %v8886_v53 = vld [vmem:[#allocation78_spill] sm:$0xff] }
 0x634   :  { %5858 = vmatpush1.bf16.msra.mxu0 %v8876_v23  ;;  %5890 = vmatpush1.bf16.msra.mxu1 %v8877_v27  ;;  %v8887_v23 = vld [vmem:[#allocation79_spill] sm:$0xff] }
 0x635   :  { %5860 = vmatprep.subr.bf16.mxu0 %v8878_v54  ;;  %5892 = vmatprep.subr.bf16.mxu1 %v8879_v4 }
 0x638   :  { %5862 = vmatpush1.bf16.msra.mxu0 %v8880_v8  ;;  %5894 = vmatpush1.bf16.msra.mxu1 %v8881_v49 }
 0x639   :  { %5864 = vmatprep.subr.bf16.mxu0 %v8882_v41  ;;  %5896 = vmatprep.subr.bf16.mxu1 %v8883_v57 }
 0x63c   :  { %5866 = vmatpush1.bf16.msra.mxu0 %v8884_v24  ;;  %5898 = vmatpush1.bf16.msra.mxu1 %v8885_v40 }
 0x63d   :  { %5900 = vmatprep.subr.bf16.mxu0 %v8886_v53  ;;  %5932 = vmatprep.subr.bf16.mxu1 %v8887_v23 }
 0x6d2   :  { %v2953_v27 = vpop.f32.mrb[24].mxu0  ;;  %v3024_v54 = vpop.f32.mrb[24].mxu1 }
 0x6d3   :  { %v3029_v4 = vadd.f32 %v2953_v27, %v8888_v44  ;;  %v2955_v45 = vpop.f32.mrb[25].mxu0  ;;  %v3026_v8 = vpop.f32.mrb[25].mxu1  ;;  %v3031_v57 = vadd.f32 %v3024_v54, %v8704_v50 }
 0x6d4   :  { %v3030_v49 = vadd.f32 %v2955_v45, %v8703_v16  ;;  %v3032_v40 = vadd.f32 %v3026_v8, %v8705_v56 }
 0x6d5   :  { %v3033_v3 = vmul.f32 0.5, %v3029_v4 }
 0x6d6   :  { %v3037_v41 = vmul.f32 0.5, %v3030_v49  ;;  %v3042_v53 = vmul.f32 0.5, %v3032_v40 }
 0x6d7   :  { %6597 = vtanh.f32 %v3033_v3 }
 0x6d8   :  { %6599 = vtanh.f32 %v3037_v41 }
 0x6d9   :  { %6601 = vtanh.f32 %v3031_v57 }
 0x6da   :  { %6603 = vtanh.f32 %v3042_v53 }
 0x6e1   :  { %v6598_v24 = vpop.eup %6597 }
 0x6e2   :  { %v6600_v23 = vpop.eup %6599  ;;  %v3035_v2 = vmul.f32 0.5, %v6598_v24 }
 0x6e3   :  { %v3039_v30 = vmul.f32 0.5, %v6600_v23  ;;  %v6602_v44 = vpop.eup %6601 }
 0x6e4   :  { %v3036_v27 = vadd.f32 0.5, %v3035_v2  ;;  %v6604_v3 = vpop.eup %6603 }
 0x6e5   :  { %v3040_v29 = vadd.f32 0.5, %v3039_v30  ;;  %v3044_v54 = vmul.f32 0.5, %v6604_v3 }
 0x6e6   :  { %v3047_v60 = vmul.f32 %v6602_v44, %v3036_v27 }
 0x6e7   :  { %v3046_v45 = vmul.f32 %v3040_v29, %v7827_v58  ;;  %v3045_v23 = vadd.f32 0.5, %v3044_v54 }
 0x6e9   :  { %v7945_v4 = vadd.f32 %v3047_v60, %v3046_v45 }
 0x6eb   :  { %6605 = vtanh.f32 %v7945_v4 }
 0x6f2   :  { %v3124_v49 = vpop.f32.mrb[10].mxu0  ;;  %v3195_v8 = vpop.f32.mrb[10].mxu1 }
 0x6f3   :  { %v6405_v41 = vadd.f32 %v3124_v49, %v8643_v62  ;;  %v3126_v57 = vpop.f32.mrb[11].mxu0  ;;  %v3197_v24 = vpop.f32.mrb[11].mxu1  ;;  %v6421_v58 = vadd.f32 %v3195_v8, %v7372_v11 }
 0x6f4   :  { %v6406_v2 = vadd.f32 %v3126_v57, %v8644_v39  ;;  %v6422_v60 = vadd.f32 %v3197_v24, %v8708_v42 }
 0x6f5   :  { %v6606_v40 = vpop.eup %6605  ;;  %v3204_v30 = vmul.f32 0.5, %v6405_v41 }
 0x6f6   :  { %v3050_v44 = vmul.f32 %v6606_v40, %v3045_v23  ;;  %v3208_v53 = vmul.f32 0.5, %v6406_v2  ;;  %v3213_v29 = vmul.f32 0.5, %v6422_v60  ;;  %v8891_v60 = vld [vmem:[#allocation22_spill] sm:$0xff] }
 0x6f7   :  { %6607 = vtanh.f32 %v3204_v30 }
 0x6f8   :  { %6609 = vtanh.f32 %v3208_v53  ;;  %3287 = vmatmul.mubr.f32.vlgmr.msra.gmra.mrb[26].mxu0 %v3050_v44  ;;  %3358 = vmatmul.mubr.f32.vlgmr.msra.gmra.mrb[26].mxu1 %v3050_v44  ;;  %v8889_v53 = vld [vmem:[#allocation20_spill] sm:$0xff] }
 0x6f9   :  { %5902 = vmatpush1.bf16.msra.mxu0 %v8645_v18  ;;  %5934 = vmatpush1.bf16.msra.mxu1 %v8646_v22  ;;  %6611 = vtanh.f32 %v6421_v58  ;;  %v8890_v58 = vld [vmem:[#allocation21_spill] sm:$0xff] }
 0x6fa   :  { %5904 = vmatprep.subr.bf16.mxu0 %v8706_v46  ;;  %5936 = vmatprep.subr.bf16.mxu1 %v8707_v63  ;;  %6613 = vtanh.f32 %v3213_v29  ;;  %v8892_v29 = vld [vmem:[#allocation23_spill] sm:$0xff] }
 0x6fb   :  { %3428 = vmatprep.mubr.f32.mxu0 %v8581_v5  ;;  %3499 = vmatprep.mubr.f32.mxu1 %v8581_v5 }
 0x6fd   :  { %5906 = vmatpush1.bf16.msra.mxu0 %v8709_v15  ;;  %5938 = vmatpush1.bf16.msra.mxu1 %v8767_v33 }
 0x6fe   :  { %5908 = vmatprep.subr.bf16.mxu0 %v8768_v38  ;;  %5940 = vmatprep.subr.bf16.mxu1 %v8769_v7 }
 0x701   :  { %v6608_v27 = vpop.eup %6607  ;;  %5910 = vmatpush1.bf16.msra.mxu0 %v8770_v20  ;;  %5942 = vmatpush1.bf16.msra.mxu1 %v8771_v28 }
 0x702   :  { %v6610_v45 = vpop.eup %6609  ;;  %v3206_v3 = vmul.f32 0.5, %v6608_v27  ;;  %5912 = vmatprep.subr.bf16.mxu0 %v8772_v21  ;;  %5944 = vmatprep.subr.bf16.mxu1 %v8656_v48  ;;  %v8893_v27 = vld [vmem:[#allocation24_spill] sm:$0xff] }
 0x703   :  { %v3210_v54 = vmul.f32 0.5, %v6610_v45  ;;  %v6612_v8 = vpop.eup %6611  ;;  %v8894_v45 = vld [vmem:[#allocation25_spill] sm:$0xff] }
 0x704   :  { %v3207_v49 = vadd.f32 0.5, %v3206_v3  ;;  %v6614_v2 = vpop.eup %6613  ;;  %v8895_v3 = vld [vmem:[#allocation26_spill] sm:$0xff] }
 0x705   :  { %v3211_v41 = vadd.f32 0.5, %v3210_v54  ;;  %5914 = vmatpush1.bf16.msra.mxu0 %v8657_v6  ;;  %5946 = vmatpush1.bf16.msra.mxu1 %v8658_v0  ;;  %v8896_v54 = vld [vmem:[#allocation27_spill] sm:$0xff] }
 0x706   :  { %v3218_v57 = vmul.f32 %v6612_v8, %v3207_v49  ;;  %5916 = vmatprep.subr.bf16.mxu0 %v8716_v34  ;;  %5948 = vmatprep.subr.bf16.mxu1 %v8773_v12  ;;  %v8897_v49 = vld [vmem:[#allocation28_spill] sm:$0xff]  ;;  %v8898_v8 = vld [vmem:[#allocation29_spill] sm:$0xff] }
 0x707   :  { %v3217_v24 = vmul.f32 %v3211_v41, %v7853_v37  ;;  %v3215_v37 = vmul.f32 0.5, %v6614_v2  ;;  %v8899_v41 = vld [vmem:[#allocation30_spill] sm:$0xff]  ;;  %v8902_v2 = vld [vmem:[#allocation33_spill] sm:$0xff] }
 0x709   :  { %v7971_v23 = vadd.f32 %v3218_v57, %v3217_v24  ;;  %5918 = vmatpush1.bf16.msra.mxu0 %v8719_v59  ;;  %5950 = vmatpush1.bf16.msra.mxu1 %v8720_v32  ;;  %v3216_v40 = vadd.f32 0.5, %v3215_v37  ;;  %v8900_v57 = vld [vmem:[#allocation31_spill] sm:$0xff]  ;;  %v8901_v24 = vld [vmem:[#allocation32_spill] sm:$0xff]  ;;  %v8903_v37 = vld [vmem:[#allocation34_spill] sm:$0xff] }
 0x70a   :  { %5920 = vmatprep.subr.bf16.mxu0 %v8721_v55  ;;  %5952 = vmatprep.subr.bf16.mxu1 %v8722_v1 }
 0x70b   :  { %6615 = vtanh.f32 %v7971_v23 }
 0x70d   :  { %5922 = vmatpush1.bf16.msra.mxu0 %v8723_v52  ;;  %5954 = vmatpush1.bf16.msra.mxu1 %v8724_v43 }
 0x70e   :  { %5924 = vmatprep.subr.bf16.mxu0 %v8725_v35  ;;  %5956 = vmatprep.subr.bf16.mxu1 %v8669_v13 }
 0x711   :  { %5926 = vmatpush1.bf16.msra.mxu0 %v8670_v51  ;;  %5958 = vmatpush1.bf16.msra.mxu1 %v8671_v10 }
 0x712   :  { %5928 = vmatprep.subr.bf16.mxu0 %v8672_v19  ;;  %5960 = vmatprep.subr.bf16.mxu1 %v8673_v31 }
 0x715   :  { %v6616_v30 = vpop.eup %6615  ;;  %5930 = vmatpush1.bf16.msra.mxu0 %v8674_v36  ;;  %5962 = vmatpush1.bf16.msra.mxu1 %v8675_v9 }
 0x716   :  { %v3221_v44 = vmul.f32 %v6616_v30, %v3216_v40  ;;  %5964 = vmatprep.subr.bf16.mxu0 %v8676_v47  ;;  %5996 = vmatprep.subr.bf16.mxu1 %v8677_v61  ;;  %v8904_v40 = vld [vmem:[#allocation35_spill] sm:$0xff]  ;;  %v8905_v30 = vld [vmem:[#allocation36_spill] sm:$0xff] }
 0x718   :  { %3429 = vmatmul.mubr.f32.vlgmr.msra.gmra.mrb[26].mxu0 %v3221_v44  ;;  %3500 = vmatmul.mubr.f32.vlgmr.msra.gmra.mrb[26].mxu1 %v3221_v44 }
 0x719   :  { %5966 = vmatpush1.bf16.msra.mxu0 %v7007_v14  ;;  %5998 = vmatpush1.bf16.msra.mxu1 %v7011_v17 }
 0x71a   :  { %5968 = vmatprep.subr.bf16.mxu0 %v7020_v25  ;;  %6000 = vmatprep.subr.bf16.mxu1 %v7022_v26 }
 0x71b   :  { %3599 = vmatprep.mubr.f32.mxu0 %v8581_v5  ;;  %3670 = vmatprep.mubr.f32.mxu1 %v8581_v5 }
 0x71d   :  { %5970 = vmatpush1.bf16.msra.mxu0 %v8889_v53  ;;  %6002 = vmatpush1.bf16.msra.mxu1 %v8890_v58 }
 0x71e   :  { %5972 = vmatprep.subr.bf16.mxu0 %v8891_v60  ;;  %6004 = vmatprep.subr.bf16.mxu1 %v8892_v29 }
 0x721   :  { %5974 = vmatpush1.bf16.msra.mxu0 %v8893_v27  ;;  %6006 = vmatpush1.bf16.msra.mxu1 %v8894_v45 }
 0x722   :  { %5976 = vmatprep.subr.bf16.mxu0 %v8895_v3  ;;  %6008 = vmatprep.subr.bf16.mxu1 %v8896_v54  ;;  %v8906_v3 = vld [vmem:[#allocation37_spill] sm:$0xff]  ;;  %v8907_v54 = vld [vmem:[#allocation38_spill] sm:$0xff] }
 0x725   :  { %5978 = vmatpush1.bf16.msra.mxu0 %v8897_v49  ;;  %6010 = vmatpush1.bf16.msra.mxu1 %v8898_v8  ;;  %v8908_v49 = vld [vmem:[#allocation39_spill] sm:$0xff]  ;;  %v8909_v8 = vld [vmem:[#allocation40_spill] sm:$0xff] }
 0x726   :  { %5980 = vmatprep.subr.bf16.mxu0 %v8899_v41  ;;  %6012 = vmatprep.subr.bf16.mxu1 %v8900_v57  ;;  %v8910_v41 = vld [vmem:[#allocation41_spill] sm:$0xff]  ;;  %v8911_v57 = vld [vmem:[#allocation42_spill] sm:$0xff] }
 0x729   :  { %5982 = vmatpush1.bf16.msra.mxu0 %v8901_v24  ;;  %6014 = vmatpush1.bf16.msra.mxu1 %v8902_v2  ;;  %v8912_v24 = vld [vmem:[#allocation43_spill] sm:$0xff]  ;;  %v8913_v2 = vld [vmem:[#allocation44_spill] sm:$0xff] }
 0x72a   :  { %5984 = vmatprep.subr.bf16.mxu0 %v8903_v37  ;;  %6016 = vmatprep.subr.bf16.mxu1 %v8904_v40  ;;  %v8914_v37 = vld [vmem:[#allocation45_spill] sm:$0xff]  ;;  %v8915_v40 = vld [vmem:[#allocation46_spill] sm:$0xff] }
 0x72d   :  { %5986 = vmatpush1.bf16.msra.mxu0 %v8905_v30  ;;  %6018 = vmatpush1.bf16.msra.mxu1 %v8906_v3  ;;  %v8916_v30 = vld [vmem:[#allocation47_spill] sm:$0xff]  ;;  %v8949_v3 = vld [vmem:[#allocation113_spill] sm:$0xff] }
 0x72e   :  { %5988 = vmatprep.subr.bf16.mxu0 %v8907_v54  ;;  %6020 = vmatprep.subr.bf16.mxu1 %v8908_v49  ;;  %v8917_v54 = vld [vmem:[#allocation48_spill] sm:$0xff]  ;;  %v8918_v49 = vld [vmem:[#allocation49_spill] sm:$0xff] }
 0x731   :  { %5990 = vmatpush1.bf16.msra.mxu0 %v8909_v8  ;;  %6022 = vmatpush1.bf16.msra.mxu1 %v8910_v41  ;;  %v8919_v8 = vld [vmem:[#allocation50_spill] sm:$0xff]  ;;  %v8920_v41 = vld [vmem:[#allocation51_spill] sm:$0xff] }
 0x732   :  { %5992 = vmatprep.subr.bf16.mxu0 %v8911_v57  ;;  %6024 = vmatprep.subr.bf16.mxu1 %v8912_v24  ;;  %v8930_v24 = vld [vmem:[#allocation61_spill] sm:$0xff]  ;;  %v8931_v57 = vld [vmem:[#allocation62_spill] sm:$0xff] }
 0x735   :  { %5994 = vmatpush1.bf16.msra.mxu0 %v8913_v2  ;;  %6026 = vmatpush1.bf16.msra.mxu1 %v8914_v37  ;;  %v8921_v2 = vld [vmem:[#allocation52_spill] sm:$0xff]  ;;  %v8922_v37 = vld [vmem:[#allocation53_spill] sm:$0xff] }
 0x736   :  { %6028 = vmatprep.subr.bf16.mxu0 %v8915_v40  ;;  %6060 = vmatprep.subr.bf16.mxu1 %v8916_v30  ;;  %v8923_v40 = vld [vmem:[#allocation54_spill] sm:$0xff]  ;;  %v8924_v30 = vld [vmem:[#allocation55_spill] sm:$0xff] }
 0x738   :  { %3600 = vmatmul.mubr.f32.vlgmr.msra.gmra.mrb[12].mxu0 %v3221_v44  ;;  %3671 = vmatmul.mubr.f32.vlgmr.msra.gmra.mrb[12].mxu1 %v3221_v44  ;;  %v8925_v44 = vld [vmem:[#allocation56_spill] sm:$0xff] }
 0x739   :  { %6030 = vmatpush1.bf16.msra.mxu0 %v8917_v54  ;;  %6062 = vmatpush1.bf16.msra.mxu1 %v8918_v49  ;;  %v8926_v54 = vld [vmem:[#allocation57_spill] sm:$0xff]  ;;  %v8927_v49 = vld [vmem:[#allocation58_spill] sm:$0xff] }
 0x73a   :  { %6032 = vmatprep.subr.bf16.mxu0 %v8919_v8  ;;  %6064 = vmatprep.subr.bf16.mxu1 %v8920_v41  ;;  %v8928_v8 = vld [vmem:[#allocation59_spill] sm:$0xff]  ;;  %v8929_v41 = vld [vmem:[#allocation60_spill] sm:$0xff] }
 0x73b   :  { %3763 = vmatprep.mubr.f32.mxu0 %v8581_v5  ;;  %3834 = vmatprep.mubr.f32.mxu1 %v8581_v5 }
 0x73d   :  { %6034 = vmatpush1.bf16.msra.mxu0 %v8921_v2  ;;  %6066 = vmatpush1.bf16.msra.mxu1 %v8922_v37  ;;  %v8932_v2 = vld [vmem:[#allocation63_spill] sm:$0xff]  ;;  %v8933_v37 = vld [vmem:[#allocation64_spill] sm:$0xff] }
 0x73e   :  { %6036 = vmatprep.subr.bf16.mxu0 %v8923_v40  ;;  %6068 = vmatprep.subr.bf16.mxu1 %v8924_v30  ;;  %v8934_v40 = vld [vmem:[#allocation65_spill] sm:$0xff]  ;;  %v8935_v30 = vld [vmem:[#allocation66_spill] sm:$0xff] }
 0x741   :  { %6038 = vmatpush1.bf16.msra.mxu0 %v8925_v44  ;;  %6070 = vmatpush1.bf16.msra.mxu1 %v8926_v54  ;;  %v8936_v44 = vld [vmem:[#allocation67_spill] sm:$0xff]  ;;  %v8937_v54 = vld [vmem:[#allocation68_spill] sm:$0xff] }
 0x742   :  { %6040 = vmatprep.subr.bf16.mxu0 %v8927_v49  ;;  %6072 = vmatprep.subr.bf16.mxu1 %v8928_v8  ;;  %v8938_v49 = vld [vmem:[#allocation69_spill] sm:$0xff]  ;;  %v8939_v8 = vld [vmem:[#allocation70_spill] sm:$0xff] }
 0x745   :  { %6042 = vmatpush1.bf16.msra.mxu0 %v8929_v41  ;;  %6074 = vmatpush1.bf16.msra.mxu1 %v8930_v24  ;;  %v8940_v41 = vld [vmem:[#allocation71_spill] sm:$0xff]  ;;  %v8941_v24 = vld [vmem:[#allocation72_spill] sm:$0xff] }
 0x746   :  { %6044 = vmatprep.subr.bf16.mxu0 %v8931_v57  ;;  %6076 = vmatprep.subr.bf16.mxu1 %v8932_v2  ;;  %v8942_v57 = vld [vmem:[#allocation73_spill] sm:$0xff]  ;;  %v8943_v2 = vld [vmem:[#allocation74_spill] sm:$0xff] }
 0x749   :  { %6046 = vmatpush1.bf16.msra.mxu0 %v8933_v37  ;;  %6078 = vmatpush1.bf16.msra.mxu1 %v8934_v40  ;;  %v8944_v37 = vld [vmem:[#allocation75_spill] sm:$0xff]  ;;  %v8945_v40 = vld [vmem:[#allocation76_spill] sm:$0xff] }
 0x74a   :  { %6048 = vmatprep.subr.bf16.mxu0 %v8935_v30  ;;  %6080 = vmatprep.subr.bf16.mxu1 %v8936_v44  ;;  %v8946_v30 = vld [vmem:[#allocation77_spill] sm:$0xff]  ;;  %v8947_v44 = vld [vmem:[#allocation78_spill] sm:$0xff] }
 0x74d   :  { %6050 = vmatpush1.bf16.msra.mxu0 %v8937_v54  ;;  %6082 = vmatpush1.bf16.msra.mxu1 %v8938_v49  ;;  %v8948_v54 = vld [vmem:[#allocation79_spill] sm:$0xff] }
 0x74e   :  { %6052 = vmatprep.subr.bf16.mxu0 %v8939_v8  ;;  %6084 = vmatprep.subr.bf16.mxu1 %v8940_v41 }
 0x751   :  { %6054 = vmatpush1.bf16.msra.mxu0 %v8941_v24  ;;  %6086 = vmatpush1.bf16.msra.mxu1 %v8942_v57 }
 0x752   :  { %6056 = vmatprep.subr.bf16.mxu0 %v8943_v2  ;;  %6088 = vmatprep.subr.bf16.mxu1 %v8944_v37 }
 0x755   :  { %6058 = vmatpush1.bf16.msra.mxu0 %v8945_v40  ;;  %6090 = vmatpush1.bf16.msra.mxu1 %v8946_v30 }
 0x756   :  { %6092 = vmatprep.subr.bf16.mxu0 %v8947_v44  ;;  %6124 = vmatprep.subr.bf16.mxu1 %v8948_v54 }
 0x7eb   :  { %v3430_v49 = vpop.f32.mrb[26].mxu0  ;;  %v3501_v8 = vpop.f32.mrb[26].mxu1 }
 0x7ec   :  { %v3506_v41 = vadd.f32 %v3430_v49, %v8949_v3  ;;  %v3432_v45 = vpop.f32.mrb[27].mxu0  ;;  %v3503_v24 = vpop.f32.mrb[27].mxu1  ;;  %v3508_v37 = vadd.f32 %v3501_v8, %v8704_v50 }
 0x7ed   :  { %v3507_v57 = vadd.f32 %v3432_v45, %v8703_v16  ;;  %v3509_v30 = vadd.f32 %v3503_v24, %v8705_v56 }
 0x7ee   :  { %v3510_v27 = vmul.f32 0.5, %v3506_v41 }
 0x7ef   :  { %v3514_v2 = vmul.f32 0.5, %v3507_v57  ;;  %v3519_v44 = vmul.f32 0.5, %v3509_v30 }
 0x7f0   :  { %6617 = vtanh.f32 %v3510_v27 }
 0x7f1   :  { %6619 = vtanh.f32 %v3514_v2 }
 0x7f2   :  { %6621 = vtanh.f32 %v3508_v37 }
 0x7f3   :  { %6623 = vtanh.f32 %v3519_v44 }
 0x7fa   :  { %v6618_v40 = vpop.eup %6617 }
 0x7fb   :  { %v6620_v54 = vpop.eup %6619  ;;  %v3512_v29 = vmul.f32 0.5, %v6618_v40 }
 0x7fc   :  { %v3516_v60 = vmul.f32 0.5, %v6620_v54  ;;  %v6622_v3 = vpop.eup %6621 }
 0x7fd   :  { %v3513_v49 = vadd.f32 0.5, %v3512_v29  ;;  %v6624_v27 = vpop.eup %6623 }
 0x7fe   :  { %v3517_v58 = vadd.f32 0.5, %v3516_v60  ;;  %v3521_v8 = vmul.f32 0.5, %v6624_v27 }
 0x7ff   :  { %v3524_v53 = vmul.f32 %v6622_v3, %v3513_v49 }
 0x800   :  { %v3523_v45 = vmul.f32 %v3517_v58, %v7945_v4  ;;  %v3522_v54 = vadd.f32 0.5, %v3521_v8 }
 0x802   :  { %v8063_v41 = vadd.f32 %v3524_v53, %v3523_v45 }
 0x804   :  { %6625 = vtanh.f32 %v8063_v41 }
 0x80b   :  { %v3601_v57 = vpop.f32.mrb[12].mxu0  ;;  %v3672_v24 = vpop.f32.mrb[12].mxu1 }
 0x80c   :  { %v6407_v2 = vadd.f32 %v3601_v57, %v8643_v62  ;;  %v3603_v37 = vpop.f32.mrb[13].mxu0  ;;  %v3674_v40 = vpop.f32.mrb[13].mxu1  ;;  %v6423_v4 = vadd.f32 %v3672_v24, %v7372_v11 }
 0x80d   :  { %v6408_v29 = vadd.f32 %v3603_v37, %v8644_v39  ;;  %v6424_v53 = vadd.f32 %v3674_v40, %v8708_v42 }
 0x80e   :  { %v6626_v30 = vpop.eup %6625  ;;  %v3681_v60 = vmul.f32 0.5, %v6407_v2 }
 0x80f   :  { %v3527_v3 = vmul.f32 %v6626_v30, %v3522_v54  ;;  %v3685_v44 = vmul.f32 0.5, %v6408_v29  ;;  %v3690_v58 = vmul.f32 0.5, %v6424_v53  ;;  %v8954_v53 = vld [vmem:[#allocation24_spill] sm:$0xff] }
 0x810   :  { %6627 = vtanh.f32 %v3681_v60 }
 0x811   :  { %6629 = vtanh.f32 %v3685_v44  ;;  %3764 = vmatmul.mubr.f32.vlgmr.msra.gmra.mrb[28].mxu0 %v3527_v3  ;;  %3835 = vmatmul.mubr.f32.vlgmr.msra.gmra.mrb[28].mxu1 %v3527_v3  ;;  %v8950_v44 = vld [vmem:[#allocation20_spill] sm:$0xff] }
 0x812   :  { %6094 = vmatpush1.bf16.msra.mxu0 %v8645_v18  ;;  %6126 = vmatpush1.bf16.msra.mxu1 %v8646_v22  ;;  %6631 = vtanh.f32 %v6423_v4  ;;  %v8951_v4 = vld [vmem:[#allocation21_spill] sm:$0xff] }
 0x813   :  { %6096 = vmatprep.subr.bf16.mxu0 %v8706_v46  ;;  %6128 = vmatprep.subr.bf16.mxu1 %v8707_v63  ;;  %6633 = vtanh.f32 %v3690_v58  ;;  %v8959_v58 = vld [vmem:[#allocation29_spill] sm:$0xff] }
 0x814   :  { %3905 = vmatprep.mubr.f32.mxu0 %v8581_v5  ;;  %3976 = vmatprep.mubr.f32.mxu1 %v8581_v5 }
 0x816   :  { %6098 = vmatpush1.bf16.msra.mxu0 %v8709_v15  ;;  %6130 = vmatpush1.bf16.msra.mxu1 %v8767_v33 }
 0x817   :  { %6100 = vmatprep.subr.bf16.mxu0 %v8768_v38  ;;  %6132 = vmatprep.subr.bf16.mxu1 %v8769_v7 }
 0x81a   :  { %v6628_v49 = vpop.eup %6627  ;;  %6102 = vmatpush1.bf16.msra.mxu0 %v8770_v20  ;;  %6134 = vmatpush1.bf16.msra.mxu1 %v8771_v28 }
 0x81b   :  { %v6630_v45 = vpop.eup %6629  ;;  %v3683_v27 = vmul.f32 0.5, %v6628_v49  ;;  %6104 = vmatprep.subr.bf16.mxu0 %v8772_v21  ;;  %6136 = vmatprep.subr.bf16.mxu1 %v8656_v48  ;;  %v8960_v49 = vld [vmem:[#allocation30_spill] sm:$0xff] }
 0x81c   :  { %v3687_v8 = vmul.f32 0.5, %v6630_v45  ;;  %v6632_v24 = vpop.eup %6631  ;;  %v8961_v45 = vld [vmem:[#allocation31_spill] sm:$0xff] }
 0x81d   :  { %v3684_v57 = vadd.f32 0.5, %v3683_v27  ;;  %v6634_v29 = vpop.eup %6633  ;;  %v8962_v27 = vld [vmem:[#allocation32_spill] sm:$0xff] }
 0x81e   :  { %v3688_v2 = vadd.f32 0.5, %v3687_v8  ;;  %6106 = vmatpush1.bf16.msra.mxu0 %v8657_v6  ;;  %6138 = vmatpush1.bf16.msra.mxu1 %v8658_v0  ;;  %v8963_v8 = vld [vmem:[#allocation33_spill] sm:$0xff] }
 0x81f   :  { %v3695_v37 = vmul.f32 %v6632_v24, %v3684_v57  ;;  %6108 = vmatprep.subr.bf16.mxu0 %v8716_v34  ;;  %6140 = vmatprep.subr.bf16.mxu1 %v8773_v12  ;;  %v8964_v57 = vld [vmem:[#allocation34_spill] sm:$0xff]  ;;  %v8965_v24 = vld [vmem:[#allocation35_spill] sm:$0xff] }
 0x820   :  { %v3694_v40 = vmul.f32 %v3688_v2, %v7971_v23  ;;  %v3692_v23 = vmul.f32 0.5, %v6634_v29  ;;  %v8966_v2 = vld [vmem:[#allocation36_spill] sm:$0xff]  ;;  %v8969_v29 = vld [vmem:[#allocation39_spill] sm:$0xff] }
 0x822   :  { %v8089_v54 = vadd.f32 %v3695_v37, %v3694_v40  ;;  %6110 = vmatpush1.bf16.msra.mxu0 %v8719_v59  ;;  %6142 = vmatpush1.bf16.msra.mxu1 %v8720_v32  ;;  %v3693_v30 = vadd.f32 0.5, %v3692_v23  ;;  %v8967_v37 = vld [vmem:[#allocation37_spill] sm:$0xff]  ;;  %v8968_v40 = vld [vmem:[#allocation38_spill] sm:$0xff]  ;;  %v8970_v23 = vld [vmem:[#allocation40_spill] sm:$0xff] }
 0x823   :  { %6112 = vmatprep.subr.bf16.mxu0 %v8721_v55  ;;  %6144 = vmatprep.subr.bf16.mxu1 %v8722_v1 }
 0x824   :  { %6635 = vtanh.f32 %v8089_v54 }
 0x826   :  { %6114 = vmatpush1.bf16.msra.mxu0 %v8723_v52  ;;  %6146 = vmatpush1.bf16.msra.mxu1 %v8724_v43 }
 0x827   :  { %6116 = vmatprep.subr.bf16.mxu0 %v8725_v35  ;;  %6148 = vmatprep.subr.bf16.mxu1 %v8669_v13 }
 0x82a   :  { %6118 = vmatpush1.bf16.msra.mxu0 %v8670_v51  ;;  %6150 = vmatpush1.bf16.msra.mxu1 %v8671_v10 }
 0x82b   :  { %6120 = vmatprep.subr.bf16.mxu0 %v8672_v19  ;;  %6152 = vmatprep.subr.bf16.mxu1 %v8673_v31 }
 0x82e   :  { %v6636_v60 = vpop.eup %6635  ;;  %6122 = vmatpush1.bf16.msra.mxu0 %v8674_v36  ;;  %6154 = vmatpush1.bf16.msra.mxu1 %v8675_v9 }
 0x82f   :  { %v3698_v3 = vmul.f32 %v6636_v60, %v3693_v30  ;;  %6156 = vmatprep.subr.bf16.mxu0 %v8676_v47  ;;  %6188 = vmatprep.subr.bf16.mxu1 %v8677_v61  ;;  %v8952_v47 = vld [vmem:[#allocation22_spill] sm:$0xff]  ;;  %v8953_v61 = vld [vmem:[#allocation23_spill] sm:$0xff]  ;;  %v8971_v30 = vld [vmem:[#allocation41_spill] sm:$0xff] }
 0x830   :  { %v8972_v60 = vld [vmem:[#allocation42_spill] sm:$0xff] }
 0x831   :  { %3906 = vmatmul.mubr.f32.vlgmr.msra.gmra.mrb[28].mxu0 %v3698_v3  ;;  %3977 = vmatmul.mubr.f32.vlgmr.msra.gmra.mrb[28].mxu1 %v3698_v3 }
 0x832   :  { %6158 = vmatpush1.bf16.msra.mxu0 %v7007_v14  ;;  %6190 = vmatpush1.bf16.msra.mxu1 %v7011_v17  ;;  %v8955_v14 = vld [vmem:[#allocation25_spill] sm:$0xff]  ;;  %v8956_v17 = vld [vmem:[#allocation26_spill] sm:$0xff] }
 0x833   :  { %6160 = vmatprep.subr.bf16.mxu0 %v7020_v25  ;;  %6192 = vmatprep.subr.bf16.mxu1 %v7022_v26  ;;  %v8957_v25 = vld [vmem:[#allocation27_spill] sm:$0xff]  ;;  %v8958_v26 = vld [vmem:[#allocation28_spill] sm:$0xff] }
 0x834   :  { %4076 = vmatprep.mubr.f32.mxu0 %v8581_v5  ;;  %4147 = vmatprep.mubr.f32.mxu1 %v8581_v5 }
 0x836   :  { %6162 = vmatpush1.bf16.msra.mxu0 %v8950_v44  ;;  %6194 = vmatpush1.bf16.msra.mxu1 %v8951_v4  ;;  %v8973_v44 = vld [vmem:[#allocation43_spill] sm:$0xff]  ;;  %v8974_v4 = vld [vmem:[#allocation44_spill] sm:$0xff] }
 0x837   :  { %6164 = vmatprep.subr.bf16.mxu0 %v8952_v47  ;;  %6196 = vmatprep.subr.bf16.mxu1 %v8953_v61  ;;  %v8975_v47 = vld [vmem:[#allocation45_spill] sm:$0xff]  ;;  %v8976_v61 = vld [vmem:[#allocation46_spill] sm:$0xff] }
 0x83a   :  { %6166 = vmatpush1.bf16.msra.mxu0 %v8954_v53  ;;  %6198 = vmatpush1.bf16.msra.mxu1 %v8955_v14  ;;  %v8977_v53 = vld [vmem:[#allocation47_spill] sm:$0xff]  ;;  %v8978_v14 = vld [vmem:[#allocation48_spill] sm:$0xff] }
 0x83b   :  { %6168 = vmatprep.subr.bf16.mxu0 %v8956_v17  ;;  %6200 = vmatprep.subr.bf16.mxu1 %v8957_v25  ;;  %v8979_v17 = vld [vmem:[#allocation49_spill] sm:$0xff]  ;;  %v8980_v25 = vld [vmem:[#allocation50_spill] sm:$0xff] }
 0x83e   :  { %6170 = vmatpush1.bf16.msra.mxu0 %v8958_v26  ;;  %6202 = vmatpush1.bf16.msra.mxu1 %v8959_v58  ;;  %v8981_v26 = vld [vmem:[#allocation51_spill] sm:$0xff]  ;;  %v8982_v58 = vld [vmem:[#allocation52_spill] sm:$0xff] }
 0x83f   :  { %6172 = vmatprep.subr.bf16.mxu0 %v8960_v49  ;;  %6204 = vmatprep.subr.bf16.mxu1 %v8961_v45  ;;  %v8983_v49 = vld [vmem:[#allocation53_spill] sm:$0xff]  ;;  %v8984_v45 = vld [vmem:[#allocation54_spill] sm:$0xff] }
 0x842   :  { %6174 = vmatpush1.bf16.msra.mxu0 %v8962_v27  ;;  %6206 = vmatpush1.bf16.msra.mxu1 %v8963_v8  ;;  %v8985_v27 = vld [vmem:[#allocation55_spill] sm:$0xff]  ;;  %v8987_v8 = vld [vmem:[#allocation57_spill] sm:$0xff] }
 0x843   :  { %6176 = vmatprep.subr.bf16.mxu0 %v8964_v57  ;;  %6208 = vmatprep.subr.bf16.mxu1 %v8965_v24  ;;  %v8988_v57 = vld [vmem:[#allocation58_spill] sm:$0xff]  ;;  %v8989_v24 = vld [vmem:[#allocation59_spill] sm:$0xff] }
 0x846   :  { %6178 = vmatpush1.bf16.msra.mxu0 %v8966_v2  ;;  %6210 = vmatpush1.bf16.msra.mxu1 %v8967_v37  ;;  %v8990_v2 = vld [vmem:[#allocation60_spill] sm:$0xff]  ;;  %v8991_v37 = vld [vmem:[#allocation61_spill] sm:$0xff] }
 0x847   :  { %6180 = vmatprep.subr.bf16.mxu0 %v8968_v40  ;;  %6212 = vmatprep.subr.bf16.mxu1 %v8969_v29  ;;  %v8992_v40 = vld [vmem:[#allocation62_spill] sm:$0xff]  ;;  %v8993_v29 = vld [vmem:[#allocation63_spill] sm:$0xff] }
 0x84a   :  { %6182 = vmatpush1.bf16.msra.mxu0 %v8970_v23  ;;  %6214 = vmatpush1.bf16.msra.mxu1 %v8971_v30  ;;  %v8994_v23 = vld [vmem:[#allocation64_spill] sm:$0xff]  ;;  %v8995_v30 = vld [vmem:[#allocation65_spill] sm:$0xff] }
 0x84b   :  { %6184 = vmatprep.subr.bf16.mxu0 %v8972_v60  ;;  %6216 = vmatprep.subr.bf16.mxu1 %v8973_v44  ;;  %v8996_v60 = vld [vmem:[#allocation66_spill] sm:$0xff]  ;;  %v8997_v44 = vld [vmem:[#allocation67_spill] sm:$0xff] }
 0x84e   :  { %6186 = vmatpush1.bf16.msra.mxu0 %v8974_v4  ;;  %6218 = vmatpush1.bf16.msra.mxu1 %v8975_v47  ;;  %v8998_v4 = vld [vmem:[#allocation68_spill] sm:$0xff]  ;;  %v8999_v47 = vld [vmem:[#allocation69_spill] sm:$0xff] }
 0x84f   :  { %6220 = vmatprep.subr.bf16.mxu0 %v8976_v61  ;;  %6252 = vmatprep.subr.bf16.mxu1 %v8977_v53  ;;  %v9000_v61 = vld [vmem:[#allocation70_spill] sm:$0xff]  ;;  %v9001_v53 = vld [vmem:[#allocation71_spill] sm:$0xff] }
 0x851   :  { %4077 = vmatmul.mubr.f32.vlgmr.msra.gmra.mrb[14].mxu0 %v3698_v3  ;;  %4148 = vmatmul.mubr.f32.vlgmr.msra.gmra.mrb[14].mxu1 %v3698_v3  ;;  %v8986_v3 = vld [vmem:[#allocation56_spill] sm:$0xff] }
 0x852   :  { %6222 = vmatpush1.bf16.msra.mxu0 %v8978_v14  ;;  %6254 = vmatpush1.bf16.msra.mxu1 %v8979_v17  ;;  %v9002_v14 = vld [vmem:[#allocation72_spill] sm:$0xff]  ;;  %v9003_v17 = vld [vmem:[#allocation73_spill] sm:$0xff] }
 0x853   :  { %6224 = vmatprep.subr.bf16.mxu0 %v8980_v25  ;;  %6256 = vmatprep.subr.bf16.mxu1 %v8981_v26  ;;  %v9004_v25 = vld [vmem:[#allocation74_spill] sm:$0xff]  ;;  %v9005_v26 = vld [vmem:[#allocation75_spill] sm:$0xff] }
 0x854   :  { %4240 = vmatprep.mubr.f32.mxu0 %v8581_v5  ;;  %4311 = vmatprep.mubr.f32.mxu1 %v8581_v5 }
 0x856   :  { %6226 = vmatpush1.bf16.msra.mxu0 %v8982_v58  ;;  %6258 = vmatpush1.bf16.msra.mxu1 %v8983_v49  ;;  %v9006_v58 = vld [vmem:[#allocation76_spill] sm:$0xff]  ;;  %v9007_v49 = vld [vmem:[#allocation77_spill] sm:$0xff] }
 0x857   :  { %6228 = vmatprep.subr.bf16.mxu0 %v8984_v45  ;;  %6260 = vmatprep.subr.bf16.mxu1 %v8985_v27  ;;  %v9008_v45 = vld [vmem:[#allocation78_spill] sm:$0xff]  ;;  %v9009_v27 = vld [vmem:[#allocation79_spill] sm:$0xff] }
 0x85a   :  { %6230 = vmatpush1.bf16.msra.mxu0 %v8986_v3  ;;  %6262 = vmatpush1.bf16.msra.mxu1 %v8987_v8 }
 0x85b   :  { %6232 = vmatprep.subr.bf16.mxu0 %v8988_v57  ;;  %6264 = vmatprep.subr.bf16.mxu1 %v8989_v24  ;;  %v9010_v57 = vld [vmem:[#allocation113_spill] sm:$0xff] }
 0x85e   :  { %6234 = vmatpush1.bf16.msra.mxu0 %v8990_v2  ;;  %6266 = vmatpush1.bf16.msra.mxu1 %v8991_v37 }
 0x85f   :  { %6236 = vmatprep.subr.bf16.mxu0 %v8992_v40  ;;  %6268 = vmatprep.subr.bf16.mxu1 %v8993_v29 }
 0x862   :  { %6238 = vmatpush1.bf16.msra.mxu0 %v8994_v23  ;;  %6270 = vmatpush1.bf16.msra.mxu1 %v8995_v30 }
 0x863   :  { %6240 = vmatprep.subr.bf16.mxu0 %v8996_v60  ;;  %6272 = vmatprep.subr.bf16.mxu1 %v8997_v44 }
 0x866   :  { %6242 = vmatpush1.bf16.msra.mxu0 %v8998_v4  ;;  %6274 = vmatpush1.bf16.msra.mxu1 %v8999_v47 }
 0x867   :  { %6244 = vmatprep.subr.bf16.mxu0 %v9000_v61  ;;  %6276 = vmatprep.subr.bf16.mxu1 %v9001_v53 }
 0x86a   :  { %6246 = vmatpush1.bf16.msra.mxu0 %v9002_v14  ;;  %6278 = vmatpush1.bf16.msra.mxu1 %v9003_v17 }
 0x86b   :  { %6248 = vmatprep.subr.bf16.mxu0 %v9004_v25  ;;  %6280 = vmatprep.subr.bf16.mxu1 %v9005_v26 }
 0x86e   :  { %6250 = vmatpush1.bf16.msra.mxu0 %v9006_v58  ;;  %6282 = vmatpush1.bf16.msra.mxu1 %v9007_v49 }
 0x86f   :  { %6284 = vmatprep.subr.bf16.mxu0 %v9008_v45  ;;  %6316 = vmatprep.subr.bf16.mxu1 %v9009_v27 }
 0x904   :  { %v3907_v3 = vpop.f32.mrb[28].mxu0  ;;  %v3978_v8 = vpop.f32.mrb[28].mxu1 }
 0x905   :  { %v3983_v24 = vadd.f32 %v3907_v3, %v9010_v57  ;;  %v3909_v2 = vpop.f32.mrb[29].mxu0  ;;  %v3980_v37 = vpop.f32.mrb[29].mxu1  ;;  %v3985_v30 = vadd.f32 %v3978_v8, %v8704_v50 }
 0x906   :  { %v3984_v40 = vadd.f32 %v3909_v2, %v8703_v16  ;;  %v3986_v60 = vadd.f32 %v3980_v37, %v8705_v56 }
 0x907   :  { %v3987_v29 = vmul.f32 0.5, %v3983_v24 }
 0x908   :  { %v3991_v23 = vmul.f32 0.5, %v3984_v40  ;;  %v3996_v44 = vmul.f32 0.5, %v3986_v60 }
 0x909   :  { %6637 = vtanh.f32 %v3987_v29 }
 0x90a   :  { %6639 = vtanh.f32 %v3991_v23 }
 0x90b   :  { %6641 = vtanh.f32 %v3985_v30 }
 0x90c   :  { %6643 = vtanh.f32 %v3996_v44 }
 0x913   :  { %v6638_v4 = vpop.eup %6637 }
 0x914   :  { %v6640_v47 = vpop.eup %6639  ;;  %v3989_v61 = vmul.f32 0.5, %v6638_v4 }
 0x915   :  { %v3993_v53 = vmul.f32 0.5, %v6640_v47  ;;  %v6642_v17 = vpop.eup %6641  ;;  %v4494_v47 = vld [vmem:[#allocation13 + $0x60] sm:$0xff] }
 0x916   :  { %v3990_v14 = vadd.f32 0.5, %v3989_v61  ;;  %v6644_v45 = vpop.eup %6643  ;;  %v4495_v61 = vld [vmem:[#allocation13 + $0x68] sm:$0xff] }
 0x917   :  { %v3994_v25 = vadd.f32 0.5, %v3993_v53  ;;  %v3998_v27 = vmul.f32 0.5, %v6644_v45  ;;  %v6366_v53 = vpack.c.bf16 %v4495_v61, %v4494_v47  ;;  %v4578_v45 = vld [vmem:[%s8310_s9 + $0x10] sm:$0xff] }
 0x918   :  { %v4001_v26 = vmul.f32 %v6642_v17, %v3990_v14  ;;  %v4496_v14 = vld [vmem:[#allocation13 + $0x70] sm:$0xff]  ;;  %v4497_v17 = vld [vmem:[#allocation13 + $0x78] sm:$0xff] }
 0x919   :  { %v4000_v58 = vmul.f32 %v3994_v25, %v8063_v41  ;;  %v3999_v40 = vadd.f32 0.5, %v3998_v27  ;;  %v6369_v25 = vpack.c.bf16 %v4497_v17, %v4496_v14 }
 0x91b   :  { %v8181_v49 = vadd.f32 %v4001_v26, %v4000_v58  ;;  %v4576_v26 = vld [vmem:[%s8310_s9] sm:$0xff]  ;;  %v4577_v58 = vld [vmem:[%s8310_s9 + $0x8] sm:$0xff] }
 0x91c   :  { %v6372_v27 = vpack.c.bf16 %v4577_v58, %v4576_v26 }
 0x91d   :  { %6645 = vtanh.f32 %v8181_v49 }
 0x924   :  { %v4078_v3 = vpop.f32.mrb[14].mxu0  ;;  %v4149_v8 = vpop.f32.mrb[14].mxu1 }
 0x925   :  { %v6409_v24 = vadd.f32 %v4078_v3, %v8643_v62  ;;  %v4080_v2 = vpop.f32.mrb[15].mxu0  ;;  %v4151_v37 = vpop.f32.mrb[15].mxu1  ;;  %v6425_v41 = vadd.f32 %v4149_v8, %v7372_v11  ;;  %v4579_v3 = vld [vmem:[%s8310_s9 + $0x18] sm:$0xff] }
 0x926   :  { %v6410_v29 = vadd.f32 %v4080_v2, %v8644_v39  ;;  %v6426_v62 = vadd.f32 %v4151_v37, %v8708_v42  ;;  %v6375_v8 = vpack.c.bf16 %v4579_v3, %v4578_v45  ;;  %v4582_v37 = vld [vmem:[%s8310_s9 + $0x30] sm:$0xff] }
 0x927   :  { %v6646_v23 = vpop.eup %6645  ;;  %v4158_v30 = vmul.f32 0.5, %v6409_v24  ;;  %v4581_v24 = vld [vmem:[%s8310_s9 + $0x28] sm:$0xff] }
 0x928   :  { %v4004_v60 = vmul.f32 %v6646_v23, %v3999_v40  ;;  %v4162_v44 = vmul.f32 0.5, %v6410_v29  ;;  %v4167_v11 = vmul.f32 0.5, %v6426_v62  ;;  %v4583_v40 = vld [vmem:[%s8310_s9 + $0x38] sm:$0xff]  ;;  %v4584_v23 = vld [vmem:[%s8310_s9 + $0x40] sm:$0xff] }
 0x929   :  { %6647 = vtanh.f32 %v4158_v30  ;;  %v6381_v29 = vpack.c.bf16 %v4583_v40, %v4582_v37  ;;  %v4585_v30 = vld [vmem:[%s8310_s9 + $0x48] sm:$0xff] }
 0x92a   :  { %6649 = vtanh.f32 %v4162_v44  ;;  %4241 = vmatmul.mubr.f32.vlgmr.msra.gmra.mrb[30].mxu0 %v4004_v60  ;;  %4312 = vmatmul.mubr.f32.vlgmr.msra.gmra.mrb[30].mxu1 %v4004_v60  ;;  %v6384_v60 = vpack.c.bf16 %v4585_v30, %v4584_v23  ;;  %v4586_v44 = vld [vmem:[%s8310_s9 + $0x50] sm:$0xff] }
 0x92b   :  { %6286 = vmatpush1.bf16.msra.mxu0 %v8645_v18  ;;  %6318 = vmatpush1.bf16.msra.mxu1 %v8646_v22  ;;  %6651 = vtanh.f32 %v6425_v41  ;;  %v4587_v41 = vld [vmem:[%s8310_s9 + $0x58] sm:$0xff] }
 0x92c   :  { %6288 = vmatprep.subr.bf16.mxu0 %v8706_v46  ;;  %6320 = vmatprep.subr.bf16.mxu1 %v8707_v63  ;;  %6653 = vtanh.f32 %v4167_v11  ;;  %v6387_v62 = vpack.c.bf16 %v4587_v41, %v4586_v44  ;;  %v4588_v11 = vld [vmem:[%s8310_s9 + $0x60] sm:$0xff] }
 0x92d   :  { %4382 = vmatprep.mubr.f32.mxu0 %v8581_v5  ;;  %4453 = vmatprep.mubr.f32.mxu1 %v8581_v5 }
 0x92f   :  { %6290 = vmatpush1.bf16.msra.mxu0 %v8709_v15  ;;  %6322 = vmatpush1.bf16.msra.mxu1 %v8767_v33 }
 0x930   :  { %6292 = vmatprep.subr.bf16.mxu0 %v8768_v38  ;;  %6324 = vmatprep.subr.bf16.mxu1 %v8769_v7 }
 0x933   :  { %v6648_v39 = vpop.eup %6647  ;;  %6294 = vmatpush1.bf16.msra.mxu0 %v8770_v20  ;;  %6326 = vmatpush1.bf16.msra.mxu1 %v8771_v28  ;;  %v4490_v20 = vld [vmem:[#allocation13 + $0x40] sm:$0xff]  ;;  %v4491_v28 = vld [vmem:[#allocation13 + $0x48] sm:$0xff] }
 0x934   :  { %v6650_v18 = vpop.eup %6649  ;;  %v4160_v22 = vmul.f32 0.5, %v6648_v39  ;;  %6296 = vmatprep.subr.bf16.mxu0 %v8772_v21  ;;  %6328 = vmatprep.subr.bf16.mxu1 %v8656_v48  ;;  %v6360_v21 = vpack.c.bf16 %v4491_v28, %v4490_v20  ;;  %v4589_v39 = vld [vmem:[%s8310_s9 + $0x68] sm:$0xff] }
 0x935   :  { %v4164_v46 = vmul.f32 0.5, %v6650_v18  ;;  %v6652_v42 = vpop.eup %6651  ;;  %v6390_v18 = vpack.c.bf16 %v4589_v39, %v4588_v11 }
 0x936   :  { %v4161_v63 = vadd.f32 0.5, %v4160_v22 }
 0x937   :  { %v4165_v15 = vadd.f32 0.5, %v4164_v46  ;;  %6298 = vmatpush1.bf16.msra.mxu0 %v8657_v6  ;;  %6330 = vmatpush1.bf16.msra.mxu1 %v8658_v0  ;;  %v6654_v6 = vpop.eup %6653 }
 0x938   :  { %v4172_v33 = vmul.f32 %v6652_v42, %v4161_v63  ;;  %6300 = vmatprep.subr.bf16.mxu0 %v8716_v34  ;;  %6332 = vmatprep.subr.bf16.mxu1 %v8773_v12  ;;  %v4169_v0 = vmul.f32 0.5, %v6654_v6  ;;  %v4492_v12 = vld [vmem:[#allocation13 + $0x50] sm:$0xff] }
 0x939   :  { %v4171_v38 = vmul.f32 %v4165_v15, %v8089_v54  ;;  %v4493_v54 = vld [vmem:[#allocation13 + $0x58] sm:$0xff] }
 0x93a   :  { %v4170_v48 = vadd.f32 0.5, %v4169_v0  ;;  %v6363_v4 = vpack.c.bf16 %v4493_v54, %v4492_v12  ;;  %v4706_v12 = vld [vmem:[%s8311_s10] ss:$0 sm:$0xff] }
 0x93b   :  { %v4173_v7 = vadd.f32 %v4172_v33, %v4171_v38  ;;  %6302 = vmatpush1.bf16.msra.mxu0 %v8719_v59  ;;  %6334 = vmatpush1.bf16.msra.mxu1 %v8720_v32 }
 0x93c   :  { %6304 = vmatprep.subr.bf16.mxu0 %v8721_v55  ;;  %6336 = vmatprep.subr.bf16.mxu1 %v8722_v1  ;;  %v6841_v55 = vmov 0.0|0.0   ;;  %v4488_v1 = vld [vmem:[#allocation13 + $0x30] sm:$0xff] }
 0x93d   :  { %6655 = vtanh.f32 %v4173_v7 }
 0x93f   :  { %6306 = vmatpush1.bf16.msra.mxu0 %v8723_v52  ;;  %6338 = vmatpush1.bf16.msra.mxu1 %v8724_v43  ;;  %v4489_v52 = vld [vmem:[#allocation13 + $0x38] sm:$0xff] }
 0x940   :  { %6308 = vmatprep.subr.bf16.mxu0 %v8725_v35  ;;  %6340 = vmatprep.subr.bf16.mxu1 %v8669_v13  ;;  %v4482_v35 = vld [vmem:[#allocation13] sm:$0xff]  ;;  %v4483_v13 = vld [vmem:[#allocation13 + $0x8] sm:$0xff]  ;;  %v6357_v43 = vpack.c.bf16 %v4489_v52, %v4488_v1 }
 0x941   :  { %v6348_v32 = vpack.c.bf16 %v4483_v13, %v4482_v35  ;;  %v4591_v1 = vld [vmem:[%s8310_s9 + $0x78] sm:$0xff] }
 0x943   :  { %6310 = vmatpush1.bf16.msra.mxu0 %v8670_v51  ;;  %6342 = vmatpush1.bf16.msra.mxu1 %v8671_v10 }
 0x944   :  { %6312 = vmatprep.subr.bf16.mxu0 %v8672_v19  ;;  %6344 = vmatprep.subr.bf16.mxu1 %v8673_v31  ;;  %v4484_v19 = vld [vmem:[#allocation13 + $0x10] sm:$0xff]  ;;  %v4485_v31 = vld [vmem:[#allocation13 + $0x18] sm:$0xff] }
 0x945   :  { %v6351_v51 = vpack.c.bf16 %v4485_v31, %v4484_v19 }
 0x947   :  { %v6656_v34 = vpop.eup %6655  ;;  %6314 = vmatpush1.bf16.msra.mxu0 %v8674_v36  ;;  %6346 = vmatpush1.bf16.msra.mxu1 %v8675_v9  ;;  %v4486_v36 = vld [vmem:[#allocation13 + $0x20] sm:$0xff]  ;;  %v4487_v9 = vld [vmem:[#allocation13 + $0x28] sm:$0xff] }
 0x948   :  { %v4175_v59 = vmul.f32 %v6656_v34, %v4170_v48  ;;  %6347 = vmatprep.subr.bf16.mxu0 %v6841_v55  ;;  %6371 = vmatprep.subr.bf16.mxu1 %v6841_v55  ;;  %v6354_v10 = vpack.c.bf16 %v4487_v9, %v4486_v36 }
 0x94a   :  { %4383 = vmatmul.mubr.f32.vlgmr.msra.gmra.mrb[30].mxu0 %v4175_v59  ;;  %4454 = vmatmul.mubr.f32.vlgmr.msra.gmra.mrb[30].mxu1 %v4175_v59 }
 0x94b   :  { %6349 = vmatpush3.bf16.msra.mxu0 %v6348_v32  ;;  %4773 = vmatprep.mubr.msk.f32.mxu0 %vm6842_vm2, %v8581_v5 }
 0x94c   :  { %6350 = vmatprep.subr.bf16.mxu0 %v6841_v55  ;;  %4808 = vmatprep.mubr.msk.f32.mxu1 %vm6842_vm2, %v8581_v5  ;;  %v4580_v5 = vld [vmem:[%s8310_s9 + $0x20] sm:$0xff] }
 0x94d   :  { %6373 = vmatpush3.bf16.msra.mxu1 %v6372_v27  ;;  %v6378_v2 = vpack.c.bf16 %v4581_v24, %v4580_v5 }
 0x94e   :  { %6374 = vmatprep.subr.bf16.mxu1 %v6841_v55 }
 0x94f   :  { %6352 = vmatpush3.bf16.msra.mxu0 %v6351_v51 }
 0x950   :  { %6353 = vmatprep.subr.bf16.mxu0 %v6841_v55 }
 0x951   :  { %6376 = vmatpush3.bf16.msra.mxu1 %v6375_v8 }
 0x952   :  { %6377 = vmatprep.subr.bf16.mxu1 %v6841_v55 }
 0x953   :  { %6355 = vmatpush3.bf16.msra.mxu0 %v6354_v10 }
 0x954   :  { %6356 = vmatprep.subr.bf16.mxu0 %v6841_v55 }
 0x955   :  { %6379 = vmatpush3.bf16.msra.mxu1 %v6378_v2 }
 0x956   :  { %6380 = vmatprep.subr.bf16.mxu1 %v6841_v55 }
 0x957   :  { %6358 = vmatpush3.bf16.msra.mxu0 %v6357_v43 }
 0x958   :  { %6359 = vmatprep.subr.bf16.mxu0 %v6841_v55 }
 0x959   :  { %6382 = vmatpush3.bf16.msra.mxu1 %v6381_v29 }
 0x95a   :  { %6383 = vmatprep.subr.bf16.mxu1 %v6841_v55 }
 0x95b   :  { %6361 = vmatpush3.bf16.msra.mxu0 %v6360_v21 }
 0x95c   :  { %6362 = vmatprep.subr.bf16.mxu0 %v6841_v55 }
 0x95d   :  { %6385 = vmatpush3.bf16.msra.mxu1 %v6384_v60 }
 0x95e   :  { %6386 = vmatprep.subr.bf16.mxu1 %v6841_v55 }
 0x95f   :  { %6364 = vmatpush3.bf16.msra.mxu0 %v6363_v4 }
 0x960   :  { %6365 = vmatprep.subr.bf16.mxu0 %v6841_v55 }
 0x961   :  { %6388 = vmatpush3.bf16.msra.mxu1 %v6387_v62 }
 0x962   :  { %6389 = vmatprep.subr.bf16.mxu1 %v6841_v55 }
 0x963   :  { %6367 = vmatpush3.bf16.msra.mxu0 %v6366_v53 }
 0x964   :  { %6368 = vmatprep.subr.bf16.mxu0 %v6841_v55 }
 0x965   :  { %6391 = vmatpush3.bf16.msra.mxu1 %v6390_v18 }
 0x966   :  { %6392 = vmatprep.subr.bf16.mxu1 %v6841_v55 }
 0x967   :  { %6370 = vmatpush3.bf16.msra.mxu0 %v6369_v25 }
 0xa1d   :  { %v4384_v22 = vpop.f32.mrb[30].mxu0  ;;  %v4455_v46 = vpop.f32.mrb[30].mxu1 }
 0xa1e   :  { %v4460_v63 = vadd.f32 %v4384_v22, %v9010_v57  ;;  %v4386_v42 = vpop.f32.mrb[31].mxu0  ;;  %v4457_v15 = vpop.f32.mrb[31].mxu1  ;;  %v4462_v6 = vadd.f32 %v4455_v46, %v8704_v50 }
 0xa1f   :  { %v4461_v33 = vadd.f32 %v4386_v42, %v8703_v16  ;;  %v4463_v0 = vadd.f32 %v4457_v15, %v8705_v56  ;;  %v4590_v56 = vld [vmem:[%s8310_s9 + $0x70] sm:$0xff] }
 0xa20   :  { %v4464_v38 = vmul.f32 0.5, %v4460_v63  ;;  %v6393_v52 = vpack.c.bf16 %v4591_v1, %v4590_v56 }
 0xa21   :  { %v4468_v7 = vmul.f32 0.5, %v4461_v33  ;;  %v4473_v48 = vmul.f32 0.5, %v4463_v0 }
 0xa22   :  { %6657 = vtanh.f32 %v4464_v38  ;;  %6394 = vmatpush3.bf16.msra.mxu1 %v6393_v52 }
 0xa23   :  { %6659 = vtanh.f32 %v4468_v7 }
 0xa24   :  { %6661 = vtanh.f32 %v4462_v6 }
 0xa25   :  { %6663 = vtanh.f32 %v4473_v48 }
 0xa2c   :  { %v6658_v34 = vpop.eup %6657 }
 0xa2d   :  { %v6660_v59 = vpop.eup %6659  ;;  %v4466_v35 = vmul.f32 0.5, %v6658_v34 }
 0xa2e   :  { %v4470_v13 = vmul.f32 0.5, %v6660_v59  ;;  %v6662_v32 = vpop.eup %6661 }
 0xa2f   :  { %v4467_v57 = vadd.f32 0.5, %v4466_v35  ;;  %v6664_v51 = vpop.eup %6663 }
 0xa30   :  { %v4471_v55 = vadd.f32 0.5, %v4470_v13  ;;  %v4475_v50 = vmul.f32 0.5, %v6664_v51 }
 0xa31   :  { %v4478_v19 = vmul.f32 %v6662_v32, %v4467_v57 }
 0xa32   :  { %v4477_v16 = vmul.f32 %v4471_v55, %v8181_v49  ;;  %v4476_v36 = vadd.f32 0.5, %v4475_v50  ;;  %v4705_v49 = vld [vmem:[%s8309_s8] ss:$0 sm:$0xff] }
 0xa34   :  { %v4479_v31 = vadd.f32 %v4478_v19, %v4477_v16 }
 0xa36   :  { %6665 = vtanh.f32 %v4479_v31 }
 0xa40   :  { %v6666_v9 = vpop.eup %6665 }
 0xa41   :  { %v4481_v10 = vmul.f32 %v6666_v9, %v4476_v36 }
 0xa43   :  { %4774 = vmatmul.mubr.f32.vlgmr.msra.gmra.mrb[32].mxu0 %v4481_v10 }
 0xb16   :  { %v4571_v43 = vpop.f32.mrb[32].mxu0 }
 0xb17   :  { %v4572_v20 = vadd.f32 %v4705_v49, %v4571_v43  ;;  %v4775_v28 = vpop.f32.mrb[33].mxu0 }
 0xb19   :  { %v4575_v21 = vmax.f32 %v4572_v20, 0.0 }
 0xb1b   :  { %4809 = vmatmul.mubr.f32.vlgmr.msra.gmra.mrb[32].mxu1 %v4575_v21 }
 0xbee   :  { %v4665_v54 = vpop.f32.mrb[32].mxu1 }
 0xbef   :  { %v4666_v4 = vadd.f32 %v4706_v12, %v4665_v54  ;;  %v4810_v47 = vpop.f32.mrb[33].mxu1 }
 0xbf1   :  { %4669 = vst [vmem:[%s8312_s11] sm:$0xff] %v4666_v4 }
 0xbf2   :  { %4674 = vsyncpa [#allocation4], 1 }
 0xbf3   :  { %4675 = vsyncpa [#allocation6], 1 }
 0xbf4   :  { %4676 = vsyncpa [#allocation9], 1 }
 0xbf5   :  { %4677 = vsyncpa [#allocation12], 1 }

</bundles_post_ra>
